<compile_context>
chip_gen: v6e
topology: v6e:2x2x1
jax: 0.10.0
libtpu: 0.0.40
codegen_flags: <defaults>
</compile_context>

<pallas_src>
import functools
import math

import jax
import jax.numpy as jnp
from jax.experimental import pallas as pl
from jax.experimental.pallas import tpu as pltpu


def lstm_recurrent_kernel(gx_ref, wh_ref, h_out_ref, h_sc, c_sc, *,
                          hidden_pad, time_chunk, tail_steps, num_chunks):
    """Serial LSTM recurrence over one chunk of timesteps.

    gx_ref : (T, TB, 4*Hp) bf16  precomputed x@Wx + (bx+bh), time-major
    wh_ref : (Hp, 4*Hp)          hidden-to-hidden weight (right-multiplied)
    h_out_ref : (TB, Hp) f32     last hidden state for this batch tile
    h_sc, c_sc : (TB, Hp) f32    persistent hidden / cell state scratch
    """
    c = pl.program_id(1)  # time-chunk index ("arbitrary" / serial axis)

    # reset state at the first time chunk of each batch tile
    @pl.when(c == 0)
    def _():
        h_sc[...] = jnp.zeros_like(h_sc)
        c_sc[...] = jnp.zeros_like(c_sc)

    H = hidden_pad
    TB = h_sc.shape[0]
    HB = TB // 2                  # two independent sub-tiles, interleaved
    wh = wh_ref[...]              # hoist: load Wh once per grid step
    mm_dtype = wh.dtype

    def cell(gates, h, cc):
        # gate order matches torch.chunk(4, 1): [input, forget, cell, output];
        # each slice is a full lane-aligned H-wide block (H % 128 == 0).
        i_g = jax.nn.sigmoid(gates[:, 0 * H:1 * H])
        f_g = jax.nn.sigmoid(gates[:, 1 * H:2 * H])
        g_g = jnp.tanh(gates[:, 2 * H:3 * H])
        o_g = jax.nn.sigmoid(gates[:, 3 * H:4 * H])
        cc = cc * f_g + i_g * g_g
        h = o_g * jnp.tanh(cc)
        return h, cc

    def run_chunk(nsteps):
        def body():
            def step(tt, carry):
                h_a, c_a, h_b, c_b = carry
                gx = gx_ref[tt].astype(jnp.float32)   # (TB, 4H)
                # two independent chains: B's matmul issues while A's
                # sigmoid/tanh run on EUP/VPU (and vice versa)
                g_a = gx[:HB] + jnp.dot(h_a.astype(mm_dtype), wh,
                                        preferred_element_type=jnp.float32)
                g_b = gx[HB:] + jnp.dot(h_b.astype(mm_dtype), wh,
                                        preferred_element_type=jnp.float32)
                h_a, c_a = cell(g_a, h_a, c_a)
                h_b, c_b = cell(g_b, h_b, c_b)
                return h_a, c_a, h_b, c_b

            init = (h_sc[:HB], c_sc[:HB], h_sc[HB:], c_sc[HB:])
            h_a, c_a, h_b, c_b = jax.lax.fori_loop(
                0, nsteps, step, init, unroll=min(nsteps, 8))
            h_sc[:HB] = h_a
            c_sc[:HB] = c_a
            h_sc[HB:] = h_b
            c_sc[HB:] = c_b
        return body

    # no per-step masking: only the last chunk runs a (statically) shorter loop
    if num_chunks == 1:
        run_chunk(tail_steps)()
    elif tail_steps == time_chunk:
        run_chunk(time_chunk)()
    else:
        pl.when(c < num_chunks - 1)(run_chunk(time_chunk))
        pl.when(c == num_chunks - 1)(run_chunk(tail_steps))

    # emit the last hidden state once, at the final time chunk
    @pl.when(c == num_chunks - 1)
    def _():
        h_out_ref[...] = h_sc[...].astype(h_out_ref.dtype)


def _round_up(x, m):
    return ((x + m - 1) // m) * m


def _pad_gate_cols(w, H, H_pad):
    """Pad each of the 4 gate column-blocks from width H to H_pad with zeros."""
    if H_pad == H:
        return w
    parts = jnp.split(w, 4, axis=-1)
    pad = [(0, 0)] * (w.ndim - 1) + [(0, H_pad - H)]
    return jnp.concatenate([jnp.pad(p, pad) for p in parts], axis=-1)


def lstm_model_forward(x, params, *, time_chunk=None,
                       vmem_budget_bytes=32 * 1024 * 1024):
    """x: (batch, seq, input_dim) float32 -> (batch, output_dim) float32."""
    wx, bx, wh, bh, wfc, bfc = params
    B, S, D = x.shape
    H = wh.shape[0]

    # ---- batch tile: >=16 rows for MXU fill; >=2 tiles when B is large (v7x) --
    B8 = _round_up(B, 8)
    if B8 >= 32:
        TB = min(128, _round_up(max(16, B8 // 2), 16))
    else:
        TB = 16
    B_pad = _round_up(B8, TB)

    # ---- lane-aligned hidden width --------------------------------------------
    H_pad = _round_up(H, 128)
    G = 4 * H_pad

    # recurrence-matmul dtype: f32 while latency-bound (small/medium H),
    # bf16 operands only once MXU throughput / Wh footprint matters
    mm_dtype = jnp.float32 if H_pad <= 512 else jnp.bfloat16

    # ---- time chunk: as large as the VMEM budget allows ------------------------
    fixed = H_pad * G * jnp.dtype(mm_dtype).itemsize   # single-buffered Wh
    fixed += 2 * TB * H_pad * 4                        # h/c scratch (f32)
    fixed += 2 * TB * H_pad * 4                        # double-buffered out block
    per_t = 2 * TB * G * 2                             # double-buffered bf16 gx
    T_fit = max(1, (vmem_budget_bytes - fixed) // per_t)
    T = T_fit if time_chunk is None else time_chunk
    T = max(1, min(S, T))
    num_chunks = pl.cdiv(S, T)
    S_pad = num_chunks * T
    tail_steps = S - (num_chunks - 1) * T

    # ---- weight prep: gate-blockwise zero padding keeps padded lanes exactly 0 --
    wx_p = _pad_gate_cols(wx, H, H_pad)
    b_p = _pad_gate_cols(bx + bh, H, H_pad)             # both biases folded
    wh_p = _pad_gate_cols(wh, H, H_pad)
    if H_pad != H:
        wh_p = jnp.pad(wh_p, ((0, H_pad - H), (0, 0)))
    wh_p = wh_p.astype(mm_dtype)

    # ---- stage 1 (hoisted, XLA): one big parallel input projection, time-major,
    #      streamed to the kernel in bf16 to halve HBM traffic ------------------
    x_p = jnp.pad(x, ((0, B_pad - B), (0, 0), (0, 0))) if B_pad != B else x
    gx = jnp.einsum('btd,dg->tbg', x_p, wx_p,
                    preferred_element_type=jnp.float32) + b_p
    if S_pad != S:
        gx = jnp.pad(gx, ((0, S_pad - S), (0, 0), (0, 0)))
    gx = gx.astype(jnp.bfloat16)                         # (S_pad, B_pad, 4*H_pad)

    kernel = functools.partial(
        lstm_recurrent_kernel,
        hidden_pad=H_pad, time_chunk=T, tail_steps=tail_steps,
        num_chunks=num_chunks)

    # ---- stage 2 (Pallas): the serial recurrence -------------------------------
    h_last = pl.pallas_call(
        kernel,
        out_shape=jax.ShapeDtypeStruct((B_pad, H_pad), jnp.float32),
        grid_spec=pltpu.PrefetchScalarGridSpec(
            num_scalar_prefetch=0,
            grid=(B_pad // TB, num_chunks),
            in_specs=[
                # precomputed gates: one chunk of T timesteps per grid step
                pl.BlockSpec((T, TB, G), lambda b, c: (c, b, 0)),
                # grid-invariant Wh: single-buffered (constant index map)
                pl.BlockSpec((H_pad, G), lambda b, c: (0, 0),
                             pipeline_mode=pl.Buffered(1)),
            ],
            out_specs=pl.BlockSpec((TB, H_pad), lambda b, c: (b, 0)),
            scratch_shapes=[
                pltpu.VMEM((TB, H_pad), jnp.float32),    # h state
                pltpu.VMEM((TB, H_pad), jnp.float32),    # c state
            ],
        ),
        compiler_params=pltpu.CompilerParams(
            dimension_semantics=("parallel", "arbitrary"),
            vmem_limit_bytes=48 * 1024 * 1024),
    )(gx, wh_p)

    # ---- stage 3 (XLA): final Linear on the last hidden state ------------------
    return h_last[:B, :H] @ wfc + bfc


def init_params(key, input_dim, hidden_dim, output_dim):
    """Uniform(-1/sqrt(H), 1/sqrt(H)) init, matching LSTMCell.reset_parameters;
    weights stored transposed for right-multiplication."""
    ks = jax.random.split(key, 6)
    std = 1.0 / math.sqrt(hidden_dim)
    wx = jax.random.uniform(ks[0], (input_dim, 4 * hidden_dim),
                            jnp.float32, -std, std)
    bx = jax.random.uniform(ks[1], (1, 4 * hidden_dim), jnp.float32, -std, std)
    wh = jax.random.uniform(ks[2], (hidden_dim, 4 * hidden_dim),
                            jnp.float32, -std, std)
    bh = jax.random.uniform(ks[3], (1, 4 * hidden_dim), jnp.float32, -std, std)
    wfc = jax.random.uniform(ks[4], (hidden_dim, output_dim),
                             jnp.float32, -std, std)
    bfc = jax.random.uniform(ks[5], (1, output_dim), jnp.float32, -std, std)
    return (wx, bx, wh, bh, wfc, bfc)


def reference_forward(x, params):
    """Pure-JAX f32 reference of the PyTorch forward."""
    wx, bx, wh, bh, wfc, bfc = params
    B, S, D = x.shape
    H = wh.shape[0]
    h = jnp.zeros((B, H), jnp.float32)
    c = jnp.zeros((B, H), jnp.float32)
    for t in range(S):
        gates = x[:, t, :] @ wx + bx + h @ wh + bh
        i, f, g, o = jnp.split(gates, 4, axis=1)
        i, f, o = jax.nn.sigmoid(i), jax.nn.sigmoid(f), jax.nn.sigmoid(o)
        g = jnp.tanh(g)
        c = c * f + i * g
        h = o * jnp.tanh(c)
    return h @ wfc + bfc


if __name__ == "__main__":
    batch, seq, input_dim, hidden_dim, output_dim = 2, 8, 16, 32, 8

    key = jax.random.PRNGKey(0)
    kx, kp = jax.random.split(key)
    x = jax.random.normal(kx, (batch, seq, input_dim), jnp.float32)
    params = init_params(kp, input_dim, hidden_dim, output_dim)

    ref = reference_forward(x, params)

    # auto time-chunk: whole sequence in one chunk at these shapes
    out = jax.block_until_ready(lstm_model_forward(x, params))
    assert out.shape == (batch, output_dim)
    err = float(jnp.max(jnp.abs(out - ref)))
    assert jnp.allclose(out, ref, atol=2e-2, rtol=2e-2), f"max abs err {err}"

    # forced small chunk: exercises cross-chunk state carry + the tail-chunk path
    out2 = jax.block_until_ready(lstm_model_forward(x, params, time_chunk=3))
    err2 = float(jnp.max(jnp.abs(out2 - ref)))
    assert jnp.allclose(out2, ref, atol=2e-2, rtol=2e-2), f"max abs err {err2}"

    print("KERNEL_OK")
</pallas_src>

<mosaic_0001>
module attributes {stable_mosaic.version = 11 : i64} {
  func.func @lstm_recurrent_kernel(%arg0: i32, %arg1: i32, %arg2: memref<8x16x512xbf16, #tpu.memory_space<vmem>>, %arg3: memref<128x512xf32, #tpu.memory_space<vmem>>, %arg4: memref<16x128xf32, #tpu.memory_space<vmem>>, %arg5: memref<16x128xf32, #tpu.memory_space<vmem>>, %arg6: memref<16x128xf32, #tpu.memory_space<vmem>>) attributes {dimension_semantics = [#tpu.dimension_semantics<parallel>, #tpu.dimension_semantics<arbitrary>], iteration_bounds = array<i64: 1, 1>, scalar_prefetch = 0 : i64, scratch_operands = 2 : i64, tpu.core_type = #tpu.core_type<tc>, window_params = [{transform_indices = @transform_0, window_bounds = array<i64: 8, 16, 512>}, {pipeline_mode = #tpu.pipeline_mode<synchronous>, transform_indices = @transform_1, window_bounds = array<i64: 128, 512>}, {transform_indices = @transform_2, window_bounds = array<i64: 16, 128>}]} {
    %c0_i32 = arith.constant 0 : i32
    %0 = arith.cmpi eq, %arg1, %c0_i32 : i32
    %1 = arith.extui %0 : i1 to i32
    %c0_i32_0 = arith.constant 0 : i32
    %2 = arith.cmpi ne, %1, %c0_i32_0 : i32
    scf.if %2 {
      %cst_99 = arith.constant 0.000000e+00 : f32
      %495 = vector.broadcast %cst_99 : f32 to vector<16x128xf32>
      %c0_100 = arith.constant 0 : index
      %c0_101 = arith.constant 0 : index
      %496 = vector.load %arg5[%c0_100, %c0_101] : memref<16x128xf32, #tpu.memory_space<vmem>>, vector<16x128xf32>
      tpu.vector_store %arg5[%c0_100, %c0_101], %495 {strides = array<i32>} : memref<16x128xf32, #tpu.memory_space<vmem>>, vector<16x128xf32>,
      %cst_102 = arith.constant 0.000000e+00 : f32
      %497 = vector.broadcast %cst_102 : f32 to vector<16x128xf32>
      %c0_103 = arith.constant 0 : index
      %c0_104 = arith.constant 0 : index
      %498 = vector.load %arg6[%c0_103, %c0_104] : memref<16x128xf32, #tpu.memory_space<vmem>>, vector<16x128xf32>
      tpu.vector_store %arg6[%c0_103, %c0_104], %497 {strides = array<i32>} : memref<16x128xf32, #tpu.memory_space<vmem>>, vector<16x128xf32>,
    } else {
    }
    %c0 = arith.constant 0 : index
    %c0_1 = arith.constant 0 : index
    %3 = vector.load %arg3[%c0, %c0_1] : memref<128x512xf32, #tpu.memory_space<vmem>>, vector<128x512xf32>
    %c0_2 = arith.constant 0 : index
    %c0_3 = arith.constant 0 : index
    %4 = vector.load %arg5[%c0_2, %c0_3] : memref<16x128xf32, #tpu.memory_space<vmem>>, vector<8x128xf32>
    %c0_4 = arith.constant 0 : index
    %c0_5 = arith.constant 0 : index
    %5 = vector.load %arg6[%c0_4, %c0_5] : memref<16x128xf32, #tpu.memory_space<vmem>>, vector<8x128xf32>
    %c8 = arith.constant 8 : index
    %c0_6 = arith.constant 0 : index
    %6 = vector.load %arg5[%c8, %c0_6] : memref<16x128xf32, #tpu.memory_space<vmem>>, vector<8x128xf32>
    %c8_7 = arith.constant 8 : index
    %c0_8 = arith.constant 0 : index
    %7 = vector.load %arg6[%c8_7, %c0_8] : memref<16x128xf32, #tpu.memory_space<vmem>>, vector<8x128xf32>
    %c0_i32_9 = arith.constant 0 : i32
    %8 = arith.index_cast %c0_i32_9 : i32 to index
    %c0_10 = arith.constant 0 : index
    %c0_11 = arith.constant 0 : index
    %9 = vector.load %arg2[%8, %c0_10, %c0_11] : memref<8x16x512xbf16, #tpu.memory_space<vmem>>, vector<1x16x512xbf16>
    %10 = vector.shape_cast %9 : vector<1x16x512xbf16> to vector<16x512xbf16>
    %11 = arith.extf %10 : vector<16x512xbf16> to vector<16x512xf32>
    %12 = vector.extract_strided_slice %11 {offsets = [0, 0], sizes = [8, 512], strides = [1, 1]} : vector<16x512xf32> to vector<8x512xf32>
    %cst = arith.constant dense<0.000000e+00> : vector<8x512xf32>
    %13 = tpu.matmul %4, %3, %cst {dimension_numbers = #tpu.dot_dimension_numbers<[1], [0], [0], [1], [0, 0, 1, 1], [], []>} : vector<8x128xf32>, vector<128x512xf32>, vector<8x512xf32> -> vector<8x512xf32>
    %14 = arith.addf %12, %13 : vector<8x512xf32>
    %15 = vector.extract_strided_slice %11 {offsets = [8, 0], sizes = [8, 512], strides = [1, 1]} : vector<16x512xf32> to vector<8x512xf32>
    %cst_12 = arith.constant dense<0.000000e+00> : vector<8x512xf32>
    %16 = tpu.matmul %6, %3, %cst_12 {dimension_numbers = #tpu.dot_dimension_numbers<[1], [0], [0], [1], [0, 0, 1, 1], [], []>} : vector<8x128xf32>, vector<128x512xf32>, vector<8x512xf32> -> vector<8x512xf32>
    %17 = arith.addf %15, %16 : vector<8x512xf32>
    %18 = vector.extract_strided_slice %14 {offsets = [0, 0], sizes = [8, 128], strides = [1, 1]} : vector<8x512xf32> to vector<8x128xf32>
    %19 = arith.negf %18 : vector<8x128xf32>
    %20 = math.exp %19 : vector<8x128xf32>
    %cst_13 = arith.constant 1.000000e+00 : f32
    %21 = vector.broadcast %cst_13 : f32 to vector<8x128xf32>
    %22 = arith.addf %21, %20 : vector<8x128xf32>
    %23 = arith.divf %21, %22 : vector<8x128xf32>
    %24 = vector.extract_strided_slice %14 {offsets = [0, 128], sizes = [8, 128], strides = [1, 1]} : vector<8x512xf32> to vector<8x128xf32>
    %25 = arith.negf %24 : vector<8x128xf32>
    %26 = math.exp %25 : vector<8x128xf32>
    %cst_14 = arith.constant 1.000000e+00 : f32
    %27 = vector.broadcast %cst_14 : f32 to vector<8x128xf32>
    %28 = arith.addf %27, %26 : vector<8x128xf32>
    %29 = arith.divf %27, %28 : vector<8x128xf32>
    %30 = vector.extract_strided_slice %14 {offsets = [0, 256], sizes = [8, 128], strides = [1, 1]} : vector<8x512xf32> to vector<8x128xf32>
    %31 = math.tanh %30 : vector<8x128xf32>
    %32 = vector.extract_strided_slice %14 {offsets = [0, 384], sizes = [8, 128], strides = [1, 1]} : vector<8x512xf32> to vector<8x128xf32>
    %33 = arith.negf %32 : vector<8x128xf32>
    %34 = math.exp %33 : vector<8x128xf32>
    %cst_15 = arith.constant 1.000000e+00 : f32
    %35 = vector.broadcast %cst_15 : f32 to vector<8x128xf32>
    %36 = arith.addf %35, %34 : vector<8x128xf32>
    %37 = arith.divf %35, %36 : vector<8x128xf32>
    %38 = arith.mulf %5, %29 : vector<8x128xf32>
    %39 = arith.mulf %23, %31 : vector<8x128xf32>
    %40 = arith.addf %38, %39 : vector<8x128xf32>
    %41 = math.tanh %40 : vector<8x128xf32>
    %42 = arith.mulf %37, %41 : vector<8x128xf32>
    %43 = vector.extract_strided_slice %17 {offsets = [0, 0], sizes = [8, 128], strides = [1, 1]} : vector<8x512xf32> to vector<8x128xf32>
    %44 = arith.negf %43 : vector<8x128xf32>
    %45 = math.exp %44 : vector<8x128xf32>
    %cst_16 = arith.constant 1.000000e+00 : f32
    %46 = vector.broadcast %cst_16 : f32 to vector<8x128xf32>
    %47 = arith.addf %46, %45 : vector<8x128xf32>
    %48 = arith.divf %46, %47 : vector<8x128xf32>
    %49 = vector.extract_strided_slice %17 {offsets = [0, 128], sizes = [8, 128], strides = [1, 1]} : vector<8x512xf32> to vector<8x128xf32>
    %50 = arith.negf %49 : vector<8x128xf32>
    %51 = math.exp %50 : vector<8x128xf32>
    %cst_17 = arith.constant 1.000000e+00 : f32
    %52 = vector.broadcast %cst_17 : f32 to vector<8x128xf32>
    %53 = arith.addf %52, %51 : vector<8x128xf32>
    %54 = arith.divf %52, %53 : vector<8x128xf32>
    %55 = vector.extract_strided_slice %17 {offsets = [0, 256], sizes = [8, 128], strides = [1, 1]} : vector<8x512xf32> to vector<8x128xf32>
    %56 = math.tanh %55 : vector<8x128xf32>
    %57 = vector.extract_strided_slice %17 {offsets = [0, 384], sizes = [8, 128], strides = [1, 1]} : vector<8x512xf32> to vector<8x128xf32>
    %58 = arith.negf %57 : vector<8x128xf32>
    %59 = math.exp %58 : vector<8x128xf32>
    %cst_18 = arith.constant 1.000000e+00 : f32
    %60 = vector.broadcast %cst_18 : f32 to vector<8x128xf32>
    %61 = arith.addf %60, %59 : vector<8x128xf32>
    %62 = arith.divf %60, %61 : vector<8x128xf32>
    %63 = arith.mulf %7, %54 : vector<8x128xf32>
    %64 = arith.mulf %48, %56 : vector<8x128xf32>
    %65 = arith.addf %63, %64 : vector<8x128xf32>
    %66 = math.tanh %65 : vector<8x128xf32>
    %67 = arith.mulf %62, %66 : vector<8x128xf32>
    %c1_i32 = arith.constant 1 : i32
    %68 = arith.index_cast %c1_i32 : i32 to index
    %c0_19 = arith.constant 0 : index
    %c0_20 = arith.constant 0 : index
    %69 = vector.load %arg2[%68, %c0_19, %c0_20] : memref<8x16x512xbf16, #tpu.memory_space<vmem>>, vector<1x16x512xbf16>
    %70 = vector.shape_cast %69 : vector<1x16x512xbf16> to vector<16x512xbf16>
    %71 = arith.extf %70 : vector<16x512xbf16> to vector<16x512xf32>
    %72 = vector.extract_strided_slice %71 {offsets = [0, 0], sizes = [8, 512], strides = [1, 1]} : vector<16x512xf32> to vector<8x512xf32>
    %cst_21 = arith.constant dense<0.000000e+00> : vector<8x512xf32>
    %73 = tpu.matmul %42, %3, %cst_21 {dimension_numbers = #tpu.dot_dimension_numbers<[1], [0], [0], [1], [0, 0, 1, 1], [], []>} : vector<8x128xf32>, vector<128x512xf32>, vector<8x512xf32> -> vector<8x512xf32>
    %74 = arith.addf %72, %73 : vector<8x512xf32>
    %75 = vector.extract_strided_slice %71 {offsets = [8, 0], sizes = [8, 512], strides = [1, 1]} : vector<16x512xf32> to vector<8x512xf32>
    %cst_22 = arith.constant dense<0.000000e+00> : vector<8x512xf32>
    %76 = tpu.matmul %67, %3, %cst_22 {dimension_numbers = #tpu.dot_dimension_numbers<[1], [0], [0], [1], [0, 0, 1, 1], [], []>} : vector<8x128xf32>, vector<128x512xf32>, vector<8x512xf32> -> vector<8x512xf32>
    %77 = arith.addf %75, %76 : vector<8x512xf32>
    %78 = vector.extract_strided_slice %74 {offsets = [0, 0], sizes = [8, 128], strides = [1, 1]} : vector<8x512xf32> to vector<8x128xf32>
    %79 = arith.negf %78 : vector<8x128xf32>
    %80 = math.exp %79 : vector<8x128xf32>
    %cst_23 = arith.constant 1.000000e+00 : f32
    %81 = vector.broadcast %cst_23 : f32 to vector<8x128xf32>
    %82 = arith.addf %81, %80 : vector<8x128xf32>
    %83 = arith.divf %81, %82 : vector<8x128xf32>
    %84 = vector.extract_strided_slice %74 {offsets = [0, 128], sizes = [8, 128], strides = [1, 1]} : vector<8x512xf32> to vector<8x128xf32>
    %85 = arith.negf %84 : vector<8x128xf32>
    %86 = math.exp %85 : vector<8x128xf32>
    %cst_24 = arith.constant 1.000000e+00 : f32
    %87 = vector.broadcast %cst_24 : f32 to vector<8x128xf32>
    %88 = arith.addf %87, %86 : vector<8x128xf32>
    %89 = arith.divf %87, %88 : vector<8x128xf32>
    %90 = vector.extract_strided_slice %74 {offsets = [0, 256], sizes = [8, 128], strides = [1, 1]} : vector<8x512xf32> to vector<8x128xf32>
    %91 = math.tanh %90 : vector<8x128xf32>
    %92 = vector.extract_strided_slice %74 {offsets = [0, 384], sizes = [8, 128], strides = [1, 1]} : vector<8x512xf32> to vector<8x128xf32>
    %93 = arith.negf %92 : vector<8x128xf32>
    %94 = math.exp %93 : vector<8x128xf32>
    %cst_25 = arith.constant 1.000000e+00 : f32
    %95 = vector.broadcast %cst_25 : f32 to vector<8x128xf32>
    %96 = arith.addf %95, %94 : vector<8x128xf32>
    %97 = arith.divf %95, %96 : vector<8x128xf32>
    %98 = arith.mulf %40, %89 : vector<8x128xf32>
    %99 = arith.mulf %83, %91 : vector<8x128xf32>
    %100 = arith.addf %98, %99 : vector<8x128xf32>
    %101 = math.tanh %100 : vector<8x128xf32>
    %102 = arith.mulf %97, %101 : vector<8x128xf32>
    %103 = vector.extract_strided_slice %77 {offsets = [0, 0], sizes = [8, 128], strides = [1, 1]} : vector<8x512xf32> to vector<8x128xf32>
    %104 = arith.negf %103 : vector<8x128xf32>
    %105 = math.exp %104 : vector<8x128xf32>
    %cst_26 = arith.constant 1.000000e+00 : f32
    %106 = vector.broadcast %cst_26 : f32 to vector<8x128xf32>
    %107 = arith.addf %106, %105 : vector<8x128xf32>
    %108 = arith.divf %106, %107 : vector<8x128xf32>
    %109 = vector.extract_strided_slice %77 {offsets = [0, 128], sizes = [8, 128], strides = [1, 1]} : vector<8x512xf32> to vector<8x128xf32>
    %110 = arith.negf %109 : vector<8x128xf32>
    %111 = math.exp %110 : vector<8x128xf32>
    %cst_27 = arith.constant 1.000000e+00 : f32
    %112 = vector.broadcast %cst_27 : f32 to vector<8x128xf32>
    %113 = arith.addf %112, %111 : vector<8x128xf32>
    %114 = arith.divf %112, %113 : vector<8x128xf32>
    %115 = vector.extract_strided_slice %77 {offsets = [0, 256], sizes = [8, 128], strides = [1, 1]} : vector<8x512xf32> to vector<8x128xf32>
    %116 = math.tanh %115 : vector<8x128xf32>
    %117 = vector.extract_strided_slice %77 {offsets = [0, 384], sizes = [8, 128], strides = [1, 1]} : vector<8x512xf32> to vector<8x128xf32>
    %118 = arith.negf %117 : vector<8x128xf32>
    %119 = math.exp %118 : vector<8x128xf32>
    %cst_28 = arith.constant 1.000000e+00 : f32
    %120 = vector.broadcast %cst_28 : f32 to vector<8x128xf32>
    %121 = arith.addf %120, %119 : vector<8x128xf32>
    %122 = arith.divf %120, %121 : vector<8x128xf32>
    %123 = arith.mulf %65, %114 : vector<8x128xf32>
    %124 = arith.mulf %108, %116 : vector<8x128xf32>
    %125 = arith.addf %123, %124 : vector<8x128xf32>
    %126 = math.tanh %125 : vector<8x128xf32>
    %127 = arith.mulf %122, %126 : vector<8x128xf32>
    %c2_i32 = arith.constant 2 : i32
    %128 = arith.index_cast %c2_i32 : i32 to index
    %c0_29 = arith.constant 0 : index
    %c0_30 = arith.constant 0 : index
    %129 = vector.load %arg2[%128, %c0_29, %c0_30] : memref<8x16x512xbf16, #tpu.memory_space<vmem>>, vector<1x16x512xbf16>
    %130 = vector.shape_cast %129 : vector<1x16x512xbf16> to vector<16x512xbf16>
    %131 = arith.extf %130 : vector<16x512xbf16> to vector<16x512xf32>
    %132 = vector.extract_strided_slice %131 {offsets = [0, 0], sizes = [8, 512], strides = [1, 1]} : vector<16x512xf32> to vector<8x512xf32>
    %cst_31 = arith.constant dense<0.000000e+00> : vector<8x512xf32>
    %133 = tpu.matmul %102, %3, %cst_31 {dimension_numbers = #tpu.dot_dimension_numbers<[1], [0], [0], [1], [0, 0, 1, 1], [], []>} : vector<8x128xf32>, vector<128x512xf32>, vector<8x512xf32> -> vector<8x512xf32>
    %134 = arith.addf %132, %133 : vector<8x512xf32>
    %135 = vector.extract_strided_slice %131 {offsets = [8, 0], sizes = [8, 512], strides = [1, 1]} : vector<16x512xf32> to vector<8x512xf32>
    %cst_32 = arith.constant dense<0.000000e+00> : vector<8x512xf32>
    %136 = tpu.matmul %127, %3, %cst_32 {dimension_numbers = #tpu.dot_dimension_numbers<[1], [0], [0], [1], [0, 0, 1, 1], [], []>} : vector<8x128xf32>, vector<128x512xf32>, vector<8x512xf32> -> vector<8x512xf32>
    %137 = arith.addf %135, %136 : vector<8x512xf32>
    %138 = vector.extract_strided_slice %134 {offsets = [0, 0], sizes = [8, 128], strides = [1, 1]} : vector<8x512xf32> to vector<8x128xf32>
    %139 = arith.negf %138 : vector<8x128xf32>
    %140 = math.exp %139 : vector<8x128xf32>
    %cst_33 = arith.constant 1.000000e+00 : f32
    %141 = vector.broadcast %cst_33 : f32 to vector<8x128xf32>
    %142 = arith.addf %141, %140 : vector<8x128xf32>
    %143 = arith.divf %141, %142 : vector<8x128xf32>
    %144 = vector.extract_strided_slice %134 {offsets = [0, 128], sizes = [8, 128], strides = [1, 1]} : vector<8x512xf32> to vector<8x128xf32>
    %145 = arith.negf %144 : vector<8x128xf32>
    %146 = math.exp %145 : vector<8x128xf32>
    %cst_34 = arith.constant 1.000000e+00 : f32
    %147 = vector.broadcast %cst_34 : f32 to vector<8x128xf32>
    %148 = arith.addf %147, %146 : vector<8x128xf32>
    %149 = arith.divf %147, %148 : vector<8x128xf32>
    %150 = vector.extract_strided_slice %134 {offsets = [0, 256], sizes = [8, 128], strides = [1, 1]} : vector<8x512xf32> to vector<8x128xf32>
    %151 = math.tanh %150 : vector<8x128xf32>
    %152 = vector.extract_strided_slice %134 {offsets = [0, 384], sizes = [8, 128], strides = [1, 1]} : vector<8x512xf32> to vector<8x128xf32>
    %153 = arith.negf %152 : vector<8x128xf32>
    %154 = math.exp %153 : vector<8x128xf32>
    %cst_35 = arith.constant 1.000000e+00 : f32
    %155 = vector.broadcast %cst_35 : f32 to vector<8x128xf32>
    %156 = arith.addf %155, %154 : vector<8x128xf32>
    %157 = arith.divf %155, %156 : vector<8x128xf32>
    %158 = arith.mulf %100, %149 : vector<8x128xf32>
    %159 = arith.mulf %143, %151 : vector<8x128xf32>
    %160 = arith.addf %158, %159 : vector<8x128xf32>
    %161 = math.tanh %160 : vector<8x128xf32>
    %162 = arith.mulf %157, %161 : vector<8x128xf32>
    %163 = vector.extract_strided_slice %137 {offsets = [0, 0], sizes = [8, 128], strides = [1, 1]} : vector<8x512xf32> to vector<8x128xf32>
    %164 = arith.negf %163 : vector<8x128xf32>
    %165 = math.exp %164 : vector<8x128xf32>
    %cst_36 = arith.constant 1.000000e+00 : f32
    %166 = vector.broadcast %cst_36 : f32 to vector<8x128xf32>
    %167 = arith.addf %166, %165 : vector<8x128xf32>
    %168 = arith.divf %166, %167 : vector<8x128xf32>
    %169 = vector.extract_strided_slice %137 {offsets = [0, 128], sizes = [8, 128], strides = [1, 1]} : vector<8x512xf32> to vector<8x128xf32>
    %170 = arith.negf %169 : vector<8x128xf32>
    %171 = math.exp %170 : vector<8x128xf32>
    %cst_37 = arith.constant 1.000000e+00 : f32
    %172 = vector.broadcast %cst_37 : f32 to vector<8x128xf32>
    %173 = arith.addf %172, %171 : vector<8x128xf32>
    %174 = arith.divf %172, %173 : vector<8x128xf32>
    %175 = vector.extract_strided_slice %137 {offsets = [0, 256], sizes = [8, 128], strides = [1, 1]} : vector<8x512xf32> to vector<8x128xf32>
    %176 = math.tanh %175 : vector<8x128xf32>
    %177 = vector.extract_strided_slice %137 {offsets = [0, 384], sizes = [8, 128], strides = [1, 1]} : vector<8x512xf32> to vector<8x128xf32>
    %178 = arith.negf %177 : vector<8x128xf32>
    %179 = math.exp %178 : vector<8x128xf32>
    %cst_38 = arith.constant 1.000000e+00 : f32
    %180 = vector.broadcast %cst_38 : f32 to vector<8x128xf32>
    %181 = arith.addf %180, %179 : vector<8x128xf32>
    %182 = arith.divf %180, %181 : vector<8x128xf32>
    %183 = arith.mulf %125, %174 : vector<8x128xf32>
    %184 = arith.mulf %168, %176 : vector<8x128xf32>
    %185 = arith.addf %183, %184 : vector<8x128xf32>
    %186 = math.tanh %185 : vector<8x128xf32>
    %187 = arith.mulf %182, %186 : vector<8x128xf32>
    %c3_i32 = arith.constant 3 : i32
    %188 = arith.index_cast %c3_i32 : i32 to index
    %c0_39 = arith.constant 0 : index
    %c0_40 = arith.constant 0 : index
    %189 = vector.load %arg2[%188, %c0_39, %c0_40] : memref<8x16x512xbf16, #tpu.memory_space<vmem>>, vector<1x16x512xbf16>
    %190 = vector.shape_cast %189 : vector<1x16x512xbf16> to vector<16x512xbf16>
    %191 = arith.extf %190 : vector<16x512xbf16> to vector<16x512xf32>
    %192 = vector.extract_strided_slice %191 {offsets = [0, 0], sizes = [8, 512], strides = [1, 1]} : vector<16x512xf32> to vector<8x512xf32>
    %cst_41 = arith.constant dense<0.000000e+00> : vector<8x512xf32>
    %193 = tpu.matmul %162, %3, %cst_41 {dimension_numbers = #tpu.dot_dimension_numbers<[1], [0], [0], [1], [0, 0, 1, 1], [], []>} : vector<8x128xf32>, vector<128x512xf32>, vector<8x512xf32> -> vector<8x512xf32>
    %194 = arith.addf %192, %193 : vector<8x512xf32>
    %195 = vector.extract_strided_slice %191 {offsets = [8, 0], sizes = [8, 512], strides = [1, 1]} : vector<16x512xf32> to vector<8x512xf32>
    %cst_42 = arith.constant dense<0.000000e+00> : vector<8x512xf32>
    %196 = tpu.matmul %187, %3, %cst_42 {dimension_numbers = #tpu.dot_dimension_numbers<[1], [0], [0], [1], [0, 0, 1, 1], [], []>} : vector<8x128xf32>, vector<128x512xf32>, vector<8x512xf32> -> vector<8x512xf32>
    %197 = arith.addf %195, %196 : vector<8x512xf32>
    %198 = vector.extract_strided_slice %194 {offsets = [0, 0], sizes = [8, 128], strides = [1, 1]} : vector<8x512xf32> to vector<8x128xf32>
    %199 = arith.negf %198 : vector<8x128xf32>
    %200 = math.exp %199 : vector<8x128xf32>
    %cst_43 = arith.constant 1.000000e+00 : f32
    %201 = vector.broadcast %cst_43 : f32 to vector<8x128xf32>
    %202 = arith.addf %201, %200 : vector<8x128xf32>
    %203 = arith.divf %201, %202 : vector<8x128xf32>
    %204 = vector.extract_strided_slice %194 {offsets = [0, 128], sizes = [8, 128], strides = [1, 1]} : vector<8x512xf32> to vector<8x128xf32>
    %205 = arith.negf %204 : vector<8x128xf32>
    %206 = math.exp %205 : vector<8x128xf32>
    %cst_44 = arith.constant 1.000000e+00 : f32
    %207 = vector.broadcast %cst_44 : f32 to vector<8x128xf32>
    %208 = arith.addf %207, %206 : vector<8x128xf32>
    %209 = arith.divf %207, %208 : vector<8x128xf32>
    %210 = vector.extract_strided_slice %194 {offsets = [0, 256], sizes = [8, 128], strides = [1, 1]} : vector<8x512xf32> to vector<8x128xf32>
    %211 = math.tanh %210 : vector<8x128xf32>
    %212 = vector.extract_strided_slice %194 {offsets = [0, 384], sizes = [8, 128], strides = [1, 1]} : vector<8x512xf32> to vector<8x128xf32>
    %213 = arith.negf %212 : vector<8x128xf32>
    %214 = math.exp %213 : vector<8x128xf32>
    %cst_45 = arith.constant 1.000000e+00 : f32
    %215 = vector.broadcast %cst_45 : f32 to vector<8x128xf32>
    %216 = arith.addf %215, %214 : vector<8x128xf32>
    %217 = arith.divf %215, %216 : vector<8x128xf32>
    %218 = arith.mulf %160, %209 : vector<8x128xf32>
    %219 = arith.mulf %203, %211 : vector<8x128xf32>
    %220 = arith.addf %218, %219 : vector<8x128xf32>
    %221 = math.tanh %220 : vector<8x128xf32>
    %222 = arith.mulf %217, %221 : vector<8x128xf32>
    %223 = vector.extract_strided_slice %197 {offsets = [0, 0], sizes = [8, 128], strides = [1, 1]} : vector<8x512xf32> to vector<8x128xf32>
    %224 = arith.negf %223 : vector<8x128xf32>
    %225 = math.exp %224 : vector<8x128xf32>
    %cst_46 = arith.constant 1.000000e+00 : f32
    %226 = vector.broadcast %cst_46 : f32 to vector<8x128xf32>
    %227 = arith.addf %226, %225 : vector<8x128xf32>
    %228 = arith.divf %226, %227 : vector<8x128xf32>
    %229 = vector.extract_strided_slice %197 {offsets = [0, 128], sizes = [8, 128], strides = [1, 1]} : vector<8x512xf32> to vector<8x128xf32>
    %230 = arith.negf %229 : vector<8x128xf32>
    %231 = math.exp %230 : vector<8x128xf32>
    %cst_47 = arith.constant 1.000000e+00 : f32
    %232 = vector.broadcast %cst_47 : f32 to vector<8x128xf32>
    %233 = arith.addf %232, %231 : vector<8x128xf32>
    %234 = arith.divf %232, %233 : vector<8x128xf32>
    %235 = vector.extract_strided_slice %197 {offsets = [0, 256], sizes = [8, 128], strides = [1, 1]} : vector<8x512xf32> to vector<8x128xf32>
    %236 = math.tanh %235 : vector<8x128xf32>
    %237 = vector.extract_strided_slice %197 {offsets = [0, 384], sizes = [8, 128], strides = [1, 1]} : vector<8x512xf32> to vector<8x128xf32>
    %238 = arith.negf %237 : vector<8x128xf32>
    %239 = math.exp %238 : vector<8x128xf32>
    %cst_48 = arith.constant 1.000000e+00 : f32
    %240 = vector.broadcast %cst_48 : f32 to vector<8x128xf32>
    %241 = arith.addf %240, %239 : vector<8x128xf32>
    %242 = arith.divf %240, %241 : vector<8x128xf32>
    %243 = arith.mulf %185, %234 : vector<8x128xf32>
    %244 = arith.mulf %228, %236 : vector<8x128xf32>
    %245 = arith.addf %243, %244 : vector<8x128xf32>
    %246 = math.tanh %245 : vector<8x128xf32>
    %247 = arith.mulf %242, %246 : vector<8x128xf32>
    %c4_i32 = arith.constant 4 : i32
    %248 = arith.index_cast %c4_i32 : i32 to index
    %c0_49 = arith.constant 0 : index
    %c0_50 = arith.constant 0 : index
    %249 = vector.load %arg2[%248, %c0_49, %c0_50] : memref<8x16x512xbf16, #tpu.memory_space<vmem>>, vector<1x16x512xbf16>
    %250 = vector.shape_cast %249 : vector<1x16x512xbf16> to vector<16x512xbf16>
    %251 = arith.extf %250 : vector<16x512xbf16> to vector<16x512xf32>
    %252 = vector.extract_strided_slice %251 {offsets = [0, 0], sizes = [8, 512], strides = [1, 1]} : vector<16x512xf32> to vector<8x512xf32>
    %cst_51 = arith.constant dense<0.000000e+00> : vector<8x512xf32>
    %253 = tpu.matmul %222, %3, %cst_51 {dimension_numbers = #tpu.dot_dimension_numbers<[1], [0], [0], [1], [0, 0, 1, 1], [], []>} : vector<8x128xf32>, vector<128x512xf32>, vector<8x512xf32> -> vector<8x512xf32>
    %254 = arith.addf %252, %253 : vector<8x512xf32>
    %255 = vector.extract_strided_slice %251 {offsets = [8, 0], sizes = [8, 512], strides = [1, 1]} : vector<16x512xf32> to vector<8x512xf32>
    %cst_52 = arith.constant dense<0.000000e+00> : vector<8x512xf32>
    %256 = tpu.matmul %247, %3, %cst_52 {dimension_numbers = #tpu.dot_dimension_numbers<[1], [0], [0], [1], [0, 0, 1, 1], [], []>} : vector<8x128xf32>, vector<128x512xf32>, vector<8x512xf32> -> vector<8x512xf32>
    %257 = arith.addf %255, %256 : vector<8x512xf32>
    %258 = vector.extract_strided_slice %254 {offsets = [0, 0], sizes = [8, 128], strides = [1, 1]} : vector<8x512xf32> to vector<8x128xf32>
    %259 = arith.negf %258 : vector<8x128xf32>
    %260 = math.exp %259 : vector<8x128xf32>
    %cst_53 = arith.constant 1.000000e+00 : f32
    %261 = vector.broadcast %cst_53 : f32 to vector<8x128xf32>
    %262 = arith.addf %261, %260 : vector<8x128xf32>
    %263 = arith.divf %261, %262 : vector<8x128xf32>
    %264 = vector.extract_strided_slice %254 {offsets = [0, 128], sizes = [8, 128], strides = [1, 1]} : vector<8x512xf32> to vector<8x128xf32>
    %265 = arith.negf %264 : vector<8x128xf32>
    %266 = math.exp %265 : vector<8x128xf32>
    %cst_54 = arith.constant 1.000000e+00 : f32
    %267 = vector.broadcast %cst_54 : f32 to vector<8x128xf32>
    %268 = arith.addf %267, %266 : vector<8x128xf32>
    %269 = arith.divf %267, %268 : vector<8x128xf32>
    %270 = vector.extract_strided_slice %254 {offsets = [0, 256], sizes = [8, 128], strides = [1, 1]} : vector<8x512xf32> to vector<8x128xf32>
    %271 = math.tanh %270 : vector<8x128xf32>
    %272 = vector.extract_strided_slice %254 {offsets = [0, 384], sizes = [8, 128], strides = [1, 1]} : vector<8x512xf32> to vector<8x128xf32>
    %273 = arith.negf %272 : vector<8x128xf32>
    %274 = math.exp %273 : vector<8x128xf32>
    %cst_55 = arith.constant 1.000000e+00 : f32
    %275 = vector.broadcast %cst_55 : f32 to vector<8x128xf32>
    %276 = arith.addf %275, %274 : vector<8x128xf32>
    %277 = arith.divf %275, %276 : vector<8x128xf32>
    %278 = arith.mulf %220, %269 : vector<8x128xf32>
    %279 = arith.mulf %263, %271 : vector<8x128xf32>
    %280 = arith.addf %278, %279 : vector<8x128xf32>
    %281 = math.tanh %280 : vector<8x128xf32>
    %282 = arith.mulf %277, %281 : vector<8x128xf32>
    %283 = vector.extract_strided_slice %257 {offsets = [0, 0], sizes = [8, 128], strides = [1, 1]} : vector<8x512xf32> to vector<8x128xf32>
    %284 = arith.negf %283 : vector<8x128xf32>
    %285 = math.exp %284 : vector<8x128xf32>
    %cst_56 = arith.constant 1.000000e+00 : f32
    %286 = vector.broadcast %cst_56 : f32 to vector<8x128xf32>
    %287 = arith.addf %286, %285 : vector<8x128xf32>
    %288 = arith.divf %286, %287 : vector<8x128xf32>
    %289 = vector.extract_strided_slice %257 {offsets = [0, 128], sizes = [8, 128], strides = [1, 1]} : vector<8x512xf32> to vector<8x128xf32>
    %290 = arith.negf %289 : vector<8x128xf32>
    %291 = math.exp %290 : vector<8x128xf32>
    %cst_57 = arith.constant 1.000000e+00 : f32
    %292 = vector.broadcast %cst_57 : f32 to vector<8x128xf32>
    %293 = arith.addf %292, %291 : vector<8x128xf32>
    %294 = arith.divf %292, %293 : vector<8x128xf32>
    %295 = vector.extract_strided_slice %257 {offsets = [0, 256], sizes = [8, 128], strides = [1, 1]} : vector<8x512xf32> to vector<8x128xf32>
    %296 = math.tanh %295 : vector<8x128xf32>
    %297 = vector.extract_strided_slice %257 {offsets = [0, 384], sizes = [8, 128], strides = [1, 1]} : vector<8x512xf32> to vector<8x128xf32>
    %298 = arith.negf %297 : vector<8x128xf32>
    %299 = math.exp %298 : vector<8x128xf32>
    %cst_58 = arith.constant 1.000000e+00 : f32
    %300 = vector.broadcast %cst_58 : f32 to vector<8x128xf32>
    %301 = arith.addf %300, %299 : vector<8x128xf32>
    %302 = arith.divf %300, %301 : vector<8x128xf32>
    %303 = arith.mulf %245, %294 : vector<8x128xf32>
    %304 = arith.mulf %288, %296 : vector<8x128xf32>
    %305 = arith.addf %303, %304 : vector<8x128xf32>
    %306 = math.tanh %305 : vector<8x128xf32>
    %307 = arith.mulf %302, %306 : vector<8x128xf32>
    %c5_i32 = arith.constant 5 : i32
    %308 = arith.index_cast %c5_i32 : i32 to index
    %c0_59 = arith.constant 0 : index
    %c0_60 = arith.constant 0 : index
    %309 = vector.load %arg2[%308, %c0_59, %c0_60] : memref<8x16x512xbf16, #tpu.memory_space<vmem>>, vector<1x16x512xbf16>
    %310 = vector.shape_cast %309 : vector<1x16x512xbf16> to vector<16x512xbf16>
    %311 = arith.extf %310 : vector<16x512xbf16> to vector<16x512xf32>
    %312 = vector.extract_strided_slice %311 {offsets = [0, 0], sizes = [8, 512], strides = [1, 1]} : vector<16x512xf32> to vector<8x512xf32>
    %cst_61 = arith.constant dense<0.000000e+00> : vector<8x512xf32>
    %313 = tpu.matmul %282, %3, %cst_61 {dimension_numbers = #tpu.dot_dimension_numbers<[1], [0], [0], [1], [0, 0, 1, 1], [], []>} : vector<8x128xf32>, vector<128x512xf32>, vector<8x512xf32> -> vector<8x512xf32>
    %314 = arith.addf %312, %313 : vector<8x512xf32>
    %315 = vector.extract_strided_slice %311 {offsets = [8, 0], sizes = [8, 512], strides = [1, 1]} : vector<16x512xf32> to vector<8x512xf32>
    %cst_62 = arith.constant dense<0.000000e+00> : vector<8x512xf32>
    %316 = tpu.matmul %307, %3, %cst_62 {dimension_numbers = #tpu.dot_dimension_numbers<[1], [0], [0], [1], [0, 0, 1, 1], [], []>} : vector<8x128xf32>, vector<128x512xf32>, vector<8x512xf32> -> vector<8x512xf32>
    %317 = arith.addf %315, %316 : vector<8x512xf32>
    %318 = vector.extract_strided_slice %314 {offsets = [0, 0], sizes = [8, 128], strides = [1, 1]} : vector<8x512xf32> to vector<8x128xf32>
    %319 = arith.negf %318 : vector<8x128xf32>
    %320 = math.exp %319 : vector<8x128xf32>
    %cst_63 = arith.constant 1.000000e+00 : f32
    %321 = vector.broadcast %cst_63 : f32 to vector<8x128xf32>
    %322 = arith.addf %321, %320 : vector<8x128xf32>
    %323 = arith.divf %321, %322 : vector<8x128xf32>
    %324 = vector.extract_strided_slice %314 {offsets = [0, 128], sizes = [8, 128], strides = [1, 1]} : vector<8x512xf32> to vector<8x128xf32>
    %325 = arith.negf %324 : vector<8x128xf32>
    %326 = math.exp %325 : vector<8x128xf32>
    %cst_64 = arith.constant 1.000000e+00 : f32
    %327 = vector.broadcast %cst_64 : f32 to vector<8x128xf32>
    %328 = arith.addf %327, %326 : vector<8x128xf32>
    %329 = arith.divf %327, %328 : vector<8x128xf32>
    %330 = vector.extract_strided_slice %314 {offsets = [0, 256], sizes = [8, 128], strides = [1, 1]} : vector<8x512xf32> to vector<8x128xf32>
    %331 = math.tanh %330 : vector<8x128xf32>
    %332 = vector.extract_strided_slice %314 {offsets = [0, 384], sizes = [8, 128], strides = [1, 1]} : vector<8x512xf32> to vector<8x128xf32>
    %333 = arith.negf %332 : vector<8x128xf32>
    %334 = math.exp %333 : vector<8x128xf32>
    %cst_65 = arith.constant 1.000000e+00 : f32
    %335 = vector.broadcast %cst_65 : f32 to vector<8x128xf32>
    %336 = arith.addf %335, %334 : vector<8x128xf32>
    %337 = arith.divf %335, %336 : vector<8x128xf32>
    %338 = arith.mulf %280, %329 : vector<8x128xf32>
    %339 = arith.mulf %323, %331 : vector<8x128xf32>
    %340 = arith.addf %338, %339 : vector<8x128xf32>
    %341 = math.tanh %340 : vector<8x128xf32>
    %342 = arith.mulf %337, %341 : vector<8x128xf32>
    %343 = vector.extract_strided_slice %317 {offsets = [0, 0], sizes = [8, 128], strides = [1, 1]} : vector<8x512xf32> to vector<8x128xf32>
    %344 = arith.negf %343 : vector<8x128xf32>
    %345 = math.exp %344 : vector<8x128xf32>
    %cst_66 = arith.constant 1.000000e+00 : f32
    %346 = vector.broadcast %cst_66 : f32 to vector<8x128xf32>
    %347 = arith.addf %346, %345 : vector<8x128xf32>
    %348 = arith.divf %346, %347 : vector<8x128xf32>
    %349 = vector.extract_strided_slice %317 {offsets = [0, 128], sizes = [8, 128], strides = [1, 1]} : vector<8x512xf32> to vector<8x128xf32>
    %350 = arith.negf %349 : vector<8x128xf32>
    %351 = math.exp %350 : vector<8x128xf32>
    %cst_67 = arith.constant 1.000000e+00 : f32
    %352 = vector.broadcast %cst_67 : f32 to vector<8x128xf32>
    %353 = arith.addf %352, %351 : vector<8x128xf32>
    %354 = arith.divf %352, %353 : vector<8x128xf32>
    %355 = vector.extract_strided_slice %317 {offsets = [0, 256], sizes = [8, 128], strides = [1, 1]} : vector<8x512xf32> to vector<8x128xf32>
    %356 = math.tanh %355 : vector<8x128xf32>
    %357 = vector.extract_strided_slice %317 {offsets = [0, 384], sizes = [8, 128], strides = [1, 1]} : vector<8x512xf32> to vector<8x128xf32>
    %358 = arith.negf %357 : vector<8x128xf32>
    %359 = math.exp %358 : vector<8x128xf32>
    %cst_68 = arith.constant 1.000000e+00 : f32
    %360 = vector.broadcast %cst_68 : f32 to vector<8x128xf32>
    %361 = arith.addf %360, %359 : vector<8x128xf32>
    %362 = arith.divf %360, %361 : vector<8x128xf32>
    %363 = arith.mulf %305, %354 : vector<8x128xf32>
    %364 = arith.mulf %348, %356 : vector<8x128xf32>
    %365 = arith.addf %363, %364 : vector<8x128xf32>
    %366 = math.tanh %365 : vector<8x128xf32>
    %367 = arith.mulf %362, %366 : vector<8x128xf32>
    %c6_i32 = arith.constant 6 : i32
    %368 = arith.index_cast %c6_i32 : i32 to index
    %c0_69 = arith.constant 0 : index
    %c0_70 = arith.constant 0 : index
    %369 = vector.load %arg2[%368, %c0_69, %c0_70] : memref<8x16x512xbf16, #tpu.memory_space<vmem>>, vector<1x16x512xbf16>
    %370 = vector.shape_cast %369 : vector<1x16x512xbf16> to vector<16x512xbf16>
    %371 = arith.extf %370 : vector<16x512xbf16> to vector<16x512xf32>
    %372 = vector.extract_strided_slice %371 {offsets = [0, 0], sizes = [8, 512], strides = [1, 1]} : vector<16x512xf32> to vector<8x512xf32>
    %cst_71 = arith.constant dense<0.000000e+00> : vector<8x512xf32>
    %373 = tpu.matmul %342, %3, %cst_71 {dimension_numbers = #tpu.dot_dimension_numbers<[1], [0], [0], [1], [0, 0, 1, 1], [], []>} : vector<8x128xf32>, vector<128x512xf32>, vector<8x512xf32> -> vector<8x512xf32>
    %374 = arith.addf %372, %373 : vector<8x512xf32>
    %375 = vector.extract_strided_slice %371 {offsets = [8, 0], sizes = [8, 512], strides = [1, 1]} : vector<16x512xf32> to vector<8x512xf32>
    %cst_72 = arith.constant dense<0.000000e+00> : vector<8x512xf32>
    %376 = tpu.matmul %367, %3, %cst_72 {dimension_numbers = #tpu.dot_dimension_numbers<[1], [0], [0], [1], [0, 0, 1, 1], [], []>} : vector<8x128xf32>, vector<128x512xf32>, vector<8x512xf32> -> vector<8x512xf32>
    %377 = arith.addf %375, %376 : vector<8x512xf32>
    %378 = vector.extract_strided_slice %374 {offsets = [0, 0], sizes = [8, 128], strides = [1, 1]} : vector<8x512xf32> to vector<8x128xf32>
    %379 = arith.negf %378 : vector<8x128xf32>
    %380 = math.exp %379 : vector<8x128xf32>
    %cst_73 = arith.constant 1.000000e+00 : f32
    %381 = vector.broadcast %cst_73 : f32 to vector<8x128xf32>
    %382 = arith.addf %381, %380 : vector<8x128xf32>
    %383 = arith.divf %381, %382 : vector<8x128xf32>
    %384 = vector.extract_strided_slice %374 {offsets = [0, 128], sizes = [8, 128], strides = [1, 1]} : vector<8x512xf32> to vector<8x128xf32>
    %385 = arith.negf %384 : vector<8x128xf32>
    %386 = math.exp %385 : vector<8x128xf32>
    %cst_74 = arith.constant 1.000000e+00 : f32
    %387 = vector.broadcast %cst_74 : f32 to vector<8x128xf32>
    %388 = arith.addf %387, %386 : vector<8x128xf32>
    %389 = arith.divf %387, %388 : vector<8x128xf32>
    %390 = vector.extract_strided_slice %374 {offsets = [0, 256], sizes = [8, 128], strides = [1, 1]} : vector<8x512xf32> to vector<8x128xf32>
    %391 = math.tanh %390 : vector<8x128xf32>
    %392 = vector.extract_strided_slice %374 {offsets = [0, 384], sizes = [8, 128], strides = [1, 1]} : vector<8x512xf32> to vector<8x128xf32>
    %393 = arith.negf %392 : vector<8x128xf32>
    %394 = math.exp %393 : vector<8x128xf32>
    %cst_75 = arith.constant 1.000000e+00 : f32
    %395 = vector.broadcast %cst_75 : f32 to vector<8x128xf32>
    %396 = arith.addf %395, %394 : vector<8x128xf32>
    %397 = arith.divf %395, %396 : vector<8x128xf32>
    %398 = arith.mulf %340, %389 : vector<8x128xf32>
    %399 = arith.mulf %383, %391 : vector<8x128xf32>
    %400 = arith.addf %398, %399 : vector<8x128xf32>
    %401 = math.tanh %400 : vector<8x128xf32>
    %402 = arith.mulf %397, %401 : vector<8x128xf32>
    %403 = vector.extract_strided_slice %377 {offsets = [0, 0], sizes = [8, 128], strides = [1, 1]} : vector<8x512xf32> to vector<8x128xf32>
    %404 = arith.negf %403 : vector<8x128xf32>
    %405 = math.exp %404 : vector<8x128xf32>
    %cst_76 = arith.constant 1.000000e+00 : f32
    %406 = vector.broadcast %cst_76 : f32 to vector<8x128xf32>
    %407 = arith.addf %406, %405 : vector<8x128xf32>
    %408 = arith.divf %406, %407 : vector<8x128xf32>
    %409 = vector.extract_strided_slice %377 {offsets = [0, 128], sizes = [8, 128], strides = [1, 1]} : vector<8x512xf32> to vector<8x128xf32>
    %410 = arith.negf %409 : vector<8x128xf32>
    %411 = math.exp %410 : vector<8x128xf32>
    %cst_77 = arith.constant 1.000000e+00 : f32
    %412 = vector.broadcast %cst_77 : f32 to vector<8x128xf32>
    %413 = arith.addf %412, %411 : vector<8x128xf32>
    %414 = arith.divf %412, %413 : vector<8x128xf32>
    %415 = vector.extract_strided_slice %377 {offsets = [0, 256], sizes = [8, 128], strides = [1, 1]} : vector<8x512xf32> to vector<8x128xf32>
    %416 = math.tanh %415 : vector<8x128xf32>
    %417 = vector.extract_strided_slice %377 {offsets = [0, 384], sizes = [8, 128], strides = [1, 1]} : vector<8x512xf32> to vector<8x128xf32>
    %418 = arith.negf %417 : vector<8x128xf32>
    %419 = math.exp %418 : vector<8x128xf32>
    %cst_78 = arith.constant 1.000000e+00 : f32
    %420 = vector.broadcast %cst_78 : f32 to vector<8x128xf32>
    %421 = arith.addf %420, %419 : vector<8x128xf32>
    %422 = arith.divf %420, %421 : vector<8x128xf32>
    %423 = arith.mulf %365, %414 : vector<8x128xf32>
    %424 = arith.mulf %408, %416 : vector<8x128xf32>
    %425 = arith.addf %423, %424 : vector<8x128xf32>
    %426 = math.tanh %425 : vector<8x128xf32>
    %427 = arith.mulf %422, %426 : vector<8x128xf32>
    %c7_i32 = arith.constant 7 : i32
    %428 = arith.index_cast %c7_i32 : i32 to index
    %c0_79 = arith.constant 0 : index
    %c0_80 = arith.constant 0 : index
    %429 = vector.load %arg2[%428, %c0_79, %c0_80] : memref<8x16x512xbf16, #tpu.memory_space<vmem>>, vector<1x16x512xbf16>
    %430 = vector.shape_cast %429 : vector<1x16x512xbf16> to vector<16x512xbf16>
    %431 = arith.extf %430 : vector<16x512xbf16> to vector<16x512xf32>
    %432 = vector.extract_strided_slice %431 {offsets = [0, 0], sizes = [8, 512], strides = [1, 1]} : vector<16x512xf32> to vector<8x512xf32>
    %cst_81 = arith.constant dense<0.000000e+00> : vector<8x512xf32>
    %433 = tpu.matmul %402, %3, %cst_81 {dimension_numbers = #tpu.dot_dimension_numbers<[1], [0], [0], [1], [0, 0, 1, 1], [], []>} : vector<8x128xf32>, vector<128x512xf32>, vector<8x512xf32> -> vector<8x512xf32>
    %434 = arith.addf %432, %433 : vector<8x512xf32>
    %435 = vector.extract_strided_slice %431 {offsets = [8, 0], sizes = [8, 512], strides = [1, 1]} : vector<16x512xf32> to vector<8x512xf32>
    %cst_82 = arith.constant dense<0.000000e+00> : vector<8x512xf32>
    %436 = tpu.matmul %427, %3, %cst_82 {dimension_numbers = #tpu.dot_dimension_numbers<[1], [0], [0], [1], [0, 0, 1, 1], [], []>} : vector<8x128xf32>, vector<128x512xf32>, vector<8x512xf32> -> vector<8x512xf32>
    %437 = arith.addf %435, %436 : vector<8x512xf32>
    %438 = vector.extract_strided_slice %434 {offsets = [0, 0], sizes = [8, 128], strides = [1, 1]} : vector<8x512xf32> to vector<8x128xf32>
    %439 = arith.negf %438 : vector<8x128xf32>
    %440 = math.exp %439 : vector<8x128xf32>
    %cst_83 = arith.constant 1.000000e+00 : f32
    %441 = vector.broadcast %cst_83 : f32 to vector<8x128xf32>
    %442 = arith.addf %441, %440 : vector<8x128xf32>
    %443 = arith.divf %441, %442 : vector<8x128xf32>
    %444 = vector.extract_strided_slice %434 {offsets = [0, 128], sizes = [8, 128], strides = [1, 1]} : vector<8x512xf32> to vector<8x128xf32>
    %445 = arith.negf %444 : vector<8x128xf32>
    %446 = math.exp %445 : vector<8x128xf32>
    %cst_84 = arith.constant 1.000000e+00 : f32
    %447 = vector.broadcast %cst_84 : f32 to vector<8x128xf32>
    %448 = arith.addf %447, %446 : vector<8x128xf32>
    %449 = arith.divf %447, %448 : vector<8x128xf32>
    %450 = vector.extract_strided_slice %434 {offsets = [0, 256], sizes = [8, 128], strides = [1, 1]} : vector<8x512xf32> to vector<8x128xf32>
    %451 = math.tanh %450 : vector<8x128xf32>
    %452 = vector.extract_strided_slice %434 {offsets = [0, 384], sizes = [8, 128], strides = [1, 1]} : vector<8x512xf32> to vector<8x128xf32>
    %453 = arith.negf %452 : vector<8x128xf32>
    %454 = math.exp %453 : vector<8x128xf32>
    %cst_85 = arith.constant 1.000000e+00 : f32
    %455 = vector.broadcast %cst_85 : f32 to vector<8x128xf32>
    %456 = arith.addf %455, %454 : vector<8x128xf32>
    %457 = arith.divf %455, %456 : vector<8x128xf32>
    %458 = arith.mulf %400, %449 : vector<8x128xf32>
    %459 = arith.mulf %443, %451 : vector<8x128xf32>
    %460 = arith.addf %458, %459 : vector<8x128xf32>
    %461 = math.tanh %460 : vector<8x128xf32>
    %462 = arith.mulf %457, %461 : vector<8x128xf32>
    %463 = vector.extract_strided_slice %437 {offsets = [0, 0], sizes = [8, 128], strides = [1, 1]} : vector<8x512xf32> to vector<8x128xf32>
    %464 = arith.negf %463 : vector<8x128xf32>
    %465 = math.exp %464 : vector<8x128xf32>
    %cst_86 = arith.constant 1.000000e+00 : f32
    %466 = vector.broadcast %cst_86 : f32 to vector<8x128xf32>
    %467 = arith.addf %466, %465 : vector<8x128xf32>
    %468 = arith.divf %466, %467 : vector<8x128xf32>
    %469 = vector.extract_strided_slice %437 {offsets = [0, 128], sizes = [8, 128], strides = [1, 1]} : vector<8x512xf32> to vector<8x128xf32>
    %470 = arith.negf %469 : vector<8x128xf32>
    %471 = math.exp %470 : vector<8x128xf32>
    %cst_87 = arith.constant 1.000000e+00 : f32
    %472 = vector.broadcast %cst_87 : f32 to vector<8x128xf32>
    %473 = arith.addf %472, %471 : vector<8x128xf32>
    %474 = arith.divf %472, %473 : vector<8x128xf32>
    %475 = vector.extract_strided_slice %437 {offsets = [0, 256], sizes = [8, 128], strides = [1, 1]} : vector<8x512xf32> to vector<8x128xf32>
    %476 = math.tanh %475 : vector<8x128xf32>
    %477 = vector.extract_strided_slice %437 {offsets = [0, 384], sizes = [8, 128], strides = [1, 1]} : vector<8x512xf32> to vector<8x128xf32>
    %478 = arith.negf %477 : vector<8x128xf32>
    %479 = math.exp %478 : vector<8x128xf32>
    %cst_88 = arith.constant 1.000000e+00 : f32
    %480 = vector.broadcast %cst_88 : f32 to vector<8x128xf32>
    %481 = arith.addf %480, %479 : vector<8x128xf32>
    %482 = arith.divf %480, %481 : vector<8x128xf32>
    %483 = arith.mulf %425, %474 : vector<8x128xf32>
    %484 = arith.mulf %468, %476 : vector<8x128xf32>
    %485 = arith.addf %483, %484 : vector<8x128xf32>
    %486 = math.tanh %485 : vector<8x128xf32>
    %487 = arith.mulf %482, %486 : vector<8x128xf32>
    %c8_i32 = arith.constant 8 : i32
    %c0_89 = arith.constant 0 : index
    %c0_90 = arith.constant 0 : index
    %488 = vector.load %arg5[%c0_89, %c0_90] : memref<16x128xf32, #tpu.memory_space<vmem>>, vector<8x128xf32>
    tpu.vector_store %arg5[%c0_89, %c0_90], %462 {strides = array<i32>} : memref<16x128xf32, #tpu.memory_space<vmem>>, vector<8x128xf32>,
    %c0_91 = arith.constant 0 : index
    %c0_92 = arith.constant 0 : index
    %489 = vector.load %arg6[%c0_91, %c0_92] : memref<16x128xf32, #tpu.memory_space<vmem>>, vector<8x128xf32>
    tpu.vector_store %arg6[%c0_91, %c0_92], %460 {strides = array<i32>} : memref<16x128xf32, #tpu.memory_space<vmem>>, vector<8x128xf32>,
    %c8_93 = arith.constant 8 : index
    %c0_94 = arith.constant 0 : index
    %490 = vector.load %arg5[%c8_93, %c0_94] : memref<16x128xf32, #tpu.memory_space<vmem>>, vector<8x128xf32>
    tpu.vector_store %arg5[%c8_93, %c0_94], %487 {strides = array<i32>} : memref<16x128xf32, #tpu.memory_space<vmem>>, vector<8x128xf32>,
    %c8_95 = arith.constant 8 : index
    %c0_96 = arith.constant 0 : index
    %491 = vector.load %arg6[%c8_95, %c0_96] : memref<16x128xf32, #tpu.memory_space<vmem>>, vector<8x128xf32>
    tpu.vector_store %arg6[%c8_95, %c0_96], %485 {strides = array<i32>} : memref<16x128xf32, #tpu.memory_space<vmem>>, vector<8x128xf32>,
    %c0_i32_97 = arith.constant 0 : i32
    %492 = arith.cmpi eq, %arg1, %c0_i32_97 : i32
    %493 = arith.extui %492 : i1 to i32
    %c0_i32_98 = arith.constant 0 : i32
    %494 = arith.cmpi ne, %493, %c0_i32_98 : i32
    scf.if %494 {
      %c0_99 = arith.constant 0 : index
      %c0_100 = arith.constant 0 : index
      %495 = vector.load %arg5[%c0_99, %c0_100] : memref<16x128xf32, #tpu.memory_space<vmem>>, vector<16x128xf32>
      %c0_101 = arith.constant 0 : index
      %c0_102 = arith.constant 0 : index
      %496 = vector.load %arg4[%c0_101, %c0_102] : memref<16x128xf32, #tpu.memory_space<vmem>>, vector<16x128xf32>
      tpu.vector_store %arg4[%c0_101, %c0_102], %495 {strides = array<i32>} : memref<16x128xf32, #tpu.memory_space<vmem>>, vector<16x128xf32>,
    } else {
    }
    return
  }
  func.func @transform_0(%arg0: i32, %arg1: i32) -> (i32, i32, i32) {
    %c0_i32 = arith.constant 0 : i32
    %c0_i32_0 = arith.constant 0 : i32
    return %arg1, %arg0, %c0_i32 : i32, i32, i32
  }
  func.func @transform_1(%arg0: i32, %arg1: i32) -> (i32, i32) {
    %c0_i32 = arith.constant 0 : i32
    %c0_i32_0 = arith.constant 0 : i32
    %c0_i32_1 = arith.constant 0 : i32
    return %c0_i32, %c0_i32_0 : i32, i32
  }
  func.func @transform_2(%arg0: i32, %arg1: i32) -> (i32, i32) {
    %c0_i32 = arith.constant 0 : i32
    %c0_i32_0 = arith.constant 0 : i32
    return %arg0, %c0_i32 : i32, i32
  }
}

</mosaic_0001>

<bundles_post_ra>
// kernel: tpu_custom_call.1
= control target key start
LH: loop header
LB: loop body
LE: loop exit
PB: predicated region body
PF: predicated region fallthrough
CT: control target
= control target key end

     0   :  { %7 = vsyncpa [#allocation5], 0  ;;  %s5010_s0 = inlined_call_operand.hbm [shape: bf16[8,16,512], index: 0, kind: input, shape index: {}]   ;;  %s5011_s1 = inlined_call_operand.hbm [shape: f32[128,512], index: 1, kind: input, shape index: {}]   ;;  %s5012_s2 = inlined_call_operand.hbm [shape: f32[16,128], index: 2, kind: output, shape index: {}]  }
   0x1   :  { %8 = vsyncpa [#allocation8], 0 }
   0x2   :  { %9 = vsyncpa [#allocation6], 0  ;;  %s3492_s9 = smov [#allocation4]  }
   0x3   :  { %s15_s10 = sshll.u32 %s3492_s9, 4  ;;  %s16_s10 = int_to_ptr.vmem [resolvable:$true] %s15_s10 }
   0x4   :  { %s3434_s11 = scalar_lea.vmem %s16_s10, 4096  ;;  %p3439_p1 = scmp.lt.s32.totalorder %s16_s10, %s16_s10 }
   0x5   :  { %p3435_p0 = scmp.ne.s32.totalorder %s16_s10, %s3434_s11  ;;  %p3440_p2 = scmp.lt.s32.totalorder %s3434_s11, %s3434_s11 }
   0x7   :  { %p3441_p3 = por %p3440_p2, %p3439_p1 }
   0x9   :  { %p3442_p4 = pnand %p3441_p3, %p3435_p0 }
   0xb   :  { %3445 = shalt.err (!%p3442_p4)
}
   0xc   :  { %s3493_s12 = smov 256   ;;  %s3494_s13 = smov 16  }
   0xd   :  { %21 = dma.hbm_to_vmem [thread:$0]  %s5010_s0, 4096, %s16_s10, [#allocation5], %s3493_s12, %s3493_s12, %s3494_s13  }
   0xe   :  { %s3495_s16 = smov [#allocation7]  }
   0xf   :  { %s27_s17 = sshll.u32 %s3495_s16, 4  ;;  %s28_s17 = int_to_ptr.vmem [resolvable:$true] %s27_s17 }
  0x10   :  { %s3454_s18 = scalar_lea.vmem %s28_s17, 8192  ;;  %p3459_p6 = scmp.lt.s32.totalorder %s28_s17, %s28_s17 }
  0x11   :  { %p3455_p5 = scmp.ne.s32.totalorder %s28_s17, %s3454_s18  ;;  %p3460_p7 = scmp.lt.s32.totalorder %s3454_s18, %s3454_s18 }
  0x13   :  { %p3461_p8 = por %p3460_p7, %p3459_p6 }
  0x15   :  { %p3462_p9 = pnand %p3461_p8, %p3455_p5 }
  0x17   :  { %3465 = shalt.err (!%p3462_p9)
}
  0x18   :  { %s3496_s19 = smov 512   ;;  %s3497_s20 = smov 32  }
  0x19   :  { %33 = dma.hbm_to_vmem [thread:$0]  %s5011_s1, 8192, %s28_s17, [#allocation8], %s3496_s19, %s3496_s19, %s3497_s20  }
  0x1a   :  { %3486 = dma.done.wait [#allocation5], 4096  }
  0x1b   :  { %3487 = vsyncadd [#allocation5], 4294963200 }
  0x1c   :  { %3488 = dma.done.wait [#allocation8], 8192  }
  0x1d   :  { %3489 = vsyncadd [#allocation8], 4294959104  ;;  %v5017_v0 = vmov 0.0   ;;  %v3525_v1 = vld [vmem:[#allocation7 + $0x1e8] sm:$0xff]  ;;  %v3527_v2 = vld [vmem:[#allocation7 + $0x1e0] sm:$0xff]  ;;  %s3499_s0 = smov [#allocation9]  }
  0x1e   :  { %192 = vmatprep.mubr.f32.mxu0 %v5017_v0  ;;  %263 = vmatprep.mubr.f32.mxu1 %v5017_v0  ;;  %5180 = vst [vmem:[#allocation13_spill] sm:$0xff] %v3525_v1  ;;  %v3529_v3 = vld [vmem:[#allocation7 + $0x1c8] sm:$0xff]  ;;  %v3532_v4 = vld [vmem:[#allocation7 + $0x1c0] sm:$0xff]  ;;  %v3546_v9 = vld [vmem:[#allocation7 + $0x1f8] sm:$0xff]  ;;  %s2955_s1 = sshll.u32 %s3499_s0, 4  ;;  %s2956_s1 = int_to_ptr.vmem [resolvable:$true] %s2955_s1 }
  0x1f   :  { %128 = vmatprep.subr.mxu0 %v3525_v1  ;;  %v3535_v5 = vld [vmem:[#allocation7 + $0x1a8] sm:$0xff]  ;;  %v3538_v6 = vld [vmem:[#allocation7 + $0x1a0] sm:$0xff]  ;;  %5181 = vst [vmem:[#allocation14_spill] sm:$0xff] %v3546_v9  ;;  %199 = vmatprep.subr.mxu1 %v3546_v9  ;;  %v3552_v11 = vld [vmem:[#allocation7 + $0x1f0] sm:$0xff]  ;;  %s3466_s23 = scalar_lea.vmem %s2956_s1, 256  ;;  %p3471_p11 = scmp.lt.s32.totalorder %s2956_s1, %s2956_s1 }
  0x20   :  { %129 = vmatpush1.msra.mxu0 %v3527_v2  ;;  %v3541_v7 = vld [vmem:[#allocation7 + $0x188] sm:$0xff]  ;;  %v3544_v8 = vld [vmem:[#allocation7 + $0x180] sm:$0xff]  ;;  %200 = vmatpush1.msra.mxu1 %v3552_v11  ;;  %v3558_v13 = vld [vmem:[#allocation7 + $0x1d8] sm:$0xff]  ;;  %p3467_p10 = scmp.ne.s32.totalorder %s2956_s1, %s3466_s23  ;;  %p3472_p12 = scmp.lt.s32.totalorder %s3466_s23, %s3466_s23 }
  0x21   :  { %130 = vmatprep.subr.mxu0 %v3529_v3  ;;  %v3549_v10 = vld [vmem:[#allocation7 + $0x168] sm:$0xff]  ;;  %v3555_v12 = vld [vmem:[#allocation7 + $0x160] sm:$0xff]  ;;  %v3560_v14 = vld [vmem:[#allocation7 + $0x1d0] sm:$0xff]  ;;  %201 = vmatprep.subr.mxu1 %v3558_v13 }
  0x22   :  { %131 = vmatpush1.msra.mxu0 %v3532_v4  ;;  %v3563_v15 = vld [vmem:[#allocation7 + $0x148] sm:$0xff]  ;;  %v3566_v16 = vld [vmem:[#allocation7 + $0x1b8] sm:$0xff]  ;;  %v3569_v17 = vld [vmem:[#allocation7 + $0x140] sm:$0xff]  ;;  %202 = vmatpush1.msra.mxu1 %v3560_v14  ;;  %p3473_p13 = por %p3472_p12, %p3471_p11 }
  0x23   :  { %132 = vmatprep.subr.mxu0 %v3535_v5  ;;  %v3572_v18 = vld [vmem:[#allocation7 + $0x1b0] sm:$0xff]  ;;  %v3574_v19 = vld [vmem:[#allocation7 + $0x198] sm:$0xff]  ;;  %v3577_v20 = vld [vmem:[#allocation7 + $0x128] sm:$0xff]  ;;  %203 = vmatprep.subr.mxu1 %v3566_v16 }
  0x24   :  { %133 = vmatpush1.msra.mxu0 %v3538_v6  ;;  %v3580_v21 = vld [vmem:[#allocation7 + $0x190] sm:$0xff]  ;;  %v3583_v22 = vld [vmem:[#allocation7 + $0x120] sm:$0xff]  ;;  %204 = vmatpush1.msra.mxu1 %v3572_v18  ;;  %v3586_v23 = vld [vmem:[#allocation7 + $0x178] sm:$0xff]  ;;  %p3474_p0 = pnand %p3473_p13, %p3467_p10 }
  0x25   :  { %134 = vmatprep.subr.mxu0 %v3541_v7  ;;  %v3589_v24 = vld [vmem:[#allocation7 + $0x108] sm:$0xff]  ;;  %205 = vmatprep.subr.mxu1 %v3574_v19  ;;  %v3592_v25 = vld [vmem:[#allocation7 + $0x170] sm:$0xff]  ;;  %v3595_v26 = vld [vmem:[#allocation7 + $0x100] sm:$0xff] }
  0x26   :  { %135 = vmatpush1.msra.mxu0 %v3544_v8  ;;  %206 = vmatpush1.msra.mxu1 %v3580_v21  ;;  %v3598_v27 = vld [vmem:[#allocation7 + $0x158] sm:$0xff]  ;;  %v3601_v28 = vld [vmem:[#allocation7 + $0xe8] sm:$0xff]  ;;  %v3604_v29 = vld [vmem:[#allocation7 + $0x150] sm:$0xff] }
  0x27   :  { %136 = vmatprep.subr.mxu0 %v3549_v10  ;;  %207 = vmatprep.subr.mxu1 %v3586_v23  ;;  %v3607_v30 = vld [vmem:[#allocation7 + $0xe0] sm:$0xff]  ;;  %v3610_v31 = vld [vmem:[#allocation7 + $0x138] sm:$0xff]  ;;  %v3613_v32 = vld [vmem:[#allocation7 + $0xc8] sm:$0xff] }
  0x28   :  { %137 = vmatpush1.msra.mxu0 %v3555_v12  ;;  %208 = vmatpush1.msra.mxu1 %v3592_v25  ;;  %v3616_v33 = vld [vmem:[#allocation7 + $0x130] sm:$0xff]  ;;  %v3619_v34 = vld [vmem:[#allocation7 + $0xc0] sm:$0xff]  ;;  %v3622_v35 = vld [vmem:[#allocation7 + $0x118] sm:$0xff] }
  0x29   :  { %138 = vmatprep.subr.mxu0 %v3563_v15  ;;  %209 = vmatprep.subr.mxu1 %v3598_v27  ;;  %v3625_v36 = vld [vmem:[#allocation7 + $0xa8] sm:$0xff]  ;;  %v3628_v37 = vld [vmem:[#allocation7 + $0x110] sm:$0xff]  ;;  %v3631_v38 = vld [vmem:[#allocation7 + $0xa0] sm:$0xff] }
  0x2a   :  { %139 = vmatpush1.msra.mxu0 %v3569_v17  ;;  %210 = vmatpush1.msra.mxu1 %v3604_v29  ;;  %v3634_v39 = vld [vmem:[#allocation7 + $0xf8] sm:$0xff]  ;;  %v3637_v40 = vld [vmem:[#allocation7 + $0x88] sm:$0xff]  ;;  %v3640_v41 = vld [vmem:[#allocation7 + $0xf0] sm:$0xff] }
  0x2b   :  { %140 = vmatprep.subr.mxu0 %v3577_v20  ;;  %211 = vmatprep.subr.mxu1 %v3610_v31  ;;  %v3643_v42 = vld [vmem:[#allocation7 + $0x80] sm:$0xff]  ;;  %v3646_v43 = vld [vmem:[#allocation7 + $0xd8] sm:$0xff]  ;;  %v3649_v44 = vld [vmem:[#allocation7 + $0x68] sm:$0xff] }
  0x2c   :  { %141 = vmatpush1.msra.mxu0 %v3583_v22  ;;  %212 = vmatpush1.msra.mxu1 %v3616_v33  ;;  %5182 = vst [vmem:[#allocation15_spill] sm:$0xff] %v3643_v42  ;;  %5183 = vst [vmem:[#allocation16_spill] sm:$0xff] %v3649_v44  ;;  %v3652_v45 = vld [vmem:[#allocation7 + $0xd0] sm:$0xff]  ;;  %v3655_v46 = vld [vmem:[#allocation7 + $0x60] sm:$0xff] }
  0x2d   :  { %142 = vmatprep.subr.mxu0 %v3589_v24  ;;  %213 = vmatprep.subr.mxu1 %v3622_v35  ;;  %5184 = vst [vmem:[#allocation17_spill] sm:$0xff] %v3655_v46  ;;  %v3658_v47 = vld [vmem:[#allocation7 + $0xb8] sm:$0xff]  ;;  %v3661_v48 = vld [vmem:[#allocation7 + $0x48] sm:$0xff]  ;;  %v3664_v49 = vld [vmem:[#allocation7 + $0xb0] sm:$0xff] }
  0x2e   :  { %143 = vmatpush1.msra.mxu0 %v3595_v26  ;;  %214 = vmatpush1.msra.mxu1 %v3628_v37  ;;  %5185 = vst [vmem:[#allocation18_spill] sm:$0xff] %v3661_v48  ;;  %v3667_v50 = vld [vmem:[#allocation7 + $0x40] sm:$0xff]  ;;  %v3670_v51 = vld [vmem:[#allocation7 + $0x98] sm:$0xff]  ;;  %v3673_v52 = vld [vmem:[#allocation7 + $0x28] sm:$0xff] }
  0x2f   :  { %144 = vmatprep.subr.mxu0 %v3601_v28  ;;  %215 = vmatprep.subr.mxu1 %v3634_v39  ;;  %5186 = vst [vmem:[#allocation19_spill] sm:$0xff] %v3667_v50  ;;  %5187 = vst [vmem:[#allocation20_spill] sm:$0xff] %v3673_v52  ;;  %v3676_v53 = vld [vmem:[#allocation7 + $0x90] sm:$0xff]  ;;  %v3679_v54 = vld [vmem:[#allocation7 + $0x20] sm:$0xff] }
  0x30   :  { %145 = vmatpush1.msra.mxu0 %v3607_v30  ;;  %216 = vmatpush1.msra.mxu1 %v3640_v41  ;;  %5188 = vst [vmem:[#allocation21_spill] sm:$0xff] %v3676_v53  ;;  %5189 = vst [vmem:[#allocation22_spill] sm:$0xff] %v3679_v54  ;;  %v3682_v55 = vld [vmem:[#allocation7 + $0x78] sm:$0xff]  ;;  %v3685_v56 = vld [vmem:[#allocation7 + $0x8] sm:$0xff] }
  0x31   :  { %146 = vmatprep.subr.mxu0 %v3613_v32  ;;  %217 = vmatprep.subr.mxu1 %v3646_v43  ;;  %5190 = vst [vmem:[#allocation23_spill] sm:$0xff] %v3682_v55  ;;  %5191 = vst [vmem:[#allocation24_spill] sm:$0xff] %v3685_v56  ;;  %v3688_v57 = vld [vmem:[#allocation7 + $0x70] sm:$0xff]  ;;  %v3691_v58 = vld [vmem:[#allocation7] sm:$0xff] }
  0x32   :  { %147 = vmatpush1.msra.mxu0 %v3619_v34  ;;  %218 = vmatpush1.msra.mxu1 %v3652_v45  ;;  %5192 = vst [vmem:[#allocation25_spill] sm:$0xff] %v3688_v57  ;;  %5193 = vst [vmem:[#allocation26_spill] sm:$0xff] %v3691_v58  ;;  %v3694_v59 = vld [vmem:[#allocation7 + $0x58] sm:$0xff]  ;;  %v3700_v60 = vld [vmem:[#allocation7 + $0x50] sm:$0xff] }
  0x33   :  { %148 = vmatprep.subr.mxu0 %v3625_v36  ;;  %219 = vmatprep.subr.mxu1 %v3658_v47  ;;  %5194 = vst [vmem:[#allocation27_spill] sm:$0xff] %v3694_v59  ;;  %5195 = vst [vmem:[#allocation28_spill] sm:$0xff] %v3700_v60  ;;  %v3704_v61 = vld [vmem:[#allocation7 + $0x38] sm:$0xff]  ;;  %v3708_v62 = vld [vmem:[#allocation7 + $0x30] sm:$0xff] }
  0x34   :  { %149 = vmatpush1.msra.mxu0 %v3631_v38  ;;  %220 = vmatpush1.msra.mxu1 %v3664_v49  ;;  %5196 = vst [vmem:[#allocation29_spill] sm:$0xff] %v3704_v61  ;;  %5197 = vst [vmem:[#allocation30_spill] sm:$0xff] %v3708_v62  ;;  %v3712_v63 = vld [vmem:[#allocation7 + $0x18] sm:$0xff] }
  0x35   :  { %150 = vmatprep.subr.mxu0 %v3637_v40  ;;  %221 = vmatprep.subr.mxu1 %v3670_v51  ;;  %5198 = vst [vmem:[#allocation31_spill] sm:$0xff] %v3712_v63 }
  0x36   :  { %151 = vmatpush1.msra.mxu0 %v3643_v42  ;;  %222 = vmatpush1.msra.mxu1 %v3676_v53 }
  0x37   :  { %152 = vmatprep.subr.mxu0 %v3649_v44  ;;  %223 = vmatprep.subr.mxu1 %v3682_v55 }
  0x38   :  { %153 = vmatpush1.msra.mxu0 %v3655_v46  ;;  %224 = vmatpush1.msra.mxu1 %v3688_v57  ;;  %v3716_v57 = vld [vmem:[#allocation7 + $0x10] sm:$0xff] }
  0x39   :  { %154 = vmatprep.subr.mxu0 %v3661_v48  ;;  %225 = vmatprep.subr.mxu1 %v3694_v59  ;;  %5199 = vst [vmem:[#allocation32_spill] sm:$0xff] %v3716_v57 }
  0x3a   :  { %155 = vmatpush1.msra.mxu0 %v3667_v50  ;;  %226 = vmatpush1.msra.mxu1 %v3700_v60 }
  0x3b   :  { %156 = vmatprep.subr.mxu0 %v3673_v52  ;;  %227 = vmatprep.subr.mxu1 %v3704_v61 }
  0x3c   :  { %157 = vmatpush1.msra.mxu0 %v3679_v54  ;;  %228 = vmatpush1.msra.mxu1 %v3708_v62 }
  0x3d   :  { %158 = vmatprep.subr.mxu0 %v3685_v56  ;;  %229 = vmatprep.subr.mxu1 %v3712_v63 }
  0x3e   :  { %159 = vmatpush1.msra.mxu0 %v3691_v58  ;;  %230 = vmatpush1.msra.mxu1 %v3716_v57 }
  0x3f   :  { %193 = vmatmul.mubr.f32.vlgmr.msra.gmra.mxu0 %v5017_v0  ;;  %274 = vmatprep.subr.mxu0 %v3525_v1 }
  0x40   :  { %275 = vmatpush1.msra.mxu0 %v3527_v2  ;;  %345 = vmatprep.subr.mxu1 %v3546_v9 }
  0x41   :  { %276 = vmatprep.subr.mxu0 %v3529_v3  ;;  %264 = vmatmul.mubr.f32.vlgmr.msra.gmra.mxu1 %v5017_v0 }
  0x42   :  { %277 = vmatpush1.msra.mxu0 %v3532_v4  ;;  %346 = vmatpush1.msra.mxu1 %v3552_v11 }
  0x43   :  { %278 = vmatprep.subr.mxu0 %v3535_v5  ;;  %347 = vmatprep.subr.mxu1 %v3558_v13 }
  0x44   :  { %279 = vmatpush1.msra.mxu0 %v3538_v6  ;;  %348 = vmatpush1.msra.mxu1 %v3560_v14 }
  0x45   :  { %280 = vmatprep.subr.mxu0 %v3541_v7  ;;  %349 = vmatprep.subr.mxu1 %v3566_v16 }
  0x46   :  { %281 = vmatpush1.msra.mxu0 %v3544_v8  ;;  %350 = vmatpush1.msra.mxu1 %v3572_v18 }
  0x47   :  { %282 = vmatprep.subr.mxu0 %v3549_v10  ;;  %351 = vmatprep.subr.mxu1 %v3574_v19 }
  0x48   :  { %283 = vmatpush1.msra.mxu0 %v3555_v12  ;;  %352 = vmatpush1.msra.mxu1 %v3580_v21 }
  0x49   :  { %284 = vmatprep.subr.mxu0 %v3563_v15  ;;  %353 = vmatprep.subr.mxu1 %v3586_v23 }
  0x4a   :  { %285 = vmatpush1.msra.mxu0 %v3569_v17  ;;  %354 = vmatpush1.msra.mxu1 %v3592_v25 }
  0x4b   :  { %286 = vmatprep.subr.mxu0 %v3577_v20  ;;  %355 = vmatprep.subr.mxu1 %v3598_v27 }
  0x4c   :  { %287 = vmatpush1.msra.mxu0 %v3583_v22  ;;  %356 = vmatpush1.msra.mxu1 %v3604_v29 }
  0x4d   :  { %288 = vmatprep.subr.mxu0 %v3589_v24  ;;  %357 = vmatprep.subr.mxu1 %v3610_v31 }
  0x4e   :  { %289 = vmatpush1.msra.mxu0 %v3595_v26  ;;  %358 = vmatpush1.msra.mxu1 %v3616_v33 }
  0x4f   :  { %290 = vmatprep.subr.mxu0 %v3601_v28  ;;  %359 = vmatprep.subr.mxu1 %v3622_v35 }
  0x50   :  { %291 = vmatpush1.msra.mxu0 %v3607_v30  ;;  %338 = vmatprep.mubr.f32.mxu0 %v5017_v0 }
  0x51   :  { %292 = vmatprep.subr.mxu0 %v3613_v32  ;;  %360 = vmatpush1.msra.mxu1 %v3628_v37 }
  0x52   :  { %293 = vmatpush1.msra.mxu0 %v3619_v34  ;;  %361 = vmatprep.subr.mxu1 %v3634_v39 }
  0x53   :  { %294 = vmatprep.subr.mxu0 %v3625_v36  ;;  %362 = vmatpush1.msra.mxu1 %v3640_v41 }
  0x54   :  { %295 = vmatpush1.msra.mxu0 %v3631_v38  ;;  %363 = vmatprep.subr.mxu1 %v3646_v43 }
  0x55   :  { %296 = vmatprep.subr.mxu0 %v3637_v40  ;;  %364 = vmatpush1.msra.mxu1 %v3652_v45 }
  0x56   :  { %297 = vmatpush1.msra.mxu0 %v3643_v42  ;;  %365 = vmatprep.subr.mxu1 %v3658_v47 }
  0x57   :  { %298 = vmatprep.subr.mxu0 %v3649_v44  ;;  %366 = vmatpush1.msra.mxu1 %v3664_v49 }
  0x58   :  { %299 = vmatpush1.msra.mxu0 %v3655_v46  ;;  %367 = vmatprep.subr.mxu1 %v3670_v51 }
  0x59   :  { %300 = vmatprep.subr.mxu0 %v3661_v48  ;;  %368 = vmatpush1.msra.mxu1 %v3676_v53 }
  0x5a   :  { %301 = vmatpush1.msra.mxu0 %v3667_v50  ;;  %369 = vmatprep.subr.mxu1 %v3682_v55  ;;  %v5200_v50 = vld [vmem:[#allocation25_spill] sm:$0xff] }
  0x5b   :  { %302 = vmatprep.subr.mxu0 %v3673_v52  ;;  %370 = vmatpush1.msra.mxu1 %v5200_v50 }
  0x5c   :  { %303 = vmatpush1.msra.mxu0 %v3679_v54  ;;  %409 = vmatprep.mubr.f32.mxu1 %v5017_v0 }
  0x5d   :  { %304 = vmatprep.subr.mxu0 %v3685_v56  ;;  %371 = vmatprep.subr.mxu1 %v3694_v59 }
  0x5e   :  { %305 = vmatpush1.msra.mxu0 %v3691_v58  ;;  %372 = vmatpush1.msra.mxu1 %v3700_v60 }
  0x5f   :  { %339 = vmatmul.mubr.f32.vlgmr.msra.gmra.mxu0 %v5017_v0  ;;  %481 = vmatprep.subr.mxu0 %v3525_v1 }
  0x60   :  { %482 = vmatpush1.msra.mxu0 %v3527_v2  ;;  %373 = vmatprep.subr.mxu1 %v3704_v61 }
  0x61   :  { %483 = vmatprep.subr.mxu0 %v3529_v3  ;;  %374 = vmatpush1.msra.mxu1 %v3708_v62 }
  0x62   :  { %484 = vmatpush1.msra.mxu0 %v3532_v4  ;;  %375 = vmatprep.subr.mxu1 %v3712_v63 }
  0x63   :  { %485 = vmatprep.subr.mxu0 %v3535_v5  ;;  %376 = vmatpush1.msra.mxu1 %v3716_v57 }
  0x64   :  { %486 = vmatpush1.msra.mxu0 %v3538_v6  ;;  %410 = vmatmul.mubr.f32.vlgmr.msra.gmra.mxu1 %v5017_v0  ;;  %v5201_v0 = vld [vmem:[#allocation19_spill] sm:$0xff] }
  0x65   :  { %552 = vmatprep.subr.mxu1 %v3546_v9  ;;  %487 = vmatprep.subr.mxu0 %v3541_v7 }
  0x66   :  { %553 = vmatpush1.msra.mxu1 %v3552_v11  ;;  %488 = vmatpush1.msra.mxu0 %v3544_v8 }
  0x67   :  { %554 = vmatprep.subr.mxu1 %v3558_v13  ;;  %489 = vmatprep.subr.mxu0 %v3549_v10 }
  0x68   :  { %555 = vmatpush1.msra.mxu1 %v3560_v14  ;;  %490 = vmatpush1.msra.mxu0 %v3555_v12 }
  0x69   :  { %556 = vmatprep.subr.mxu1 %v3566_v16  ;;  %491 = vmatprep.subr.mxu0 %v3563_v15 }
  0x6a   :  { %557 = vmatpush1.msra.mxu1 %v3572_v18  ;;  %492 = vmatpush1.msra.mxu0 %v3569_v17 }
  0x6b   :  { %558 = vmatprep.subr.mxu1 %v3574_v19  ;;  %493 = vmatprep.subr.mxu0 %v3577_v20 }
  0x6c   :  { %559 = vmatpush1.msra.mxu1 %v3580_v21  ;;  %494 = vmatpush1.msra.mxu0 %v3583_v22 }
  0x6d   :  { %560 = vmatprep.subr.mxu1 %v3586_v23  ;;  %495 = vmatprep.subr.mxu0 %v3589_v24 }
  0x6e   :  { %561 = vmatpush1.msra.mxu1 %v3592_v25  ;;  %496 = vmatpush1.msra.mxu0 %v3595_v26 }
  0x6f   :  { %562 = vmatprep.subr.mxu1 %v3598_v27  ;;  %497 = vmatprep.subr.mxu0 %v3601_v28 }
  0x70   :  { %563 = vmatpush1.msra.mxu1 %v3604_v29  ;;  %498 = vmatpush1.msra.mxu0 %v3607_v30 }
  0x71   :  { %564 = vmatprep.subr.mxu1 %v3610_v31  ;;  %499 = vmatprep.subr.mxu0 %v3613_v32 }
  0x72   :  { %565 = vmatpush1.msra.mxu1 %v3616_v33  ;;  %500 = vmatpush1.msra.mxu0 %v3619_v34 }
  0x73   :  { %566 = vmatprep.subr.mxu1 %v3622_v35  ;;  %501 = vmatprep.subr.mxu0 %v3625_v36 }
  0x74   :  { %567 = vmatpush1.msra.mxu1 %v3628_v37  ;;  %502 = vmatpush1.msra.mxu0 %v3631_v38 }
  0x75   :  { %568 = vmatprep.subr.mxu1 %v3634_v39  ;;  %503 = vmatprep.subr.mxu0 %v3637_v40 }
  0x76   :  { %569 = vmatpush1.msra.mxu1 %v3640_v41  ;;  %504 = vmatpush1.msra.mxu0 %v3643_v42 }
  0x77   :  { %570 = vmatprep.subr.mxu1 %v3646_v43  ;;  %505 = vmatprep.subr.mxu0 %v3649_v44 }
  0x78   :  { %571 = vmatpush1.msra.mxu1 %v3652_v45  ;;  %506 = vmatpush1.msra.mxu0 %v3655_v46 }
  0x79   :  { %572 = vmatprep.subr.mxu1 %v3658_v47  ;;  %507 = vmatprep.subr.mxu0 %v3661_v48  ;;  %v5202_v48 = vmov 0.0  }
  0x7a   :  { %573 = vmatpush1.msra.mxu1 %v3664_v49  ;;  %508 = vmatpush1.msra.mxu0 %v5201_v0 }
  0x7b   :  { %574 = vmatprep.subr.mxu1 %v3670_v51  ;;  %509 = vmatprep.subr.mxu0 %v3673_v52 }
  0x7c   :  { %575 = vmatpush1.msra.mxu1 %v3676_v53  ;;  %510 = vmatpush1.msra.mxu0 %v3679_v54 }
  0x7d   :  { %576 = vmatprep.subr.mxu1 %v3682_v55  ;;  %511 = vmatprep.subr.mxu0 %v3685_v56  ;;  %v116_v56 = vld [vmem:[#allocation4] sm:$0xff] }
  0x7e   :  { %577 = vmatpush1.msra.mxu1 %v5200_v50  ;;  %512 = vmatpush1.msra.mxu0 %v3691_v58  ;;  %v120_v58 = vunpack.c.l.bf16 %v116_v56  ;;  %v121_v54 = vunpack.c.h.bf16 %v116_v56  ;;  %v117_v50 = vld [vmem:[#allocation4 + $0x8] sm:$0xff] }
  0x7f   :  { %578 = vmatprep.subr.mxu1 %v3694_v59  ;;  %545 = vmatprep.mubr.f32.mxu0 %v5202_v48  ;;  %v122_v55 = vunpack.c.l.bf16 %v117_v50 }
  0x80   :  { %579 = vmatpush1.msra.mxu1 %v3700_v60  ;;  %616 = vmatprep.mubr.f32.mxu1 %v5202_v48 }
  0x81   :  { %580 = vmatprep.subr.mxu1 %v3704_v61  ;;  %627 = vmatprep.subr.mxu0 %v3525_v1 }
  0x82   :  { %581 = vmatpush1.msra.mxu1 %v3708_v62  ;;  %v123_v62 = vunpack.c.h.bf16 %v117_v50 }
  0x83   :  { %582 = vmatprep.subr.mxu1 %v3712_v63 }
  0x84   :  { %583 = vmatpush1.msra.mxu1 %v3716_v57 }
  0x85   :  { %698 = vmatprep.subr.mxu1 %v3546_v9 }
  0xff   :  { %v194_v52 = vpop.f32.mrf.mxu0 }
 0x100   :  { %v270_v60 = vadd.f32 %v194_v52, %v120_v58 }
 0x101   :  { %v196_v0 = vpop.f32.mrf.mxu0  ;;  %v265_v1 = vpop.f32.mrf.mxu1 }
 0x102   :  { %v2968_v59 = vmul.f32 -1.442695, %v270_v60  ;;  %v271_v61 = vadd.f32 %v196_v0, %v121_v54  ;;  %v272_v44 = vadd.f32 %v265_v1, %v122_v55  ;;  %v118_v0 = vld [vmem:[#allocation4 + $0x10] sm:$0xff] }
 0x103   :  { %v267_v46 = vpop.f32.mrf.mxu1  ;;  %v124_v54 = vunpack.c.l.bf16 %v118_v0 }
 0x104   :  { %3026 = vpow2.f32 %v2968_v59  ;;  %v2969_v48 = vmul.f32 -1.442695, %v271_v61  ;;  %v273_v63 = vadd.f32 %v267_v46, %v123_v62  ;;  %v125_v59 = vunpack.c.h.bf16 %v118_v0 }
 0x106   :  { %3028 = vpow2.f32 %v2969_v48  ;;  %v2970_v57 = vmul.f32 -1.442695, %v273_v63 }
 0x108   :  { %3030 = vpow2.f32 %v2970_v57 }
 0x109   :  { %3032 = vtanh.f32 %v272_v44 }
 0x111   :  { %v3027_v9 = vpop.eup %3026 }
 0x112   :  { %v423_v53 = vadd.f32 1.0, %v3027_v9 }
 0x113   :  { %v3029_v56 = vpop.eup %3028 }
 0x114   :  { %3034 = vrcp.f32 %v423_v53  ;;  %v429_v52 = vadd.f32 1.0, %v3029_v56  ;;  %v119_v53 = vld [vmem:[#allocation4 + $0x18] sm:$0xff] }
 0x115   :  { %v3031_v58 = vpop.eup %3030 }
 0x116   :  { %3036 = vrcp.f32 %v429_v52  ;;  %v3033_v60 = vpop.eup %3032  ;;  %v436_v46 = vadd.f32 1.0, %v3031_v58  ;;  %v127_v52 = vunpack.c.h.bf16 %v119_v53 }
 0x11f   :  { %v340_v48 = vpop.f32.mrf.mxu0 }
 0x120   :  { %v416_v61 = vadd.f32 %v340_v48, %v124_v54  ;;  %v126_v54 = vunpack.c.l.bf16 %v119_v53 }
 0x121   :  { %v3035_v42 = vpop.eup %3034  ;;  %v342_v50 = vpop.f32.mrf.mxu0 }
 0x122   :  { %v440_v62 = vmul.f32 %v3035_v42, %v3033_v60  ;;  %v2971_v1 = vmul.f32 -1.442695, %v416_v61  ;;  %v417_v55 = vadd.f32 %v342_v50, %v125_v59 }
 0x123   :  { %v3037_v57 = vpop.eup %3036 }
 0x124   :  { %v439_v9 = vmul.f32 0.0, %v3037_v57  ;;  %3038 = vpow2.f32 %v2971_v1  ;;  %v2972_v44 = vmul.f32 -1.442695, %v417_v55  ;;  %v411_v56 = vpop.f32.mrf.mxu1 }
 0x125   :  { %3040 = vrcp.f32 %v436_v46  ;;  %v418_v48 = vadd.f32 %v411_v56, %v126_v54  ;;  %v5205_v54 = vld [vmem:[#allocation15_spill] sm:$0xff] }
 0x126   :  { %v3855_v63 = vadd.f32 %v440_v62, %v439_v9  ;;  %3042 = vpow2.f32 %v2972_v44  ;;  %v413_v0 = vpop.f32.mrf.mxu1 }
 0x127   :  { %v419_v58 = vadd.f32 %v413_v0, %v127_v52 }
 0x128   :  { %5203 = vst [vmem:[#allocation33_spill] sm:$0xff] %v3855_v63  ;;  %3044 = vtanh.f32 %v3855_v63  ;;  %v5221_v63 = vld [vmem:[#allocation26_spill] sm:$0xff] }
 0x129   :  { %v2973_v42 = vmul.f32 -1.442695, %v419_v58  ;;  %3046 = vtanh.f32 %v418_v48  ;;  %v5206_v58 = vld [vmem:[#allocation21_spill] sm:$0xff]  ;;  %v5207_v48 = vld [vmem:[#allocation16_spill] sm:$0xff] }
 0x12b   :  { %3048 = vpow2.f32 %v2973_v42  ;;  %v5208_v42 = vld [vmem:[#allocation23_spill] sm:$0xff] }
 0x131   :  { %v3039_v60 = vpop.eup %3038 }
 0x132   :  { %v3041_v59 = vpop.eup %3040  ;;  %v447_v61 = vadd.f32 1.0, %v3039_v60  ;;  %v5209_v60 = vld [vmem:[#allocation17_spill] sm:$0xff] }
 0x133   :  { %v3043_v50 = vpop.eup %3042 }
 0x134   :  { %3050 = vrcp.f32 %v447_v61  ;;  %v453_v46 = vadd.f32 1.0, %v3043_v50  ;;  %v5211_v61 = vld [vmem:[#allocation18_spill] sm:$0xff]  ;;  %v5212_v50 = vld [vmem:[#allocation27_spill] sm:$0xff] }
 0x135   :  { %v3045_v62 = vpop.eup %3044 }
 0x136   :  { %3052 = vrcp.f32 %v453_v46  ;;  %v443_v1 = vmul.f32 %v3045_v62, %v3041_v59  ;;  %v3047_v55 = vpop.eup %3046  ;;  %v5210_v59 = vld [vmem:[#allocation25_spill] sm:$0xff]  ;;  %v5213_v46 = vld [vmem:[#allocation19_spill] sm:$0xff]  ;;  %v5214_v62 = vld [vmem:[#allocation28_spill] sm:$0xff] }
 0x138   :  { %546 = vmatmul.mubr.f32.vlgmr.msra.gmra.mxu0 %v443_v1  ;;  %617 = vmatmul.mubr.f32.vlgmr.msra.gmra.mxu1 %v443_v1  ;;  %v3049_v57 = vpop.eup %3048 }
 0x139   :  { %628 = vmatpush1.msra.mxu0 %v3527_v2  ;;  %699 = vmatpush1.msra.mxu1 %v3552_v11  ;;  %v460_v53 = vadd.f32 1.0, %v3049_v57  ;;  %v5216_v57 = vld [vmem:[#allocation29_spill] sm:$0xff] }
 0x13a   :  { %629 = vmatprep.subr.mxu0 %v3529_v3  ;;  %700 = vmatprep.subr.mxu1 %v3558_v13 }
 0x13b   :  { %630 = vmatpush1.msra.mxu0 %v3532_v4  ;;  %701 = vmatpush1.msra.mxu1 %v3560_v14  ;;  %3054 = vrcp.f32 %v460_v53  ;;  %v5218_v53 = vld [vmem:[#allocation30_spill] sm:$0xff] }
 0x13c   :  { %631 = vmatprep.subr.mxu0 %v3535_v5  ;;  %702 = vmatprep.subr.mxu1 %v3566_v16 }
 0x13d   :  { %632 = vmatpush1.msra.mxu0 %v3538_v6  ;;  %703 = vmatpush1.msra.mxu1 %v3572_v18 }
 0x13e   :  { %633 = vmatprep.subr.mxu0 %v3541_v7  ;;  %704 = vmatprep.subr.mxu1 %v3574_v19 }
 0x13f   :  { %634 = vmatpush1.msra.mxu0 %v3544_v8  ;;  %705 = vmatpush1.msra.mxu1 %v3580_v21 }
 0x140   :  { %635 = vmatprep.subr.mxu0 %v3549_v10  ;;  %706 = vmatprep.subr.mxu1 %v3586_v23 }
 0x141   :  { %v3051_v9 = vpop.eup %3050  ;;  %636 = vmatpush1.msra.mxu0 %v3555_v12  ;;  %707 = vmatpush1.msra.mxu1 %v3592_v25 }
 0x142   :  { %637 = vmatprep.subr.mxu0 %v3563_v15  ;;  %708 = vmatprep.subr.mxu1 %v3598_v27  ;;  %v464_v52 = vmul.f32 %v3051_v9, %v3047_v55  ;;  %v5215_v55 = vld [vmem:[#allocation20_spill] sm:$0xff] }
 0x143   :  { %v3053_v44 = vpop.eup %3052  ;;  %638 = vmatpush1.msra.mxu0 %v3569_v17  ;;  %709 = vmatpush1.msra.mxu1 %v3604_v29 }
 0x144   :  { %v463_v56 = vmul.f32 0.0, %v3053_v44  ;;  %639 = vmatprep.subr.mxu0 %v3577_v20  ;;  %710 = vmatprep.subr.mxu1 %v3610_v31  ;;  %v5217_v44 = vld [vmem:[#allocation22_spill] sm:$0xff] }
 0x145   :  { %640 = vmatpush1.msra.mxu0 %v3583_v22  ;;  %711 = vmatpush1.msra.mxu1 %v3616_v33 }
 0x146   :  { %v3884_v0 = vadd.f32 %v464_v52, %v463_v56  ;;  %641 = vmatprep.subr.mxu0 %v3589_v24  ;;  %712 = vmatprep.subr.mxu1 %v3622_v35  ;;  %v5219_v56 = vld [vmem:[#allocation24_spill] sm:$0xff]  ;;  %v5220_v52 = vld [vmem:[#allocation31_spill] sm:$0xff] }
 0x147   :  { %642 = vmatpush1.msra.mxu0 %v3595_v26  ;;  %713 = vmatpush1.msra.mxu1 %v3628_v37 }
 0x148   :  { %5204 = vst [vmem:[#allocation34_spill] sm:$0xff] %v3884_v0  ;;  %3056 = vtanh.f32 %v3884_v0  ;;  %643 = vmatprep.subr.mxu0 %v3601_v28  ;;  %714 = vmatprep.subr.mxu1 %v3634_v39  ;;  %v3055_v1 = vpop.eup %3054 }
 0x149   :  { %644 = vmatpush1.msra.mxu0 %v3607_v30  ;;  %715 = vmatpush1.msra.mxu1 %v3640_v41 }
 0x14a   :  { %645 = vmatprep.subr.mxu0 %v3613_v32  ;;  %716 = vmatprep.subr.mxu1 %v3646_v43 }
 0x14b   :  { %646 = vmatpush1.msra.mxu0 %v3619_v34  ;;  %717 = vmatpush1.msra.mxu1 %v3652_v45 }
 0x14c   :  { %647 = vmatprep.subr.mxu0 %v3625_v36  ;;  %718 = vmatprep.subr.mxu1 %v3658_v47 }
 0x14d   :  { %648 = vmatpush1.msra.mxu0 %v3631_v38  ;;  %719 = vmatpush1.msra.mxu1 %v3664_v49 }
 0x14e   :  { %649 = vmatprep.subr.mxu0 %v3637_v40  ;;  %720 = vmatprep.subr.mxu1 %v3670_v51 }
 0x14f   :  { %650 = vmatpush1.msra.mxu0 %v5205_v54  ;;  %721 = vmatpush1.msra.mxu1 %v5206_v58 }
 0x150   :  { %651 = vmatprep.subr.mxu0 %v5207_v48  ;;  %722 = vmatprep.subr.mxu1 %v5208_v42 }
 0x151   :  { %652 = vmatpush1.msra.mxu0 %v5209_v60  ;;  %723 = vmatpush1.msra.mxu1 %v5210_v59 }
 0x152   :  { %653 = vmatprep.subr.mxu0 %v5211_v61  ;;  %724 = vmatprep.subr.mxu1 %v5212_v50 }
 0x153   :  { %654 = vmatpush1.msra.mxu0 %v5213_v46  ;;  %725 = vmatpush1.msra.mxu1 %v5214_v62  ;;  %v5222_v46 = vmov 0.0   ;;  %v5223_v62 = vld [vmem:[#allocation32_spill] sm:$0xff] }
 0x154   :  { %655 = vmatprep.subr.mxu0 %v5215_v55  ;;  %726 = vmatprep.subr.mxu1 %v5216_v57  ;;  %v5224_v57 = vld [vmem:[#allocation13_spill] sm:$0xff] }
 0x155   :  { %v3057_v9 = vpop.eup %3056  ;;  %656 = vmatpush1.msra.mxu0 %v5217_v44  ;;  %727 = vmatpush1.msra.mxu1 %v5218_v53  ;;  %v5225_v44 = vld [vmem:[#allocation14_spill] sm:$0xff] }
 0x156   :  { %657 = vmatprep.subr.mxu0 %v5219_v56  ;;  %728 = vmatprep.subr.mxu1 %v5220_v52  ;;  %v467_v0 = vmul.f32 %v3057_v9, %v3055_v1 }
 0x157   :  { %658 = vmatpush1.msra.mxu0 %v5221_v63  ;;  %691 = vmatprep.mubr.f32.mxu0 %v5222_v46 }
 0x158   :  { %729 = vmatpush1.msra.mxu1 %v5223_v62  ;;  %762 = vmatprep.mubr.f32.mxu1 %v5222_v46 }
 0x159   :  { %692 = vmatmul.mubr.f32.vlgmr.msra.gmra.mxu0 %v467_v0  ;;  %763 = vmatmul.mubr.f32.vlgmr.msra.gmra.mxu1 %v467_v0 }
 0x15a   :  { %834 = vmatprep.subr.mxu0 %v5224_v57  ;;  %905 = vmatprep.subr.mxu1 %v5225_v44 }
 0x15b   :  { %835 = vmatpush1.msra.mxu0 %v3527_v2  ;;  %906 = vmatpush1.msra.mxu1 %v3552_v11  ;;  %v5226_v2 = vld [vmem:[#allocation19_spill] sm:$0xff] }
 0x15c   :  { %836 = vmatprep.subr.mxu0 %v3529_v3  ;;  %907 = vmatprep.subr.mxu1 %v3558_v13  ;;  %v5227_v3 = vld [vmem:[#allocation28_spill] sm:$0xff] }
 0x15d   :  { %837 = vmatpush1.msra.mxu0 %v3532_v4  ;;  %908 = vmatpush1.msra.mxu1 %v3560_v14  ;;  %v5228_v4 = vld [vmem:[#allocation29_spill] sm:$0xff] }
 0x15e   :  { %838 = vmatprep.subr.mxu0 %v3535_v5  ;;  %909 = vmatprep.subr.mxu1 %v3566_v16  ;;  %v5229_v5 = vld [vmem:[#allocation22_spill] sm:$0xff] }
 0x15f   :  { %839 = vmatpush1.msra.mxu0 %v3538_v6  ;;  %910 = vmatpush1.msra.mxu1 %v3572_v18  ;;  %v469_v6 = vld [vmem:[#allocation4 + $0x20] sm:$0xff] }
 0x160   :  { %840 = vmatprep.subr.mxu0 %v3541_v7  ;;  %911 = vmatprep.subr.mxu1 %v3574_v19  ;;  %v473_v7 = vunpack.c.l.bf16 %v469_v6 }
 0x161   :  { %841 = vmatpush1.msra.mxu0 %v3544_v8  ;;  %912 = vmatpush1.msra.mxu1 %v3580_v21  ;;  %v474_v8 = vunpack.c.h.bf16 %v469_v6 }
 0x162   :  { %842 = vmatprep.subr.mxu0 %v3549_v10  ;;  %913 = vmatprep.subr.mxu1 %v3586_v23 }
 0x163   :  { %843 = vmatpush1.msra.mxu0 %v3555_v12  ;;  %914 = vmatpush1.msra.mxu1 %v3592_v25 }
 0x164   :  { %844 = vmatprep.subr.mxu0 %v3563_v15  ;;  %915 = vmatprep.subr.mxu1 %v3598_v27 }
 0x165   :  { %845 = vmatpush1.msra.mxu0 %v3569_v17  ;;  %916 = vmatpush1.msra.mxu1 %v3604_v29  ;;  %v470_v17 = vld [vmem:[#allocation4 + $0x28] sm:$0xff] }
 0x166   :  { %846 = vmatprep.subr.mxu0 %v3577_v20  ;;  %917 = vmatprep.subr.mxu1 %v3610_v31  ;;  %v476_v18 = vunpack.c.h.bf16 %v470_v17  ;;  %v475_v21 = vunpack.c.l.bf16 %v470_v17  ;;  %v4021_v17 = vld [vmem:[#allocation7 + $0x1a0] sm:$0xff] }
 0x167   :  { %847 = vmatpush1.msra.mxu0 %v3583_v22  ;;  %918 = vmatpush1.msra.mxu1 %v3616_v33 }
 0x168   :  { %848 = vmatprep.subr.mxu0 %v3589_v24  ;;  %919 = vmatprep.subr.mxu1 %v3622_v35 }
 0x169   :  { %849 = vmatpush1.msra.mxu0 %v3595_v26  ;;  %920 = vmatpush1.msra.mxu1 %v3628_v37 }
 0x16a   :  { %850 = vmatprep.subr.mxu0 %v3601_v28  ;;  %921 = vmatprep.subr.mxu1 %v3634_v39  ;;  %v471_v28 = vld [vmem:[#allocation4 + $0x30] sm:$0xff] }
 0x16b   :  { %851 = vmatpush1.msra.mxu0 %v3607_v30  ;;  %922 = vmatpush1.msra.mxu1 %v3640_v41  ;;  %v477_v29 = vunpack.c.l.bf16 %v471_v28  ;;  %v478_v30 = vunpack.c.h.bf16 %v471_v28  ;;  %v5230_v41 = vld [vmem:[#allocation33_spill] sm:$0xff] }
 0x16c   :  { %852 = vmatprep.subr.mxu0 %v3613_v32  ;;  %923 = vmatprep.subr.mxu1 %v3646_v43  ;;  %v4048_v28 = vld [vmem:[#allocation7 + $0x170] sm:$0xff] }
 0x16d   :  { %853 = vmatpush1.msra.mxu0 %v3619_v34  ;;  %924 = vmatpush1.msra.mxu1 %v3652_v45 }
 0x16e   :  { %854 = vmatprep.subr.mxu0 %v3625_v36  ;;  %925 = vmatprep.subr.mxu1 %v3658_v47 }
 0x16f   :  { %855 = vmatpush1.msra.mxu0 %v3631_v38  ;;  %926 = vmatpush1.msra.mxu1 %v3664_v49 }
 0x170   :  { %856 = vmatprep.subr.mxu0 %v3637_v40  ;;  %927 = vmatprep.subr.mxu1 %v3670_v51 }
 0x171   :  { %857 = vmatpush1.msra.mxu0 %v5205_v54  ;;  %928 = vmatpush1.msra.mxu1 %v5206_v58  ;;  %v472_v54 = vld [vmem:[#allocation4 + $0x38] sm:$0xff] }
 0x172   :  { %858 = vmatprep.subr.mxu0 %v5207_v48  ;;  %929 = vmatprep.subr.mxu1 %v5208_v42  ;;  %v480_v48 = vunpack.c.h.bf16 %v472_v54  ;;  %v479_v1 = vunpack.c.l.bf16 %v472_v54  ;;  %v4084_v54 = vld [vmem:[#allocation7 + $0x100] sm:$0xff] }
 0x173   :  { %859 = vmatpush1.msra.mxu0 %v5209_v60  ;;  %930 = vmatpush1.msra.mxu1 %v5210_v59 }
 0x174   :  { %860 = vmatprep.subr.mxu0 %v5211_v61  ;;  %931 = vmatprep.subr.mxu1 %v5212_v50 }
 0x175   :  { %861 = vmatpush1.msra.mxu0 %v5226_v2  ;;  %932 = vmatpush1.msra.mxu1 %v5227_v3 }
 0x176   :  { %862 = vmatprep.subr.mxu0 %v5215_v55  ;;  %933 = vmatprep.subr.mxu1 %v5228_v4 }
 0x177   :  { %863 = vmatpush1.msra.mxu0 %v5229_v5  ;;  %934 = vmatpush1.msra.mxu1 %v5218_v53 }
 0x178   :  { %864 = vmatprep.subr.mxu0 %v5219_v56  ;;  %935 = vmatprep.subr.mxu1 %v5220_v52 }
 0x179   :  { %865 = vmatpush1.msra.mxu0 %v5221_v63  ;;  %898 = vmatprep.mubr.f32.mxu0 %v5222_v46 }
 0x17a   :  { %936 = vmatpush1.msra.mxu1 %v5223_v62  ;;  %969 = vmatprep.mubr.f32.mxu1 %v5222_v46 }
 0x17b   :  { %980 = vmatprep.subr.mxu0 %v5224_v57  ;;  %1051 = vmatprep.subr.mxu1 %v5225_v44 }
 0x1f8   :  { %v547_v10 = vpop.f32.mrf.mxu0  ;;  %v618_v15 = vpop.f32.mrf.mxu1 }
 0x1f9   :  { %v623_v11 = vadd.f32 %v547_v10, %v473_v7  ;;  %v625_v24 = vadd.f32 %v618_v15, %v475_v21  ;;  %v4000_v10 = vld [vmem:[#allocation7 + $0x1f0] sm:$0xff]  ;;  %v4015_v15 = vld [vmem:[#allocation7 + $0x1a8] sm:$0xff]  ;;  %v4033_v21 = vld [vmem:[#allocation7 + $0x180] sm:$0xff] }
 0x1fa   :  { %v549_v12 = vpop.f32.mrf.mxu0  ;;  %v620_v19 = vpop.f32.mrf.mxu1 }
 0x1fb   :  { %v2974_v13 = vmul.f32 -1.442695, %v623_v11  ;;  %v624_v14 = vadd.f32 %v549_v12, %v474_v8  ;;  %v626_v20 = vadd.f32 %v620_v19, %v476_v18  ;;  %v3997_v8 = vld [vmem:[#allocation7 + $0x1e0] sm:$0xff]  ;;  %v4003_v11 = vld [vmem:[#allocation7 + $0x1c8] sm:$0xff]  ;;  %v4006_v12 = vld [vmem:[#allocation7 + $0x1d8] sm:$0xff] }
 0x1fc   :  { %v4024_v18 = vld [vmem:[#allocation7 + $0x1b0] sm:$0xff]  ;;  %v4027_v19 = vld [vmem:[#allocation7 + $0x188] sm:$0xff] }
 0x1fd   :  { %3058 = vpow2.f32 %v2974_v13  ;;  %v2975_v16 = vmul.f32 -1.442695, %v624_v14  ;;  %v2976_v22 = vmul.f32 -1.442695, %v626_v20  ;;  %v4009_v13 = vld [vmem:[#allocation7 + $0x1c0] sm:$0xff]  ;;  %v4012_v14 = vld [vmem:[#allocation7 + $0x1d0] sm:$0xff] }
 0x1fe   :  { %v4030_v20 = vld [vmem:[#allocation7 + $0x198] sm:$0xff] }
 0x1ff   :  { %3060 = vpow2.f32 %v2975_v16  ;;  %v4018_v16 = vld [vmem:[#allocation7 + $0x1b8] sm:$0xff] }
 0x200   :  { %3062 = vpow2.f32 %v2976_v22  ;;  %v4036_v22 = vld [vmem:[#allocation7 + $0x190] sm:$0xff] }
 0x20a   :  { %v3059_v23 = vpop.eup %3058 }
 0x20b   :  { %v776_v25 = vadd.f32 1.0, %v3059_v23 }
 0x20c   :  { %v3061_v26 = vpop.eup %3060 }
 0x20d   :  { %3064 = vrcp.f32 %v776_v25  ;;  %v782_v27 = vadd.f32 1.0, %v3061_v26  ;;  %v3063_v31 = vpop.eup %3062  ;;  %v4042_v25 = vld [vmem:[#allocation7 + $0x178] sm:$0xff] }
 0x20e   :  { %3066 = vtanh.f32 %v625_v24  ;;  %v789_v45 = vadd.f32 1.0, %v3063_v31  ;;  %v4039_v24 = vld [vmem:[#allocation7 + $0x168] sm:$0xff]  ;;  %v4054_v31 = vld [vmem:[#allocation7 + $0x158] sm:$0xff] }
 0x20f   :  { %3068 = vrcp.f32 %v782_v27  ;;  %v4045_v27 = vld [vmem:[#allocation7 + $0x160] sm:$0xff] }
 0x219   :  { %v693_v32 = vpop.f32.mrf.mxu0  ;;  %v764_v47 = vpop.f32.mrf.mxu1 }
 0x21a   :  { %v3065_v33 = vpop.eup %3064  ;;  %v769_v34 = vadd.f32 %v693_v32, %v477_v29  ;;  %v771_v9 = vadd.f32 %v764_v47, %v479_v1  ;;  %v4078_v47 = vld [vmem:[#allocation7 + $0x108] sm:$0xff]  ;;  %v4097_v1 = vld [vmem:[#allocation7 + $0xe0] sm:$0xff] }
 0x21b   :  { %v3067_v35 = vpop.eup %3066  ;;  %v695_v36 = vpop.f32.mrf.mxu0 }
 0x21c   :  { %v3069_v37 = vpop.eup %3068  ;;  %v2977_v38 = vmul.f32 -1.442695, %v769_v34  ;;  %v770_v39 = vadd.f32 %v695_v36, %v478_v30  ;;  %v793_v40 = vmul.f32 %v3067_v35, %v3065_v33  ;;  %v766_v60 = vpop.f32.mrf.mxu1  ;;  %v4051_v30 = vld [vmem:[#allocation7 + $0x148] sm:$0xff]  ;;  %v4057_v34 = vld [vmem:[#allocation7 + $0x140] sm:$0xff]  ;;  %v4060_v35 = vld [vmem:[#allocation7 + $0x150] sm:$0xff] }
 0x21d   :  { %v792_v43 = vmul.f32 %v3069_v37, %v5230_v41  ;;  %v772_v61 = vadd.f32 %v766_v60, %v480_v48  ;;  %v5231_v37 = vld [vmem:[#allocation34_spill] sm:$0xff]  ;;  %v4070_v41 = vld [vmem:[#allocation7 + $0x120] sm:$0xff]  ;;  %v4087_v48 = vld [vmem:[#allocation7 + $0x110] sm:$0xff] }
 0x21e   :  { %3070 = vpow2.f32 %v2977_v38  ;;  %v2978_v63 = vmul.f32 -1.442695, %v770_v39  ;;  %v4064_v39 = vld [vmem:[#allocation7 + $0x128] sm:$0xff] }
 0x21f   :  { %v3994_v0 = vadd.f32 %v793_v40, %v792_v43  ;;  %v2979_v55 = vmul.f32 -1.442695, %v772_v61  ;;  %v4067_v40 = vld [vmem:[#allocation7 + $0x138] sm:$0xff]  ;;  %v4073_v43 = vld [vmem:[#allocation7 + $0x130] sm:$0xff]  ;;  %v4090_v60 = vld [vmem:[#allocation7 + $0xe8] sm:$0xff] }
 0x220   :  { %3072 = vpow2.f32 %v2978_v63  ;;  %v4081_v63 = vld [vmem:[#allocation7 + $0x118] sm:$0xff] }
 0x221   :  { %3074 = vrcp.f32 %v789_v45  ;;  %v4093_v61 = vld [vmem:[#allocation7 + $0xf8] sm:$0xff] }
 0x222   :  { %3076 = vtanh.f32 %v3994_v0 }
 0x223   :  { %3078 = vpow2.f32 %v2979_v55  ;;  %v4100_v55 = vld [vmem:[#allocation7 + $0xf0] sm:$0xff] }
 0x22b   :  { %v3071_v57 = vpop.eup %3070 }
 0x22c   :  { %v800_v44 = vadd.f32 1.0, %v3071_v57  ;;  %v4103_v57 = vld [vmem:[#allocation7 + $0xc8] sm:$0xff] }
 0x22d   :  { %v3073_v56 = vpop.eup %3072 }
 0x22e   :  { %v3075_v2 = vpop.eup %3074  ;;  %3080 = vrcp.f32 %v800_v44  ;;  %v806_v5 = vadd.f32 1.0, %v3073_v56  ;;  %v4109_v44 = vld [vmem:[#allocation7 + $0xc0] sm:$0xff]  ;;  %v4112_v56 = vld [vmem:[#allocation7 + $0xd0] sm:$0xff] }
 0x22f   :  { %v3077_v6 = vpop.eup %3076  ;;  %3082 = vtanh.f32 %v771_v9  ;;  %v4106_v9 = vld [vmem:[#allocation7 + $0xd8] sm:$0xff] }
 0x230   :  { %3084 = vrcp.f32 %v806_v5  ;;  %v796_v7 = vmul.f32 %v3077_v6, %v3075_v2  ;;  %v3079_v23 = vpop.eup %3078  ;;  %v4115_v2 = vld [vmem:[#allocation7 + $0xa8] sm:$0xff]  ;;  %v4118_v5 = vld [vmem:[#allocation7 + $0xb8] sm:$0xff]  ;;  %v4121_v6 = vld [vmem:[#allocation7 + $0xa0] sm:$0xff] }
 0x231   :  { %v813_v33 = vadd.f32 1.0, %v3079_v23  ;;  %v4129_v23 = vld [vmem:[#allocation7 + $0x80] sm:$0xff] }
 0x232   :  { %899 = vmatmul.mubr.f32.vlgmr.msra.gmra.mxu0 %v796_v7  ;;  %970 = vmatmul.mubr.f32.vlgmr.msra.gmra.mxu1 %v796_v7  ;;  %v4125_v7 = vld [vmem:[#allocation7 + $0x88] sm:$0xff]  ;;  %5233 = vst [vmem:[#allocation21_spill] sm:$0xff] %v4129_v23 }
 0x233   :  { %981 = vmatpush1.msra.mxu0 %v3997_v8  ;;  %1052 = vmatpush1.msra.mxu1 %v4000_v10  ;;  %3086 = vrcp.f32 %v813_v33  ;;  %5232 = vst [vmem:[#allocation15_spill] sm:$0xff] %v4125_v7  ;;  %v4161_v33 = vld [vmem:[#allocation7] sm:$0xff] }
 0x234   :  { %982 = vmatprep.subr.mxu0 %v4003_v11  ;;  %1053 = vmatprep.subr.mxu1 %v4006_v12  ;;  %5241 = vst [vmem:[#allocation30_spill] sm:$0xff] %v4161_v33 }
 0x235   :  { %983 = vmatpush1.msra.mxu0 %v4009_v13  ;;  %1054 = vmatpush1.msra.mxu1 %v4012_v14 }
 0x236   :  { %984 = vmatprep.subr.mxu0 %v4015_v15  ;;  %1055 = vmatprep.subr.mxu1 %v4018_v16 }
 0x237   :  { %985 = vmatpush1.msra.mxu0 %v4021_v17  ;;  %1056 = vmatpush1.msra.mxu1 %v4024_v18 }
 0x238   :  { %986 = vmatprep.subr.mxu0 %v4027_v19  ;;  %1057 = vmatprep.subr.mxu1 %v4030_v20 }
 0x239   :  { %987 = vmatpush1.msra.mxu0 %v4033_v21  ;;  %1058 = vmatpush1.msra.mxu1 %v4036_v22 }
 0x23a   :  { %988 = vmatprep.subr.mxu0 %v4039_v24  ;;  %1059 = vmatprep.subr.mxu1 %v4042_v25 }
 0x23b   :  { %v3081_v26 = vpop.eup %3080  ;;  %989 = vmatpush1.msra.mxu0 %v4045_v27  ;;  %1060 = vmatpush1.msra.mxu1 %v4048_v28 }
 0x23c   :  { %v3083_v29 = vpop.eup %3082  ;;  %990 = vmatprep.subr.mxu0 %v4051_v30  ;;  %1061 = vmatprep.subr.mxu1 %v4054_v31 }
 0x23d   :  { %v3085_v32 = vpop.eup %3084  ;;  %991 = vmatpush1.msra.mxu0 %v4057_v34  ;;  %1062 = vmatpush1.msra.mxu1 %v4060_v35  ;;  %v817_v36 = vmul.f32 %v3083_v29, %v3081_v26  ;;  %v4133_v26 = vld [vmem:[#allocation7 + $0x68] sm:$0xff]  ;;  %v4137_v29 = vld [vmem:[#allocation7 + $0x60] sm:$0xff] }
 0x23e   :  { %v816_v38 = vmul.f32 %v3085_v32, %v5231_v37  ;;  %992 = vmatprep.subr.mxu0 %v4064_v39  ;;  %1063 = vmatprep.subr.mxu1 %v4067_v40  ;;  %5234 = vst [vmem:[#allocation16_spill] sm:$0xff] %v4133_v26  ;;  %5235 = vst [vmem:[#allocation23_spill] sm:$0xff] %v4137_v29  ;;  %v4153_v32 = vld [vmem:[#allocation7 + $0x20] sm:$0xff]  ;;  %v4226_v37 = vld [vmem:[#allocation7 + $0x78] sm:$0xff] }
 0x23f   :  { %993 = vmatpush1.msra.mxu0 %v4070_v41  ;;  %1064 = vmatpush1.msra.mxu1 %v4073_v43  ;;  %5239 = vst [vmem:[#allocation27_spill] sm:$0xff] %v4153_v32  ;;  %5246 = vst [vmem:[#allocation13_spill] sm:$0xff] %v4226_v37 }
 0x240   :  { %v4076_v45 = vadd.f32 %v817_v36, %v816_v38  ;;  %994 = vmatprep.subr.mxu0 %v4078_v47  ;;  %1065 = vmatprep.subr.mxu1 %v4081_v63  ;;  %v4222_v36 = vld [vmem:[#allocation7 + $0x90] sm:$0xff] }
 0x241   :  { %995 = vmatpush1.msra.mxu0 %v4084_v54  ;;  %1066 = vmatpush1.msra.mxu1 %v4087_v48  ;;  %5245 = vst [vmem:[#allocation32_spill] sm:$0xff] %v4222_v36  ;;  %v4230_v38 = vld [vmem:[#allocation7 + $0x70] sm:$0xff] }
 0x242   :  { %996 = vmatprep.subr.mxu0 %v4090_v60  ;;  %1067 = vmatprep.subr.mxu1 %v4093_v61  ;;  %3088 = vtanh.f32 %v4076_v45  ;;  %5247 = vst [vmem:[#allocation14_spill] sm:$0xff] %v4230_v38 }
 0x243   :  { %997 = vmatpush1.msra.mxu0 %v4097_v1  ;;  %1068 = vmatpush1.msra.mxu1 %v4100_v55 }
 0x244   :  { %998 = vmatprep.subr.mxu0 %v4103_v57  ;;  %1069 = vmatprep.subr.mxu1 %v4106_v9 }
 0x245   :  { %999 = vmatpush1.msra.mxu0 %v4109_v44  ;;  %1070 = vmatpush1.msra.mxu1 %v4112_v56 }
 0x246   :  { %1000 = vmatprep.subr.mxu0 %v4115_v2  ;;  %1071 = vmatprep.subr.mxu1 %v4118_v5 }
 0x247   :  { %1001 = vmatpush1.msra.mxu0 %v4121_v6  ;;  %1072 = vmatpush1.msra.mxu1 %v3664_v49  ;;  %v4141_v49 = vld [vmem:[#allocation7 + $0x48] sm:$0xff] }
 0x248   :  { %1002 = vmatprep.subr.mxu0 %v4125_v7  ;;  %1073 = vmatprep.subr.mxu1 %v3670_v51  ;;  %5236 = vst [vmem:[#allocation17_spill] sm:$0xff] %v4141_v49  ;;  %v4145_v51 = vld [vmem:[#allocation7 + $0x40] sm:$0xff] }
 0x249   :  { %1003 = vmatpush1.msra.mxu0 %v4129_v23  ;;  %1074 = vmatpush1.msra.mxu1 %v5206_v58  ;;  %5237 = vst [vmem:[#allocation25_spill] sm:$0xff] %v4145_v51  ;;  %v3087_v58 = vpop.eup %3086 }
 0x24a   :  { %1004 = vmatprep.subr.mxu0 %v4133_v26  ;;  %1075 = vmatprep.subr.mxu1 %v5208_v42  ;;  %v4149_v42 = vld [vmem:[#allocation7 + $0x28] sm:$0xff] }
 0x24b   :  { %1005 = vmatpush1.msra.mxu0 %v4137_v29  ;;  %1076 = vmatpush1.msra.mxu1 %v5210_v59  ;;  %5238 = vst [vmem:[#allocation18_spill] sm:$0xff] %v4149_v42 }
 0x24c   :  { %1006 = vmatprep.subr.mxu0 %v4141_v49  ;;  %1077 = vmatprep.subr.mxu1 %v5212_v50  ;;  %v4157_v50 = vld [vmem:[#allocation7 + $0x8] sm:$0xff] }
 0x24d   :  { %1007 = vmatpush1.msra.mxu0 %v4145_v51  ;;  %1078 = vmatpush1.msra.mxu1 %v5227_v3  ;;  %5240 = vst [vmem:[#allocation20_spill] sm:$0xff] %v4157_v50 }
 0x24e   :  { %1008 = vmatprep.subr.mxu0 %v4149_v42  ;;  %1079 = vmatprep.subr.mxu1 %v5228_v4  ;;  %v4170_v4 = vld [vmem:[#allocation7 + $0x1f8] sm:$0xff] }
 0x24f   :  { %v3089_v59 = vpop.eup %3088  ;;  %1009 = vmatpush1.msra.mxu0 %v4153_v32  ;;  %1080 = vmatpush1.msra.mxu1 %v5218_v53  ;;  %v4167_v53 = vld [vmem:[#allocation7 + $0x1e8] sm:$0xff]  ;;  %5243 = vst [vmem:[#allocation31_spill] sm:$0xff] %v4170_v4 }
 0x250   :  { %1010 = vmatprep.subr.mxu0 %v4157_v50  ;;  %1081 = vmatprep.subr.mxu1 %v5220_v52  ;;  %v820_v3 = vmul.f32 %v3089_v59, %v3087_v58  ;;  %5242 = vst [vmem:[#allocation24_spill] sm:$0xff] %v4167_v53  ;;  %v4218_v52 = vld [vmem:[#allocation7 + $0x98] sm:$0xff]  ;;  %v4238_v59 = vld [vmem:[#allocation7 + $0x50] sm:$0xff] }
 0x251   :  { %1011 = vmatpush1.msra.mxu0 %v4161_v33  ;;  %1044 = vmatprep.mubr.f32.mxu0 %v5222_v46  ;;  %5244 = vst [vmem:[#allocation26_spill] sm:$0xff] %v4218_v52  ;;  %v4234_v58 = vld [vmem:[#allocation7 + $0x58] sm:$0xff]  ;;  %5249 = vst [vmem:[#allocation28_spill] sm:$0xff] %v4238_v59 }
 0x252   :  { %1082 = vmatpush1.msra.mxu1 %v5223_v62  ;;  %1115 = vmatprep.mubr.f32.mxu1 %v5222_v46  ;;  %v4214_v62 = vld [vmem:[#allocation7 + $0xb0] sm:$0xff]  ;;  %5248 = vst [vmem:[#allocation19_spill] sm:$0xff] %v4234_v58 }
 0x253   :  { %1045 = vmatmul.mubr.f32.vlgmr.msra.gmra.mxu0 %v820_v3  ;;  %1116 = vmatmul.mubr.f32.vlgmr.msra.gmra.mxu1 %v820_v3  ;;  %v4242_v3 = vld [vmem:[#allocation7 + $0x38] sm:$0xff] }
 0x254   :  { %1187 = vmatprep.subr.mxu0 %v4167_v53  ;;  %1258 = vmatprep.subr.mxu1 %v4170_v4  ;;  %5250 = vst [vmem:[#allocation29_spill] sm:$0xff] %v4242_v3 }
 0x255   :  { %1188 = vmatpush1.msra.mxu0 %v3997_v8  ;;  %1259 = vmatpush1.msra.mxu1 %v4000_v10 }
 0x256   :  { %1189 = vmatprep.subr.mxu0 %v4003_v11  ;;  %1260 = vmatprep.subr.mxu1 %v4006_v12 }
 0x257   :  { %1190 = vmatpush1.msra.mxu0 %v4009_v13  ;;  %1261 = vmatpush1.msra.mxu1 %v4012_v14 }
 0x258   :  { %1191 = vmatprep.subr.mxu0 %v4015_v15  ;;  %1262 = vmatprep.subr.mxu1 %v4018_v16 }
 0x259   :  { %1192 = vmatpush1.msra.mxu0 %v4021_v17  ;;  %1263 = vmatpush1.msra.mxu1 %v4024_v18 }
 0x25a   :  { %1193 = vmatprep.subr.mxu0 %v4027_v19  ;;  %1264 = vmatprep.subr.mxu1 %v4030_v20 }
 0x25b   :  { %1194 = vmatpush1.msra.mxu0 %v4033_v21  ;;  %1265 = vmatpush1.msra.mxu1 %v4036_v22 }
 0x25c   :  { %1195 = vmatprep.subr.mxu0 %v4039_v24  ;;  %1266 = vmatprep.subr.mxu1 %v4042_v25 }
 0x25d   :  { %1196 = vmatpush1.msra.mxu0 %v4045_v27  ;;  %1267 = vmatpush1.msra.mxu1 %v4048_v28 }
 0x25e   :  { %1197 = vmatprep.subr.mxu0 %v4051_v30  ;;  %1268 = vmatprep.subr.mxu1 %v4054_v31 }
 0x25f   :  { %1198 = vmatpush1.msra.mxu0 %v4057_v34  ;;  %1269 = vmatpush1.msra.mxu1 %v4060_v35 }
 0x260   :  { %1199 = vmatprep.subr.mxu0 %v4064_v39  ;;  %1270 = vmatprep.subr.mxu1 %v4067_v40 }
 0x261   :  { %1200 = vmatpush1.msra.mxu0 %v4070_v41  ;;  %1271 = vmatpush1.msra.mxu1 %v4073_v43 }
 0x262   :  { %1201 = vmatprep.subr.mxu0 %v4078_v47  ;;  %1272 = vmatprep.subr.mxu1 %v4081_v63 }
 0x263   :  { %1202 = vmatpush1.msra.mxu0 %v4084_v54  ;;  %1273 = vmatpush1.msra.mxu1 %v4087_v48 }
 0x264   :  { %1203 = vmatprep.subr.mxu0 %v4090_v60  ;;  %1274 = vmatprep.subr.mxu1 %v4093_v61 }
 0x265   :  { %1204 = vmatpush1.msra.mxu0 %v4097_v1  ;;  %1275 = vmatpush1.msra.mxu1 %v4100_v55 }
 0x266   :  { %1205 = vmatprep.subr.mxu0 %v4103_v57  ;;  %1276 = vmatprep.subr.mxu1 %v4106_v9 }
 0x267   :  { %1206 = vmatpush1.msra.mxu0 %v4109_v44  ;;  %1277 = vmatpush1.msra.mxu1 %v4112_v56 }
 0x268   :  { %1207 = vmatprep.subr.mxu0 %v4115_v2  ;;  %1278 = vmatprep.subr.mxu1 %v4118_v5 }
 0x269   :  { %1208 = vmatpush1.msra.mxu0 %v4121_v6  ;;  %1279 = vmatpush1.msra.mxu1 %v4214_v62 }
 0x26a   :  { %1209 = vmatprep.subr.mxu0 %v4125_v7  ;;  %1280 = vmatprep.subr.mxu1 %v4218_v52 }
 0x26b   :  { %1210 = vmatpush1.msra.mxu0 %v4129_v23  ;;  %1281 = vmatpush1.msra.mxu1 %v4222_v36 }
 0x26c   :  { %1211 = vmatprep.subr.mxu0 %v4133_v26  ;;  %1282 = vmatprep.subr.mxu1 %v4226_v37  ;;  %v823_v37 = vld [vmem:[#allocation4 + $0x48] sm:$0xff] }
 0x26d   :  { %1212 = vmatpush1.msra.mxu0 %v4137_v29  ;;  %1283 = vmatpush1.msra.mxu1 %v4230_v38  ;;  %v4246_v38 = vld [vmem:[#allocation7 + $0x30] sm:$0xff]  ;;  %v828_v36 = vunpack.c.l.bf16 %v823_v37 }
 0x26e   :  { %1213 = vmatprep.subr.mxu0 %v4141_v49  ;;  %1284 = vmatprep.subr.mxu1 %v4234_v58  ;;  %5251 = vst [vmem:[#allocation22_spill] sm:$0xff] %v4246_v38  ;;  %v4250_v58 = vld [vmem:[#allocation7 + $0x18] sm:$0xff] }
 0x26f   :  { %1214 = vmatpush1.msra.mxu0 %v4145_v51  ;;  %1285 = vmatpush1.msra.mxu1 %v4238_v59  ;;  %5252 = vst [vmem:[#allocation33_spill] sm:$0xff] %v4250_v58 }
 0x270   :  { %1215 = vmatprep.subr.mxu0 %v4149_v42  ;;  %1286 = vmatprep.subr.mxu1 %v4242_v3  ;;  %v4255_v42 = vld [vmem:[#allocation7 + $0x10] sm:$0xff] }
 0x271   :  { %1216 = vmatpush1.msra.mxu0 %v4153_v32  ;;  %1287 = vmatpush1.msra.mxu1 %v4246_v38  ;;  %5253 = vst [vmem:[#allocation34_spill] sm:$0xff] %v4255_v42  ;;  %v822_v38 = vld [vmem:[#allocation4 + $0x40] sm:$0xff] }
 0x272   :  { %1217 = vmatprep.subr.mxu0 %v4157_v50  ;;  %1288 = vmatprep.subr.mxu1 %v4250_v58  ;;  %v826_v50 = vunpack.c.l.bf16 %v822_v38  ;;  %v827_v32 = vunpack.c.h.bf16 %v822_v38 }
 0x273   :  { %1218 = vmatpush1.msra.mxu0 %v4161_v33  ;;  %1251 = vmatprep.mubr.f32.mxu0 %v5222_v46 }
 0x274   :  { %1289 = vmatpush1.msra.mxu1 %v4255_v42  ;;  %1322 = vmatprep.mubr.f32.mxu1 %v5222_v46  ;;  %v829_v42 = vunpack.c.h.bf16 %v823_v37 }
 0x275   :  { %1333 = vmatprep.subr.mxu0 %v4167_v53  ;;  %1404 = vmatprep.subr.mxu1 %v4170_v4 }
 0x2f2   :  { %v900_v3 = vpop.f32.mrf.mxu0  ;;  %v971_v49 = vpop.f32.mrf.mxu1 }
 0x2f3   :  { %v976_v59 = vadd.f32 %v900_v3, %v826_v50  ;;  %v978_v4 = vadd.f32 %v971_v49, %v828_v36  ;;  %v825_v36 = vld [vmem:[#allocation4 + $0x58] sm:$0xff] }
 0x2f4   :  { %v902_v58 = vpop.f32.mrf.mxu0  ;;  %v973_v26 = vpop.f32.mrf.mxu1 }
 0x2f5   :  { %v2980_v51 = vmul.f32 -1.442695, %v976_v59  ;;  %v977_v33 = vadd.f32 %v902_v58, %v827_v32  ;;  %v979_v46 = vadd.f32 %v973_v26, %v829_v42  ;;  %v824_v32 = vld [vmem:[#allocation4 + $0x50] sm:$0xff] }
 0x2f6   :  { %v831_v38 = vunpack.c.h.bf16 %v824_v32 }
 0x2f7   :  { %3090 = vpow2.f32 %v2980_v51  ;;  %v2981_v29 = vmul.f32 -1.442695, %v977_v33  ;;  %v2982_v53 = vmul.f32 -1.442695, %v979_v46  ;;  %v830_v51 = vunpack.c.l.bf16 %v824_v32 }
 0x2f9   :  { %3092 = vpow2.f32 %v2981_v29 }
 0x2fa   :  { %3094 = vpow2.f32 %v2982_v53 }
 0x304   :  { %v3091_v23 = vpop.eup %3090 }
 0x305   :  { %v1129_v52 = vadd.f32 1.0, %v3091_v23 }
 0x306   :  { %v3093_v7 = vpop.eup %3092 }
 0x307   :  { %3096 = vrcp.f32 %v1129_v52  ;;  %v1135_v50 = vadd.f32 1.0, %v3093_v7  ;;  %v3095_v33 = vpop.eup %3094 }
 0x308   :  { %3098 = vtanh.f32 %v978_v4  ;;  %v1142_v53 = vadd.f32 1.0, %v3095_v33 }
 0x309   :  { %3100 = vrcp.f32 %v1135_v50  ;;  %v833_v50 = vunpack.c.h.bf16 %v825_v36 }
 0x313   :  { %v1046_v58 = vpop.f32.mrf.mxu0  ;;  %v1117_v7 = vpop.f32.mrf.mxu1 }
 0x314   :  { %v3097_v29 = vpop.eup %3096  ;;  %v1122_v59 = vadd.f32 %v1046_v58, %v830_v51  ;;  %v832_v58 = vunpack.c.l.bf16 %v825_v36 }
 0x315   :  { %v3099_v3 = vpop.eup %3098  ;;  %v1048_v26 = vpop.f32.mrf.mxu0 }
 0x316   :  { %v3101_v42 = vpop.eup %3100  ;;  %v2983_v46 = vmul.f32 -1.442695, %v1122_v59  ;;  %v1123_v37 = vadd.f32 %v1048_v26, %v831_v38  ;;  %v1146_v49 = vmul.f32 %v3099_v3, %v3097_v29  ;;  %v1119_v32 = vpop.f32.mrf.mxu1  ;;  %v1124_v29 = vadd.f32 %v1117_v7, %v832_v58  ;;  %v5259_v58 = vld [vmem:[#allocation32_spill] sm:$0xff] }
 0x317   :  { %v1145_v23 = vmul.f32 %v3101_v42, %v3994_v0  ;;  %v1125_v51 = vadd.f32 %v1119_v32, %v833_v50  ;;  %v5257_v32 = vld [vmem:[#allocation26_spill] sm:$0xff] }
 0x318   :  { %3102 = vpow2.f32 %v2983_v46  ;;  %v2984_v4 = vmul.f32 -1.442695, %v1123_v37 }
 0x319   :  { %v4262_v52 = vadd.f32 %v1146_v49, %v1145_v23  ;;  %v2985_v59 = vmul.f32 -1.442695, %v1125_v51  ;;  %v5258_v51 = vld [vmem:[#allocation21_spill] sm:$0xff] }
 0x31a   :  { %3104 = vpow2.f32 %v2984_v4 }
 0x31b   :  { %5254 = vst [vmem:[#allocation35_spill] sm:$0xff] %v4262_v52  ;;  %3106 = vrcp.f32 %v1142_v53 }
 0x31c   :  { %3108 = vtanh.f32 %v4262_v52  ;;  %v5274_v52 = vld [vmem:[#allocation30_spill] sm:$0xff] }
 0x31d   :  { %3110 = vpow2.f32 %v2985_v59  ;;  %v5260_v59 = vld [vmem:[#allocation16_spill] sm:$0xff] }
 0x325   :  { %v3103_v38 = vpop.eup %3102 }
 0x326   :  { %v1153_v3 = vadd.f32 1.0, %v3103_v38  ;;  %v5261_v38 = vld [vmem:[#allocation13_spill] sm:$0xff] }
 0x327   :  { %v3105_v0 = vpop.eup %3104 }
 0x328   :  { %v3107_v33 = vpop.eup %3106  ;;  %3112 = vrcp.f32 %v1153_v3  ;;  %v1159_v26 = vadd.f32 1.0, %v3105_v0  ;;  %v5263_v3 = vld [vmem:[#allocation14_spill] sm:$0xff]  ;;  %v5264_v0 = vld [vmem:[#allocation17_spill] sm:$0xff] }
 0x329   :  { %v3109_v42 = vpop.eup %3108  ;;  %3114 = vtanh.f32 %v1124_v29  ;;  %v5262_v29 = vld [vmem:[#allocation23_spill] sm:$0xff] }
 0x32a   :  { %3116 = vrcp.f32 %v1159_v26  ;;  %v1149_v46 = vmul.f32 %v3109_v42, %v3107_v33  ;;  %v3111_v37 = vpop.eup %3110  ;;  %v5265_v33 = vld [vmem:[#allocation19_spill] sm:$0xff]  ;;  %v5266_v26 = vld [vmem:[#allocation25_spill] sm:$0xff]  ;;  %v5267_v42 = vld [vmem:[#allocation28_spill] sm:$0xff] }
 0x32b   :  { %v1166_v7 = vadd.f32 1.0, %v3111_v37  ;;  %v5268_v37 = vld [vmem:[#allocation18_spill] sm:$0xff] }
 0x32c   :  { %1252 = vmatmul.mubr.f32.vlgmr.msra.gmra.mxu0 %v1149_v46  ;;  %1323 = vmatmul.mubr.f32.vlgmr.msra.gmra.mxu1 %v1149_v46 }
 0x32d   :  { %1334 = vmatpush1.msra.mxu0 %v3997_v8  ;;  %1405 = vmatpush1.msra.mxu1 %v4000_v10  ;;  %3118 = vrcp.f32 %v1166_v7  ;;  %v5271_v7 = vld [vmem:[#allocation22_spill] sm:$0xff] }
 0x32e   :  { %1335 = vmatprep.subr.mxu0 %v4003_v11  ;;  %1406 = vmatprep.subr.mxu1 %v4006_v12 }
 0x32f   :  { %1336 = vmatpush1.msra.mxu0 %v4009_v13  ;;  %1407 = vmatpush1.msra.mxu1 %v4012_v14 }
 0x330   :  { %1337 = vmatprep.subr.mxu0 %v4015_v15  ;;  %1408 = vmatprep.subr.mxu1 %v4018_v16 }
 0x331   :  { %1338 = vmatpush1.msra.mxu0 %v4021_v17  ;;  %1409 = vmatpush1.msra.mxu1 %v4024_v18 }
 0x332   :  { %1339 = vmatprep.subr.mxu0 %v4027_v19  ;;  %1410 = vmatprep.subr.mxu1 %v4030_v20 }
 0x333   :  { %1340 = vmatpush1.msra.mxu0 %v4033_v21  ;;  %1411 = vmatpush1.msra.mxu1 %v4036_v22 }
 0x334   :  { %1341 = vmatprep.subr.mxu0 %v4039_v24  ;;  %1412 = vmatprep.subr.mxu1 %v4042_v25 }
 0x335   :  { %v3113_v49 = vpop.eup %3112  ;;  %1342 = vmatpush1.msra.mxu0 %v4045_v27  ;;  %1413 = vmatpush1.msra.mxu1 %v4048_v28 }
 0x336   :  { %v3115_v23 = vpop.eup %3114  ;;  %1343 = vmatprep.subr.mxu0 %v4051_v30  ;;  %1414 = vmatprep.subr.mxu1 %v4054_v31 }
 0x337   :  { %v3117_v53 = vpop.eup %3116  ;;  %1344 = vmatpush1.msra.mxu0 %v4057_v34  ;;  %1415 = vmatpush1.msra.mxu1 %v4060_v35  ;;  %v1170_v4 = vmul.f32 %v3115_v23, %v3113_v49  ;;  %v5269_v49 = vld [vmem:[#allocation29_spill] sm:$0xff] }
 0x338   :  { %v1169_v36 = vmul.f32 %v3117_v53, %v4076_v45  ;;  %1345 = vmatprep.subr.mxu0 %v4064_v39  ;;  %1416 = vmatprep.subr.mxu1 %v4067_v40  ;;  %v5256_v45 = vld [vmem:[#allocation15_spill] sm:$0xff] }
 0x339   :  { %1346 = vmatpush1.msra.mxu0 %v4070_v41  ;;  %1417 = vmatpush1.msra.mxu1 %v4073_v43  ;;  %v5270_v53 = vld [vmem:[#allocation27_spill] sm:$0xff] }
 0x33a   :  { %v4292_v50 = vadd.f32 %v1170_v4, %v1169_v36  ;;  %1347 = vmatprep.subr.mxu0 %v4078_v47  ;;  %1418 = vmatprep.subr.mxu1 %v4081_v63  ;;  %v3119_v46 = vpop.eup %3118  ;;  %v5272_v4 = vld [vmem:[#allocation20_spill] sm:$0xff]  ;;  %v5273_v36 = vld [vmem:[#allocation33_spill] sm:$0xff] }
 0x33b   :  { %1348 = vmatpush1.msra.mxu0 %v4084_v54  ;;  %1419 = vmatpush1.msra.mxu1 %v4087_v48 }
 0x33c   :  { %5255 = vst [vmem:[#allocation36_spill] sm:$0xff] %v4292_v50  ;;  %1349 = vmatprep.subr.mxu0 %v4090_v60  ;;  %1420 = vmatprep.subr.mxu1 %v4093_v61  ;;  %3120 = vtanh.f32 %v4292_v50 }
 0x33d   :  { %1350 = vmatpush1.msra.mxu0 %v4097_v1  ;;  %1421 = vmatpush1.msra.mxu1 %v4100_v55 }
 0x33e   :  { %1351 = vmatprep.subr.mxu0 %v4103_v57  ;;  %1422 = vmatprep.subr.mxu1 %v4106_v9 }
 0x33f   :  { %1352 = vmatpush1.msra.mxu0 %v4109_v44  ;;  %1423 = vmatpush1.msra.mxu1 %v4112_v56 }
 0x340   :  { %1353 = vmatprep.subr.mxu0 %v4115_v2  ;;  %1424 = vmatprep.subr.mxu1 %v4118_v5 }
 0x341   :  { %1354 = vmatpush1.msra.mxu0 %v4121_v6  ;;  %1425 = vmatpush1.msra.mxu1 %v4214_v62 }
 0x342   :  { %1355 = vmatprep.subr.mxu0 %v5256_v45  ;;  %1426 = vmatprep.subr.mxu1 %v5257_v32 }
 0x343   :  { %1356 = vmatpush1.msra.mxu0 %v5258_v51  ;;  %1427 = vmatpush1.msra.mxu1 %v5259_v58 }
 0x344   :  { %1357 = vmatprep.subr.mxu0 %v5260_v59  ;;  %1428 = vmatprep.subr.mxu1 %v5261_v38 }
 0x345   :  { %1358 = vmatpush1.msra.mxu0 %v5262_v29  ;;  %1429 = vmatpush1.msra.mxu1 %v5263_v3 }
 0x346   :  { %1359 = vmatprep.subr.mxu0 %v5264_v0  ;;  %1430 = vmatprep.subr.mxu1 %v5265_v33 }
 0x347   :  { %1360 = vmatpush1.msra.mxu0 %v5266_v26  ;;  %1431 = vmatpush1.msra.mxu1 %v5267_v42  ;;  %v5275_v26 = vmov 0.0   ;;  %v5276_v42 = vld [vmem:[#allocation34_spill] sm:$0xff] }
 0x348   :  { %1361 = vmatprep.subr.mxu0 %v5268_v37  ;;  %1432 = vmatprep.subr.mxu1 %v5269_v49  ;;  %v5277_v49 = vld [vmem:[#allocation24_spill] sm:$0xff] }
 0x349   :  { %v3121_v23 = vpop.eup %3120  ;;  %1362 = vmatpush1.msra.mxu0 %v5270_v53  ;;  %1433 = vmatpush1.msra.mxu1 %v5271_v7  ;;  %v5278_v53 = vld [vmem:[#allocation31_spill] sm:$0xff] }
 0x34a   :  { %1363 = vmatprep.subr.mxu0 %v5272_v4  ;;  %1434 = vmatprep.subr.mxu1 %v5273_v36  ;;  %v1173_v50 = vmul.f32 %v3121_v23, %v3119_v46  ;;  %v5280_v46 = vld [vmem:[#allocation28_spill] sm:$0xff]  ;;  %v5281_v23 = vld [vmem:[#allocation29_spill] sm:$0xff] }
 0x34b   :  { %1364 = vmatpush1.msra.mxu0 %v5274_v52  ;;  %1397 = vmatprep.mubr.f32.mxu0 %v5275_v26 }
 0x34c   :  { %1435 = vmatpush1.msra.mxu1 %v5276_v42  ;;  %1468 = vmatprep.mubr.f32.mxu1 %v5275_v26 }
 0x34d   :  { %1398 = vmatmul.mubr.f32.vlgmr.msra.gmra.mxu0 %v1173_v50  ;;  %1469 = vmatmul.mubr.f32.vlgmr.msra.gmra.mxu1 %v1173_v50  ;;  %v5279_v50 = vld [vmem:[#allocation25_spill] sm:$0xff] }
 0x34e   :  { %1540 = vmatprep.subr.mxu0 %v5277_v49  ;;  %1611 = vmatprep.subr.mxu1 %v5278_v53 }
 0x34f   :  { %1541 = vmatpush1.msra.mxu0 %v3997_v8  ;;  %1612 = vmatpush1.msra.mxu1 %v4000_v10 }
 0x350   :  { %1542 = vmatprep.subr.mxu0 %v4003_v11  ;;  %1613 = vmatprep.subr.mxu1 %v4006_v12 }
 0x351   :  { %1543 = vmatpush1.msra.mxu0 %v4009_v13  ;;  %1614 = vmatpush1.msra.mxu1 %v4012_v14 }
 0x352   :  { %1544 = vmatprep.subr.mxu0 %v4015_v15  ;;  %1615 = vmatprep.subr.mxu1 %v4018_v16 }
 0x353   :  { %1545 = vmatpush1.msra.mxu0 %v4021_v17  ;;  %1616 = vmatpush1.msra.mxu1 %v4024_v18 }
 0x354   :  { %1546 = vmatprep.subr.mxu0 %v4027_v19  ;;  %1617 = vmatprep.subr.mxu1 %v4030_v20 }
 0x355   :  { %1547 = vmatpush1.msra.mxu0 %v4033_v21  ;;  %1618 = vmatpush1.msra.mxu1 %v4036_v22 }
 0x356   :  { %1548 = vmatprep.subr.mxu0 %v4039_v24  ;;  %1619 = vmatprep.subr.mxu1 %v4042_v25 }
 0x357   :  { %1549 = vmatpush1.msra.mxu0 %v4045_v27  ;;  %1620 = vmatpush1.msra.mxu1 %v4048_v28 }
 0x358   :  { %1550 = vmatprep.subr.mxu0 %v4051_v30  ;;  %1621 = vmatprep.subr.mxu1 %v4054_v31 }
 0x359   :  { %1551 = vmatpush1.msra.mxu0 %v4057_v34  ;;  %1622 = vmatpush1.msra.mxu1 %v4060_v35 }
 0x35a   :  { %1552 = vmatprep.subr.mxu0 %v4064_v39  ;;  %1623 = vmatprep.subr.mxu1 %v4067_v40 }
 0x35b   :  { %1553 = vmatpush1.msra.mxu0 %v4070_v41  ;;  %1624 = vmatpush1.msra.mxu1 %v4073_v43 }
 0x35c   :  { %1554 = vmatprep.subr.mxu0 %v4078_v47  ;;  %1625 = vmatprep.subr.mxu1 %v4081_v63 }
 0x35d   :  { %1555 = vmatpush1.msra.mxu0 %v4084_v54  ;;  %1626 = vmatpush1.msra.mxu1 %v4087_v48 }
 0x35e   :  { %1556 = vmatprep.subr.mxu0 %v4090_v60  ;;  %1627 = vmatprep.subr.mxu1 %v4093_v61 }
 0x35f   :  { %1557 = vmatpush1.msra.mxu0 %v4097_v1  ;;  %1628 = vmatpush1.msra.mxu1 %v4100_v55 }
 0x360   :  { %1558 = vmatprep.subr.mxu0 %v4103_v57  ;;  %1629 = vmatprep.subr.mxu1 %v4106_v9 }
 0x361   :  { %1559 = vmatpush1.msra.mxu0 %v4109_v44  ;;  %1630 = vmatpush1.msra.mxu1 %v4112_v56 }
 0x362   :  { %1560 = vmatprep.subr.mxu0 %v4115_v2  ;;  %1631 = vmatprep.subr.mxu1 %v4118_v5 }
 0x363   :  { %1561 = vmatpush1.msra.mxu0 %v4121_v6  ;;  %1632 = vmatpush1.msra.mxu1 %v4214_v62 }
 0x364   :  { %1562 = vmatprep.subr.mxu0 %v5256_v45  ;;  %1633 = vmatprep.subr.mxu1 %v5257_v32 }
 0x365   :  { %1563 = vmatpush1.msra.mxu0 %v5258_v51  ;;  %1634 = vmatpush1.msra.mxu1 %v5259_v58  ;;  %v5282_v58 = vld [vmem:[#allocation27_spill] sm:$0xff] }
 0x366   :  { %1564 = vmatprep.subr.mxu0 %v5260_v59  ;;  %1635 = vmatprep.subr.mxu1 %v5261_v38 }
 0x367   :  { %1565 = vmatpush1.msra.mxu0 %v5262_v29  ;;  %1636 = vmatpush1.msra.mxu1 %v5263_v3 }
 0x368   :  { %1566 = vmatprep.subr.mxu0 %v5264_v0  ;;  %1637 = vmatprep.subr.mxu1 %v5265_v33  ;;  %v1176_v0 = vld [vmem:[#allocation4 + $0x68] sm:$0xff] }
 0x369   :  { %1567 = vmatpush1.msra.mxu0 %v5279_v50  ;;  %1638 = vmatpush1.msra.mxu1 %v5280_v46  ;;  %v1181_v29 = vunpack.c.l.bf16 %v1176_v0 }
 0x36a   :  { %1568 = vmatprep.subr.mxu0 %v5268_v37  ;;  %1639 = vmatprep.subr.mxu1 %v5281_v23  ;;  %v1175_v23 = vld [vmem:[#allocation4 + $0x60] sm:$0xff] }
 0x36b   :  { %1569 = vmatpush1.msra.mxu0 %v5282_v58  ;;  %1640 = vmatpush1.msra.mxu1 %v5271_v7  ;;  %v1179_v58 = vunpack.c.l.bf16 %v1175_v23  ;;  %v1180_v37 = vunpack.c.h.bf16 %v1175_v23 }
 0x36c   :  { %1570 = vmatprep.subr.mxu0 %v5272_v4  ;;  %1641 = vmatprep.subr.mxu1 %v5273_v36 }
 0x36d   :  { %1571 = vmatpush1.msra.mxu0 %v5274_v52  ;;  %1604 = vmatprep.mubr.f32.mxu0 %v5275_v26 }
 0x36e   :  { %1642 = vmatpush1.msra.mxu1 %v5276_v42  ;;  %1675 = vmatprep.mubr.f32.mxu1 %v5275_v26  ;;  %v1182_v42 = vunpack.c.h.bf16 %v1176_v0 }
 0x36f   :  { %1686 = vmatprep.subr.mxu0 %v5277_v49  ;;  %1757 = vmatprep.subr.mxu1 %v5278_v53 }
 0x3ec   :  { %v1253_v7 = vpop.f32.mrf.mxu0  ;;  %v1324_v52 = vpop.f32.mrf.mxu1 }
 0x3ed   :  { %v1329_v46 = vadd.f32 %v1253_v7, %v1179_v58  ;;  %v1331_v53 = vadd.f32 %v1324_v52, %v1181_v29 }
 0x3ee   :  { %v1255_v4 = vpop.f32.mrf.mxu0  ;;  %v1326_v3 = vpop.f32.mrf.mxu1 }
 0x3ef   :  { %v2986_v50 = vmul.f32 -1.442695, %v1329_v46  ;;  %v1330_v36 = vadd.f32 %v1255_v4, %v1180_v37  ;;  %v1332_v26 = vadd.f32 %v1326_v3, %v1182_v42  ;;  %v1177_v37 = vld [vmem:[#allocation4 + $0x70] sm:$0xff] }
 0x3f0   :  { %v1183_v7 = vunpack.c.l.bf16 %v1177_v37  ;;  %v1184_v4 = vunpack.c.h.bf16 %v1177_v37 }
 0x3f1   :  { %3122 = vpow2.f32 %v2986_v50  ;;  %v2987_v33 = vmul.f32 -1.442695, %v1330_v36  ;;  %v2988_v49 = vmul.f32 -1.442695, %v1332_v26 }
 0x3f3   :  { %3124 = vpow2.f32 %v2987_v33 }
 0x3f4   :  { %3126 = vpow2.f32 %v2988_v49 }
 0x3fe   :  { %v3123_v38 = vpop.eup %3122 }
 0x3ff   :  { %v1482_v59 = vadd.f32 1.0, %v3123_v38  ;;  %v5283_v38 = vld [vmem:[#allocation35_spill] sm:$0xff] }
 0x400   :  { %v3125_v51 = vpop.eup %3124 }
 0x401   :  { %3128 = vrcp.f32 %v1482_v59  ;;  %v1488_v58 = vadd.f32 1.0, %v3125_v51  ;;  %v3127_v36 = vpop.eup %3126 }
 0x402   :  { %3130 = vtanh.f32 %v1331_v53  ;;  %v1495_v49 = vadd.f32 1.0, %v3127_v36 }
 0x403   :  { %3132 = vrcp.f32 %v1488_v58  ;;  %v1178_v58 = vld [vmem:[#allocation4 + $0x78] sm:$0xff] }
 0x404   :  { %v1186_v37 = vunpack.c.h.bf16 %v1178_v58 }
 0x40d   :  { %v1399_v50 = vpop.f32.mrf.mxu0  ;;  %v1470_v51 = vpop.f32.mrf.mxu1 }
 0x40e   :  { %v3129_v33 = vpop.eup %3128  ;;  %v1475_v46 = vadd.f32 %v1399_v50, %v1183_v7  ;;  %v1185_v50 = vunpack.c.l.bf16 %v1178_v58 }
 0x40f   :  { %v3131_v23 = vpop.eup %3130  ;;  %v1401_v3 = vpop.f32.mrf.mxu0 }
 0x410   :  { %v3133_v0 = vpop.eup %3132  ;;  %v2989_v26 = vmul.f32 -1.442695, %v1475_v46  ;;  %v1476_v42 = vadd.f32 %v1401_v3, %v1184_v4  ;;  %v1499_v52 = vmul.f32 %v3131_v23, %v3129_v33  ;;  %v1472_v32 = vpop.f32.mrf.mxu1  ;;  %v1477_v33 = vadd.f32 %v1470_v51, %v1185_v50  ;;  %v5297_v51 = vld [vmem:[#allocation18_spill] sm:$0xff]  ;;  %v5301_v50 = vld [vmem:[#allocation20_spill] sm:$0xff] }
 0x411   :  { %v1498_v29 = vmul.f32 %v3133_v0, %v5283_v38  ;;  %v1478_v7 = vadd.f32 %v1472_v32, %v1186_v37  ;;  %v5293_v32 = vld [vmem:[#allocation17_spill] sm:$0xff]  ;;  %v5299_v37 = vld [vmem:[#allocation27_spill] sm:$0xff] }
 0x412   :  { %3134 = vpow2.f32 %v2989_v26  ;;  %v2990_v59 = vmul.f32 -1.442695, %v1476_v42  ;;  %v5295_v38 = vld [vmem:[#allocation25_spill] sm:$0xff] }
 0x413   :  { %v4402_v53 = vadd.f32 %v1499_v52, %v1498_v29  ;;  %v2991_v46 = vmul.f32 -1.442695, %v1478_v7  ;;  %v5294_v52 = vld [vmem:[#allocation19_spill] sm:$0xff]  ;;  %v5296_v29 = vld [vmem:[#allocation28_spill] sm:$0xff]  ;;  %v5300_v7 = vld [vmem:[#allocation22_spill] sm:$0xff] }
 0x414   :  { %3136 = vpow2.f32 %v2990_v59  ;;  %v5298_v59 = vld [vmem:[#allocation29_spill] sm:$0xff] }
 0x415   :  { %3138 = vrcp.f32 %v1495_v49 }
 0x416   :  { %3140 = vtanh.f32 %v4402_v53 }
 0x417   :  { %3142 = vpow2.f32 %v2991_v46  ;;  %v5302_v46 = vld [vmem:[#allocation33_spill] sm:$0xff] }
 0x41f   :  { %v3135_v4 = vpop.eup %3134 }
 0x420   :  { %v1506_v23 = vadd.f32 1.0, %v3135_v4 }
 0x421   :  { %v3137_v3 = vpop.eup %3136 }
 0x422   :  { %v3139_v36 = vpop.eup %3138  ;;  %3144 = vrcp.f32 %v1506_v23  ;;  %v1512_v0 = vadd.f32 1.0, %v3137_v3  ;;  %v5304_v23 = vmov 0.0   ;;  %v5305_v3 = vld [vmem:[#allocation34_spill] sm:$0xff] }
 0x423   :  { %v3141_v26 = vpop.eup %3140  ;;  %3146 = vtanh.f32 %v1477_v33  ;;  %v5303_v33 = vld [vmem:[#allocation30_spill] sm:$0xff] }
 0x424   :  { %3148 = vrcp.f32 %v1512_v0  ;;  %v1502_v42 = vmul.f32 %v3141_v26, %v3139_v36  ;;  %v5306_v36 = vld [vmem:[#allocation24_spill] sm:$0xff]  ;;  %v5307_v0 = vld [vmem:[#allocation31_spill] sm:$0xff] }
 0x425   :  { %v4475_v26 = vld [vmem:[#allocation7 + $0x1e0] sm:$0xff] }
 0x426   :  { %1605 = vmatmul.mubr.f32.vlgmr.msra.gmra.mxu0 %v1502_v42  ;;  %1676 = vmatmul.mubr.f32.vlgmr.msra.gmra.mxu1 %v1502_v42  ;;  %v4478_v42 = vld [vmem:[#allocation7 + $0x1f0] sm:$0xff] }
 0x427   :  { %1687 = vmatpush1.msra.mxu0 %v3997_v8  ;;  %1758 = vmatpush1.msra.mxu1 %v4000_v10  ;;  %v3143_v8 = vpop.eup %3142 }
 0x428   :  { %1688 = vmatprep.subr.mxu0 %v4003_v11  ;;  %1759 = vmatprep.subr.mxu1 %v4006_v12 }
 0x429   :  { %1689 = vmatpush1.msra.mxu0 %v4009_v13  ;;  %1760 = vmatpush1.msra.mxu1 %v4012_v14  ;;  %v1519_v13 = vadd.f32 1.0, %v3143_v8  ;;  %v4481_v8 = vld [vmem:[#allocation7 + $0x1c8] sm:$0xff] }
 0x42a   :  { %1690 = vmatprep.subr.mxu0 %v4015_v15  ;;  %1761 = vmatprep.subr.mxu1 %v4018_v16  ;;  %v5284_v15 = vld [vmem:[#allocation36_spill] sm:$0xff] }
 0x42b   :  { %1691 = vmatpush1.msra.mxu0 %v4021_v17  ;;  %1762 = vmatpush1.msra.mxu1 %v4024_v18  ;;  %3150 = vrcp.f32 %v1519_v13  ;;  %v5286_v18 = vld [vmem:[#allocation26_spill] sm:$0xff]  ;;  %v4493_v13 = vld [vmem:[#allocation7 + $0x1a8] sm:$0xff] }
 0x42c   :  { %1692 = vmatprep.subr.mxu0 %v4027_v19  ;;  %1763 = vmatprep.subr.mxu1 %v4030_v20  ;;  %v5287_v19 = vld [vmem:[#allocation21_spill] sm:$0xff]  ;;  %v5288_v20 = vld [vmem:[#allocation32_spill] sm:$0xff] }
 0x42d   :  { %1693 = vmatpush1.msra.mxu0 %v4033_v21  ;;  %1764 = vmatpush1.msra.mxu1 %v4036_v22  ;;  %v5289_v21 = vld [vmem:[#allocation16_spill] sm:$0xff]  ;;  %v5290_v22 = vld [vmem:[#allocation13_spill] sm:$0xff] }
 0x42e   :  { %1694 = vmatprep.subr.mxu0 %v4039_v24  ;;  %1765 = vmatprep.subr.mxu1 %v4042_v25  ;;  %v5291_v24 = vld [vmem:[#allocation23_spill] sm:$0xff]  ;;  %v5292_v25 = vld [vmem:[#allocation14_spill] sm:$0xff] }
 0x42f   :  { %v3145_v10 = vpop.eup %3144  ;;  %1695 = vmatpush1.msra.mxu0 %v4045_v27  ;;  %1766 = vmatpush1.msra.mxu1 %v4048_v28 }
 0x430   :  { %v3147_v11 = vpop.eup %3146  ;;  %1696 = vmatprep.subr.mxu0 %v4051_v30  ;;  %1767 = vmatprep.subr.mxu1 %v4054_v31 }
 0x431   :  { %v3149_v12 = vpop.eup %3148  ;;  %1697 = vmatpush1.msra.mxu0 %v4057_v34  ;;  %1768 = vmatpush1.msra.mxu1 %v4060_v35  ;;  %v1523_v14 = vmul.f32 %v3147_v11, %v3145_v10  ;;  %v4484_v10 = vld [vmem:[#allocation7 + $0x1d8] sm:$0xff]  ;;  %v4487_v11 = vld [vmem:[#allocation7 + $0x1c0] sm:$0xff] }
 0x432   :  { %v1522_v16 = vmul.f32 %v3149_v12, %v5284_v15  ;;  %1698 = vmatprep.subr.mxu0 %v4064_v39  ;;  %1769 = vmatprep.subr.mxu1 %v4067_v40  ;;  %v4490_v12 = vld [vmem:[#allocation7 + $0x1d0] sm:$0xff]  ;;  %v4499_v15 = vld [vmem:[#allocation7 + $0x1a0] sm:$0xff] }
 0x433   :  { %1699 = vmatpush1.msra.mxu0 %v4070_v41  ;;  %1770 = vmatpush1.msra.mxu1 %v4073_v43  ;;  %5308 = vst [vmem:[#allocation35_spill] sm:$0xff] %v4499_v15 }
 0x434   :  { %v4432_v17 = vadd.f32 %v1523_v14, %v1522_v16  ;;  %1700 = vmatprep.subr.mxu0 %v4078_v47  ;;  %1771 = vmatprep.subr.mxu1 %v4081_v63  ;;  %v4496_v14 = vld [vmem:[#allocation7 + $0x1b8] sm:$0xff]  ;;  %v4502_v16 = vld [vmem:[#allocation7 + $0x1b0] sm:$0xff] }
 0x435   :  { %1701 = vmatpush1.msra.mxu0 %v4084_v54  ;;  %1772 = vmatpush1.msra.mxu1 %v4087_v48  ;;  %5309 = vst [vmem:[#allocation36_spill] sm:$0xff] %v4502_v16 }
 0x436   :  { %5285 = vst [vmem:[#allocation15_spill] sm:$0xff] %v4432_v17  ;;  %1702 = vmatprep.subr.mxu0 %v4090_v60  ;;  %1773 = vmatprep.subr.mxu1 %v4093_v61  ;;  %3152 = vtanh.f32 %v4432_v17  ;;  %v4514_v17 = vld [vmem:[#allocation7 + $0x190] sm:$0xff] }
 0x437   :  { %1703 = vmatpush1.msra.mxu0 %v4097_v1  ;;  %1774 = vmatpush1.msra.mxu1 %v4100_v55 }
 0x438   :  { %1704 = vmatprep.subr.mxu0 %v4103_v57  ;;  %1775 = vmatprep.subr.mxu1 %v4106_v9  ;;  %v3151_v49 = vpop.eup %3150 }
 0x439   :  { %1705 = vmatpush1.msra.mxu0 %v4109_v44  ;;  %1776 = vmatpush1.msra.mxu1 %v4112_v56 }
 0x43a   :  { %1706 = vmatprep.subr.mxu0 %v4115_v2  ;;  %1777 = vmatprep.subr.mxu1 %v4118_v5 }
 0x43b   :  { %1707 = vmatpush1.msra.mxu0 %v4121_v6  ;;  %1778 = vmatpush1.msra.mxu1 %v4214_v62 }
 0x43c   :  { %1708 = vmatprep.subr.mxu0 %v5256_v45  ;;  %1779 = vmatprep.subr.mxu1 %v5286_v18 }
 0x43d   :  { %1709 = vmatpush1.msra.mxu0 %v5287_v19  ;;  %1780 = vmatpush1.msra.mxu1 %v5288_v20 }
 0x43e   :  { %1710 = vmatprep.subr.mxu0 %v5289_v21  ;;  %1781 = vmatprep.subr.mxu1 %v5290_v22 }
 0x43f   :  { %1711 = vmatpush1.msra.mxu0 %v5291_v24  ;;  %1782 = vmatpush1.msra.mxu1 %v5292_v25 }
 0x440   :  { %1712 = vmatprep.subr.mxu0 %v5293_v32  ;;  %1783 = vmatprep.subr.mxu1 %v5294_v52 }
 0x441   :  { %1713 = vmatpush1.msra.mxu0 %v5295_v38  ;;  %1784 = vmatpush1.msra.mxu1 %v5296_v29 }
 0x442   :  { %1714 = vmatprep.subr.mxu0 %v5297_v51  ;;  %1785 = vmatprep.subr.mxu1 %v5298_v59 }
 0x443   :  { %v3153_v58 = vpop.eup %3152  ;;  %1715 = vmatpush1.msra.mxu0 %v5299_v37  ;;  %1786 = vmatpush1.msra.mxu1 %v5300_v7 }
 0x444   :  { %1716 = vmatprep.subr.mxu0 %v5301_v50  ;;  %1787 = vmatprep.subr.mxu1 %v5302_v46  ;;  %v1526_v4 = vmul.f32 %v3153_v58, %v3151_v49  ;;  %v4505_v49 = vld [vmem:[#allocation7 + $0x188] sm:$0xff]  ;;  %v4508_v58 = vld [vmem:[#allocation7 + $0x198] sm:$0xff] }
 0x445   :  { %1717 = vmatpush1.msra.mxu0 %v5303_v33  ;;  %1750 = vmatprep.mubr.f32.mxu0 %v5304_v23 }
 0x446   :  { %1788 = vmatpush1.msra.mxu1 %v5305_v3  ;;  %1821 = vmatprep.mubr.f32.mxu1 %v5304_v23 }
 0x447   :  { %1751 = vmatmul.mubr.f32.vlgmr.msra.gmra.mxu0 %v1526_v4  ;;  %1822 = vmatmul.mubr.f32.vlgmr.msra.gmra.mxu1 %v1526_v4  ;;  %v4511_v4 = vld [vmem:[#allocation7 + $0x180] sm:$0xff] }
 0x448   :  { %1893 = vmatprep.subr.mxu0 %v5306_v36  ;;  %1964 = vmatprep.subr.mxu1 %v5307_v0 }
 0x449   :  { %1894 = vmatpush1.msra.mxu0 %v4475_v26  ;;  %1965 = vmatpush1.msra.mxu1 %v4478_v42 }
 0x44a   :  { %1895 = vmatprep.subr.mxu0 %v4481_v8  ;;  %1966 = vmatprep.subr.mxu1 %v4484_v10 }
 0x44b   :  { %1896 = vmatpush1.msra.mxu0 %v4487_v11  ;;  %1967 = vmatpush1.msra.mxu1 %v4490_v12 }
 0x44c   :  { %1897 = vmatprep.subr.mxu0 %v4493_v13  ;;  %1968 = vmatprep.subr.mxu1 %v4496_v14 }
 0x44d   :  { %1898 = vmatpush1.msra.mxu0 %v4499_v15  ;;  %1969 = vmatpush1.msra.mxu1 %v4502_v16  ;;  %v4517_v15 = vld [vmem:[#allocation7 + $0x168] sm:$0xff]  ;;  %v4520_v16 = vld [vmem:[#allocation7 + $0x178] sm:$0xff] }
 0x44e   :  { %1899 = vmatprep.subr.mxu0 %v4505_v49  ;;  %1970 = vmatprep.subr.mxu1 %v4508_v58 }
 0x44f   :  { %1900 = vmatpush1.msra.mxu0 %v4511_v4  ;;  %1971 = vmatpush1.msra.mxu1 %v4514_v17 }
 0x450   :  { %1901 = vmatprep.subr.mxu0 %v4517_v15  ;;  %1972 = vmatprep.subr.mxu1 %v4520_v16 }
 0x451   :  { %1902 = vmatpush1.msra.mxu0 %v4045_v27  ;;  %1973 = vmatpush1.msra.mxu1 %v4048_v28  ;;  %v1528_v27 = vld [vmem:[#allocation4 + $0x80] sm:$0xff] }
 0x452   :  { %1903 = vmatprep.subr.mxu0 %v4051_v30  ;;  %1974 = vmatprep.subr.mxu1 %v4054_v31  ;;  %v1532_v28 = vunpack.c.l.bf16 %v1528_v27  ;;  %v1533_v30 = vunpack.c.h.bf16 %v1528_v27 }
 0x453   :  { %1904 = vmatpush1.msra.mxu0 %v4057_v34  ;;  %1975 = vmatpush1.msra.mxu1 %v4060_v35 }
 0x454   :  { %1905 = vmatprep.subr.mxu0 %v4064_v39  ;;  %1976 = vmatprep.subr.mxu1 %v4067_v40 }
 0x455   :  { %1906 = vmatpush1.msra.mxu0 %v4070_v41  ;;  %1977 = vmatpush1.msra.mxu1 %v4073_v43 }
 0x456   :  { %1907 = vmatprep.subr.mxu0 %v4078_v47  ;;  %1978 = vmatprep.subr.mxu1 %v4081_v63  ;;  %v1529_v47 = vld [vmem:[#allocation4 + $0x88] sm:$0xff] }
 0x457   :  { %1908 = vmatpush1.msra.mxu0 %v4084_v54  ;;  %1979 = vmatpush1.msra.mxu1 %v4087_v48  ;;  %v1535_v63 = vunpack.c.h.bf16 %v1529_v47 }
 0x458   :  { %1909 = vmatprep.subr.mxu0 %v4090_v60  ;;  %1980 = vmatprep.subr.mxu1 %v4093_v61  ;;  %v1534_v60 = vunpack.c.l.bf16 %v1529_v47 }
 0x459   :  { %1910 = vmatpush1.msra.mxu0 %v4097_v1  ;;  %1981 = vmatpush1.msra.mxu1 %v4100_v55 }
 0x45a   :  { %1911 = vmatprep.subr.mxu0 %v4103_v57  ;;  %1982 = vmatprep.subr.mxu1 %v4106_v9 }
 0x45b   :  { %1912 = vmatpush1.msra.mxu0 %v4109_v44  ;;  %1983 = vmatpush1.msra.mxu1 %v4112_v56  ;;  %v1530_v56 = vld [vmem:[#allocation4 + $0x90] sm:$0xff] }
 0x45c   :  { %1913 = vmatprep.subr.mxu0 %v4115_v2  ;;  %1984 = vmatprep.subr.mxu1 %v4118_v5  ;;  %v1536_v2 = vunpack.c.l.bf16 %v1530_v56  ;;  %v1537_v5 = vunpack.c.h.bf16 %v1530_v56  ;;  %v4615_v56 = vld [vmem:[#allocation7 + $0x138] sm:$0xff] }
 0x45d   :  { %1914 = vmatpush1.msra.mxu0 %v4121_v6  ;;  %1985 = vmatpush1.msra.mxu1 %v4214_v62 }
 0x45e   :  { %1915 = vmatprep.subr.mxu0 %v5256_v45  ;;  %1986 = vmatprep.subr.mxu1 %v5286_v18 }
 0x45f   :  { %1916 = vmatpush1.msra.mxu0 %v5287_v19  ;;  %1987 = vmatpush1.msra.mxu1 %v5288_v20 }
 0x460   :  { %1917 = vmatprep.subr.mxu0 %v5289_v21  ;;  %1988 = vmatprep.subr.mxu1 %v5290_v22 }
 0x461   :  { %1918 = vmatpush1.msra.mxu0 %v5291_v24  ;;  %1989 = vmatpush1.msra.mxu1 %v5292_v25 }
 0x462   :  { %1919 = vmatprep.subr.mxu0 %v5293_v32  ;;  %1990 = vmatprep.subr.mxu1 %v5294_v52 }
 0x463   :  { %1920 = vmatpush1.msra.mxu0 %v5295_v38  ;;  %1991 = vmatpush1.msra.mxu1 %v5296_v29 }
 0x464   :  { %1921 = vmatprep.subr.mxu0 %v5297_v51  ;;  %1992 = vmatprep.subr.mxu1 %v5298_v59  ;;  %v1531_v59 = vld [vmem:[#allocation4 + $0x98] sm:$0xff] }
 0x465   :  { %1922 = vmatpush1.msra.mxu0 %v5299_v37  ;;  %1993 = vmatpush1.msra.mxu1 %v5300_v7  ;;  %v1539_v37 = vunpack.c.h.bf16 %v1531_v59 }
 0x466   :  { %1923 = vmatprep.subr.mxu0 %v5301_v50  ;;  %1994 = vmatprep.subr.mxu1 %v5302_v46  ;;  %v1538_v46 = vunpack.c.l.bf16 %v1531_v59  ;;  %v4666_v59 = vld [vmem:[#allocation7 + $0xb8] sm:$0xff] }
 0x467   :  { %1924 = vmatpush1.msra.mxu0 %v5303_v33  ;;  %1957 = vmatprep.mubr.f32.mxu0 %v5304_v23 }
 0x468   :  { %1995 = vmatpush1.msra.mxu1 %v5305_v3  ;;  %2028 = vmatprep.mubr.f32.mxu1 %v5304_v23 }
 0x469   :  { %2039 = vmatprep.subr.mxu0 %v5306_v36  ;;  %2110 = vmatprep.subr.mxu1 %v5307_v0 }
 0x4e6   :  { %v1606_v31 = vpop.f32.mrf.mxu0  ;;  %v1677_v41 = vpop.f32.mrf.mxu1 }
 0x4e7   :  { %v1682_v34 = vadd.f32 %v1606_v31, %v1532_v28  ;;  %v1684_v55 = vadd.f32 %v1677_v41, %v1534_v60  ;;  %v4593_v41 = vld [vmem:[#allocation7 + $0x160] sm:$0xff] }
 0x4e8   :  { %v1608_v35 = vpop.f32.mrf.mxu0  ;;  %v1679_v54 = vpop.f32.mrf.mxu1 }
 0x4e9   :  { %v2992_v39 = vmul.f32 -1.442695, %v1682_v34  ;;  %v1683_v40 = vadd.f32 %v1608_v35, %v1533_v30  ;;  %v1685_v48 = vadd.f32 %v1679_v54, %v1535_v63  ;;  %v5311_v34 = vld [vmem:[#allocation35_spill] sm:$0xff]  ;;  %v5312_v35 = vld [vmem:[#allocation36_spill] sm:$0xff]  ;;  %v4602_v54 = vld [vmem:[#allocation7 + $0x158] sm:$0xff] }
 0x4ea   :  { %v4599_v63 = vld [vmem:[#allocation7 + $0x148] sm:$0xff] }
 0x4eb   :  { %3154 = vpow2.f32 %v2992_v39  ;;  %v2993_v43 = vmul.f32 -1.442695, %v1683_v40  ;;  %v2994_v61 = vmul.f32 -1.442695, %v1685_v48 }
 0x4ed   :  { %3156 = vpow2.f32 %v2993_v43  ;;  %v4596_v43 = vld [vmem:[#allocation7 + $0x170] sm:$0xff] }
 0x4ee   :  { %3158 = vpow2.f32 %v2994_v61  ;;  %v4605_v61 = vld [vmem:[#allocation7 + $0x140] sm:$0xff] }
 0x4f8   :  { %v3155_v1 = vpop.eup %3154 }
 0x4f9   :  { %v1835_v57 = vadd.f32 1.0, %v3155_v1  ;;  %v4608_v1 = vld [vmem:[#allocation7 + $0x150] sm:$0xff] }
 0x4fa   :  { %v3157_v9 = vpop.eup %3156 }
 0x4fb   :  { %3160 = vrcp.f32 %v1835_v57  ;;  %v1841_v44 = vadd.f32 1.0, %v3157_v9  ;;  %v3159_v6 = vpop.eup %3158  ;;  %v5313_v57 = vld [vmem:[#allocation15_spill] sm:$0xff] }
 0x4fc   :  { %3162 = vtanh.f32 %v1684_v55  ;;  %v1848_v52 = vadd.f32 1.0, %v3159_v6 }
 0x4fd   :  { %3164 = vrcp.f32 %v1841_v44  ;;  %v4612_v44 = vld [vmem:[#allocation7 + $0x128] sm:$0xff] }
 0x507   :  { %v1752_v62 = vpop.f32.mrf.mxu0  ;;  %v1823_v38 = vpop.f32.mrf.mxu1 }
 0x508   :  { %v3161_v45 = vpop.eup %3160  ;;  %v1828_v18 = vadd.f32 %v1752_v62, %v1536_v2  ;;  %v1830_v36 = vadd.f32 %v1823_v38, %v1538_v46  ;;  %v4618_v2 = vld [vmem:[#allocation7 + $0x120] sm:$0xff]  ;;  %v4626_v62 = vld [vmem:[#allocation7 + $0x108] sm:$0xff]  ;;  %v4660_v38 = vld [vmem:[#allocation7 + $0xd0] sm:$0xff] }
 0x509   :  { %v3163_v19 = vpop.eup %3162  ;;  %v1754_v20 = vpop.f32.mrf.mxu0  ;;  %v4678_v46 = vld [vmem:[#allocation7 + $0x98] sm:$0xff] }
 0x50a   :  { %v3165_v21 = vpop.eup %3164  ;;  %v2995_v22 = vmul.f32 -1.442695, %v1828_v18  ;;  %v1829_v24 = vadd.f32 %v1754_v20, %v1537_v5  ;;  %v1852_v25 = vmul.f32 %v3163_v19, %v3161_v45  ;;  %v1825_v7 = vpop.f32.mrf.mxu1  ;;  %v4621_v5 = vld [vmem:[#allocation7 + $0x130] sm:$0xff]  ;;  %v4629_v45 = vld [vmem:[#allocation7 + $0x118] sm:$0xff]  ;;  %v4632_v18 = vld [vmem:[#allocation7 + $0x100] sm:$0xff]  ;;  %5315 = vst [vmem:[#allocation32_spill] sm:$0xff] %v4678_v46 }
 0x50b   :  { %v1851_v32 = vmul.f32 %v3165_v21, %v4402_v53  ;;  %v1831_v50 = vadd.f32 %v1825_v7, %v1539_v37  ;;  %v4635_v19 = vld [vmem:[#allocation7 + $0x110] sm:$0xff]  ;;  %v4638_v20 = vld [vmem:[#allocation7 + $0xe8] sm:$0xff]  ;;  %v4641_v21 = vld [vmem:[#allocation7 + $0xf8] sm:$0xff] }
 0x50c   :  { %3166 = vpow2.f32 %v2995_v22  ;;  %v2996_v29 = vmul.f32 -1.442695, %v1829_v24  ;;  %v4645_v22 = vld [vmem:[#allocation7 + $0xe0] sm:$0xff]  ;;  %v4648_v24 = vld [vmem:[#allocation7 + $0xf0] sm:$0xff] }
 0x50d   :  { %v4574_v51 = vadd.f32 %v1852_v25, %v1851_v32  ;;  %v2997_v33 = vmul.f32 -1.442695, %v1831_v50  ;;  %v4651_v25 = vld [vmem:[#allocation7 + $0xc8] sm:$0xff]  ;;  %v4654_v32 = vld [vmem:[#allocation7 + $0xd8] sm:$0xff]  ;;  %v4669_v37 = vld [vmem:[#allocation7 + $0xa0] sm:$0xff] }
 0x50e   :  { %3168 = vpow2.f32 %v2996_v29  ;;  %v4663_v29 = vld [vmem:[#allocation7 + $0xa8] sm:$0xff]  ;;  %v4672_v7 = vld [vmem:[#allocation7 + $0xb0] sm:$0xff] }
 0x50f   :  { %5310 = vst [vmem:[#allocation26_spill] sm:$0xff] %v4574_v51  ;;  %3170 = vrcp.f32 %v1848_v52  ;;  %v4657_v52 = vld [vmem:[#allocation7 + $0xc0] sm:$0xff]  ;;  %v4675_v50 = vld [vmem:[#allocation7 + $0x88] sm:$0xff] }
 0x510   :  { %3172 = vtanh.f32 %v4574_v51 }
 0x511   :  { %3174 = vpow2.f32 %v2997_v33  ;;  %v4681_v33 = vld [vmem:[#allocation7 + $0x80] sm:$0xff] }
 0x512   :  { %5316 = vst [vmem:[#allocation16_spill] sm:$0xff] %v4681_v33 }
 0x519   :  { %v3167_v3 = vpop.eup %3166 }
 0x51a   :  { %v1859_v0 = vadd.f32 1.0, %v3167_v3  ;;  %v4684_v3 = vld [vmem:[#allocation7 + $0x90] sm:$0xff] }
 0x51b   :  { %v3169_v53 = vpop.eup %3168  ;;  %5317 = vst [vmem:[#allocation13_spill] sm:$0xff] %v4684_v3 }
 0x51c   :  { %v3171_v27 = vpop.eup %3170  ;;  %3176 = vrcp.f32 %v1859_v0  ;;  %v1865_v28 = vadd.f32 1.0, %v3169_v53  ;;  %v4690_v0 = vld [vmem:[#allocation7 + $0x78] sm:$0xff]  ;;  %v4693_v53 = vld [vmem:[#allocation7 + $0x60] sm:$0xff] }
 0x51d   :  { %v3173_v30 = vpop.eup %3172  ;;  %3178 = vtanh.f32 %v1830_v36  ;;  %v4687_v36 = vld [vmem:[#allocation7 + $0x68] sm:$0xff]  ;;  %5319 = vst [vmem:[#allocation14_spill] sm:$0xff] %v4690_v0  ;;  %5320 = vst [vmem:[#allocation17_spill] sm:$0xff] %v4693_v53 }
 0x51e   :  { %3180 = vrcp.f32 %v1865_v28  ;;  %v1855_v31 = vmul.f32 %v3173_v30, %v3171_v27  ;;  %v3175_v39 = vpop.eup %3174  ;;  %5318 = vst [vmem:[#allocation23_spill] sm:$0xff] %v4687_v36  ;;  %v4696_v27 = vld [vmem:[#allocation7 + $0x70] sm:$0xff]  ;;  %v4699_v28 = vld [vmem:[#allocation7 + $0x48] sm:$0xff]  ;;  %v4702_v30 = vld [vmem:[#allocation7 + $0x58] sm:$0xff] }
 0x51f   :  { %v1872_v60 = vadd.f32 1.0, %v3175_v39  ;;  %5321 = vst [vmem:[#allocation19_spill] sm:$0xff] %v4696_v27  ;;  %5322 = vst [vmem:[#allocation25_spill] sm:$0xff] %v4699_v28  ;;  %v4708_v39 = vld [vmem:[#allocation7 + $0x50] sm:$0xff] }
 0x520   :  { %1958 = vmatmul.mubr.f32.vlgmr.msra.gmra.mxu0 %v1855_v31  ;;  %2029 = vmatmul.mubr.f32.vlgmr.msra.gmra.mxu1 %v1855_v31  ;;  %5323 = vst [vmem:[#allocation28_spill] sm:$0xff] %v4702_v30  ;;  %v4705_v31 = vld [vmem:[#allocation7 + $0x40] sm:$0xff]  ;;  %5325 = vst [vmem:[#allocation29_spill] sm:$0xff] %v4708_v39 }
 0x521   :  { %2040 = vmatpush1.msra.mxu0 %v4475_v26  ;;  %2111 = vmatpush1.msra.mxu1 %v4478_v42  ;;  %3182 = vrcp.f32 %v1872_v60  ;;  %5324 = vst [vmem:[#allocation18_spill] sm:$0xff] %v4705_v31 }
 0x522   :  { %2041 = vmatprep.subr.mxu0 %v4481_v8  ;;  %2112 = vmatprep.subr.mxu1 %v4484_v10 }
 0x523   :  { %2042 = vmatpush1.msra.mxu0 %v4487_v11  ;;  %2113 = vmatpush1.msra.mxu1 %v4490_v12 }
 0x524   :  { %2043 = vmatprep.subr.mxu0 %v4493_v13  ;;  %2114 = vmatprep.subr.mxu1 %v4496_v14 }
 0x525   :  { %2044 = vmatpush1.msra.mxu0 %v5311_v34  ;;  %2115 = vmatpush1.msra.mxu1 %v5312_v35 }
 0x526   :  { %2045 = vmatprep.subr.mxu0 %v4505_v49  ;;  %2116 = vmatprep.subr.mxu1 %v4508_v58 }
 0x527   :  { %2046 = vmatpush1.msra.mxu0 %v4511_v4  ;;  %2117 = vmatpush1.msra.mxu1 %v4514_v17 }
 0x528   :  { %2047 = vmatprep.subr.mxu0 %v4517_v15  ;;  %2118 = vmatprep.subr.mxu1 %v4520_v16 }
 0x529   :  { %v3177_v40 = vpop.eup %3176  ;;  %2048 = vmatpush1.msra.mxu0 %v4593_v41  ;;  %2119 = vmatpush1.msra.mxu1 %v4596_v43 }
 0x52a   :  { %v3179_v47 = vpop.eup %3178  ;;  %2049 = vmatprep.subr.mxu0 %v4599_v63  ;;  %2120 = vmatprep.subr.mxu1 %v4602_v54 }
 0x52b   :  { %v3181_v48 = vpop.eup %3180  ;;  %2050 = vmatpush1.msra.mxu0 %v4605_v61  ;;  %2121 = vmatpush1.msra.mxu1 %v4608_v1  ;;  %v1876_v55 = vmul.f32 %v3179_v47, %v3177_v40  ;;  %v4711_v47 = vld [vmem:[#allocation7 + $0x28] sm:$0xff] }
 0x52c   :  { %v1875_v9 = vmul.f32 %v3181_v48, %v5313_v57  ;;  %2051 = vmatprep.subr.mxu0 %v4612_v44  ;;  %2122 = vmatprep.subr.mxu1 %v4615_v56  ;;  %5326 = vst [vmem:[#allocation27_spill] sm:$0xff] %v4711_v47  ;;  %v4714_v48 = vld [vmem:[#allocation7 + $0x38] sm:$0xff]  ;;  %v4720_v57 = vld [vmem:[#allocation7 + $0x30] sm:$0xff] }
 0x52d   :  { %2052 = vmatpush1.msra.mxu0 %v4618_v2  ;;  %2123 = vmatpush1.msra.mxu1 %v4621_v5  ;;  %5327 = vst [vmem:[#allocation22_spill] sm:$0xff] %v4714_v48  ;;  %5329 = vst [vmem:[#allocation33_spill] sm:$0xff] %v4720_v57 }
 0x52e   :  { %v4624_v6 = vadd.f32 %v1876_v55, %v1875_v9  ;;  %2053 = vmatprep.subr.mxu0 %v4626_v62  ;;  %2124 = vmatprep.subr.mxu1 %v4629_v45  ;;  %v3183_v40 = vpop.eup %3182  ;;  %v4717_v55 = vld [vmem:[#allocation7 + $0x20] sm:$0xff]  ;;  %v4723_v9 = vld [vmem:[#allocation7 + $0x8] sm:$0xff] }
 0x52f   :  { %2054 = vmatpush1.msra.mxu0 %v4632_v18  ;;  %2125 = vmatpush1.msra.mxu1 %v4635_v19  ;;  %5328 = vst [vmem:[#allocation20_spill] sm:$0xff] %v4717_v55  ;;  %5330 = vst [vmem:[#allocation30_spill] sm:$0xff] %v4723_v9 }
 0x530   :  { %5314 = vst [vmem:[#allocation21_spill] sm:$0xff] %v4624_v6  ;;  %2055 = vmatprep.subr.mxu0 %v4638_v20  ;;  %2126 = vmatprep.subr.mxu1 %v4641_v21  ;;  %3184 = vtanh.f32 %v4624_v6  ;;  %v4726_v6 = vld [vmem:[#allocation7 + $0x18] sm:$0xff] }
 0x531   :  { %2056 = vmatpush1.msra.mxu0 %v4645_v22  ;;  %2127 = vmatpush1.msra.mxu1 %v4648_v24  ;;  %5331 = vst [vmem:[#allocation34_spill] sm:$0xff] %v4726_v6 }
 0x532   :  { %2057 = vmatprep.subr.mxu0 %v4651_v25  ;;  %2128 = vmatprep.subr.mxu1 %v4654_v32 }
 0x533   :  { %2058 = vmatpush1.msra.mxu0 %v4657_v52  ;;  %2129 = vmatpush1.msra.mxu1 %v4660_v38 }
 0x534   :  { %2059 = vmatprep.subr.mxu0 %v4663_v29  ;;  %2130 = vmatprep.subr.mxu1 %v4666_v59 }
 0x535   :  { %2060 = vmatpush1.msra.mxu0 %v4669_v37  ;;  %2131 = vmatpush1.msra.mxu1 %v4672_v7 }
 0x536   :  { %2061 = vmatprep.subr.mxu0 %v4675_v50  ;;  %2132 = vmatprep.subr.mxu1 %v4678_v46 }
 0x537   :  { %2062 = vmatpush1.msra.mxu0 %v4681_v33  ;;  %2133 = vmatpush1.msra.mxu1 %v4684_v3 }
 0x538   :  { %2063 = vmatprep.subr.mxu0 %v4687_v36  ;;  %2134 = vmatprep.subr.mxu1 %v4690_v0 }
 0x539   :  { %2064 = vmatpush1.msra.mxu0 %v4693_v53  ;;  %2135 = vmatpush1.msra.mxu1 %v4696_v27 }
 0x53a   :  { %2065 = vmatprep.subr.mxu0 %v4699_v28  ;;  %2136 = vmatprep.subr.mxu1 %v4702_v30 }
 0x53b   :  { %2066 = vmatpush1.msra.mxu0 %v4705_v31  ;;  %2137 = vmatpush1.msra.mxu1 %v4708_v39 }
 0x53c   :  { %2067 = vmatprep.subr.mxu0 %v4711_v47  ;;  %2138 = vmatprep.subr.mxu1 %v4714_v48  ;;  %v4729_v47 = vld [vmem:[#allocation7] sm:$0xff] }
 0x53d   :  { %v3185_v60 = vpop.eup %3184  ;;  %2068 = vmatpush1.msra.mxu0 %v4717_v55  ;;  %2139 = vmatpush1.msra.mxu1 %v4720_v57  ;;  %5332 = vst [vmem:[#allocation24_spill] sm:$0xff] %v4729_v47  ;;  %v4733_v55 = vld [vmem:[#allocation7 + $0x10] sm:$0xff] }
 0x53e   :  { %2069 = vmatprep.subr.mxu0 %v4723_v9  ;;  %2140 = vmatprep.subr.mxu1 %v4726_v6  ;;  %v1879_v51 = vmul.f32 %v3185_v60, %v3183_v40  ;;  %5333 = vst [vmem:[#allocation31_spill] sm:$0xff] %v4733_v55  ;;  %v4737_v9 = vld [vmem:[#allocation7 + $0x1e8] sm:$0xff]  ;;  %v4740_v6 = vld [vmem:[#allocation7 + $0x1f8] sm:$0xff] }
 0x53f   :  { %2070 = vmatpush1.msra.mxu0 %v4729_v47  ;;  %2103 = vmatprep.mubr.f32.mxu0 %v5304_v23  ;;  %5334 = vst [vmem:[#allocation35_spill] sm:$0xff] %v4737_v9  ;;  %5335 = vst [vmem:[#allocation36_spill] sm:$0xff] %v4740_v6  ;;  %v5337_v40 = vld [vmem:[#allocation20_spill] sm:$0xff]  ;;  %v5338_v60 = vld [vmem:[#allocation30_spill] sm:$0xff] }
 0x540   :  { %2141 = vmatpush1.msra.mxu1 %v4733_v55  ;;  %2174 = vmatprep.mubr.f32.mxu1 %v5304_v23 }
 0x541   :  { %2104 = vmatmul.mubr.f32.vlgmr.msra.gmra.mxu0 %v1879_v51  ;;  %2175 = vmatmul.mubr.f32.vlgmr.msra.gmra.mxu1 %v1879_v51  ;;  %v5336_v51 = vld [vmem:[#allocation27_spill] sm:$0xff] }
 0x542   :  { %2246 = vmatprep.subr.mxu0 %v4737_v9  ;;  %2317 = vmatprep.subr.mxu1 %v4740_v6 }
 0x543   :  { %2247 = vmatpush1.msra.mxu0 %v4475_v26  ;;  %2318 = vmatpush1.msra.mxu1 %v4478_v42 }
 0x544   :  { %2248 = vmatprep.subr.mxu0 %v4481_v8  ;;  %2319 = vmatprep.subr.mxu1 %v4484_v10 }
 0x545   :  { %2249 = vmatpush1.msra.mxu0 %v4487_v11  ;;  %2320 = vmatpush1.msra.mxu1 %v4490_v12 }
 0x546   :  { %2250 = vmatprep.subr.mxu0 %v4493_v13  ;;  %2321 = vmatprep.subr.mxu1 %v4496_v14 }
 0x547   :  { %2251 = vmatpush1.msra.mxu0 %v5311_v34  ;;  %2322 = vmatpush1.msra.mxu1 %v5312_v35 }
 0x548   :  { %2252 = vmatprep.subr.mxu0 %v4505_v49  ;;  %2323 = vmatprep.subr.mxu1 %v4508_v58 }
 0x549   :  { %2253 = vmatpush1.msra.mxu0 %v4511_v4  ;;  %2324 = vmatpush1.msra.mxu1 %v4514_v17 }
 0x54a   :  { %2254 = vmatprep.subr.mxu0 %v4517_v15  ;;  %2325 = vmatprep.subr.mxu1 %v4520_v16 }
 0x54b   :  { %2255 = vmatpush1.msra.mxu0 %v4593_v41  ;;  %2326 = vmatpush1.msra.mxu1 %v4596_v43 }
 0x54c   :  { %2256 = vmatprep.subr.mxu0 %v4599_v63  ;;  %2327 = vmatprep.subr.mxu1 %v4602_v54 }
 0x54d   :  { %2257 = vmatpush1.msra.mxu0 %v4605_v61  ;;  %2328 = vmatpush1.msra.mxu1 %v4608_v1 }
 0x54e   :  { %2258 = vmatprep.subr.mxu0 %v4612_v44  ;;  %2329 = vmatprep.subr.mxu1 %v4615_v56 }
 0x54f   :  { %2259 = vmatpush1.msra.mxu0 %v4618_v2  ;;  %2330 = vmatpush1.msra.mxu1 %v4621_v5 }
 0x550   :  { %2260 = vmatprep.subr.mxu0 %v4626_v62  ;;  %2331 = vmatprep.subr.mxu1 %v4629_v45 }
 0x551   :  { %2261 = vmatpush1.msra.mxu0 %v4632_v18  ;;  %2332 = vmatpush1.msra.mxu1 %v4635_v19 }
 0x552   :  { %2262 = vmatprep.subr.mxu0 %v4638_v20  ;;  %2333 = vmatprep.subr.mxu1 %v4641_v21 }
 0x553   :  { %2263 = vmatpush1.msra.mxu0 %v4645_v22  ;;  %2334 = vmatpush1.msra.mxu1 %v4648_v24 }
 0x554   :  { %2264 = vmatprep.subr.mxu0 %v4651_v25  ;;  %2335 = vmatprep.subr.mxu1 %v4654_v32 }
 0x555   :  { %2265 = vmatpush1.msra.mxu0 %v4657_v52  ;;  %2336 = vmatpush1.msra.mxu1 %v4660_v38 }
 0x556   :  { %2266 = vmatprep.subr.mxu0 %v4663_v29  ;;  %2337 = vmatprep.subr.mxu1 %v4666_v59 }
 0x557   :  { %2267 = vmatpush1.msra.mxu0 %v4669_v37  ;;  %2338 = vmatpush1.msra.mxu1 %v4672_v7 }
 0x558   :  { %2268 = vmatprep.subr.mxu0 %v4675_v50  ;;  %2339 = vmatprep.subr.mxu1 %v4678_v46 }
 0x559   :  { %2269 = vmatpush1.msra.mxu0 %v4681_v33  ;;  %2340 = vmatpush1.msra.mxu1 %v4684_v3 }
 0x55a   :  { %2270 = vmatprep.subr.mxu0 %v4687_v36  ;;  %2341 = vmatprep.subr.mxu1 %v4690_v0 }
 0x55b   :  { %2271 = vmatpush1.msra.mxu0 %v4693_v53  ;;  %2342 = vmatpush1.msra.mxu1 %v4696_v27  ;;  %v5339_v53 = vld [vmem:[#allocation34_spill] sm:$0xff] }
 0x55c   :  { %2272 = vmatprep.subr.mxu0 %v4699_v28  ;;  %2343 = vmatprep.subr.mxu1 %v4702_v30  ;;  %v1882_v28 = vld [vmem:[#allocation4 + $0xa8] sm:$0xff] }
 0x55d   :  { %2273 = vmatpush1.msra.mxu0 %v4705_v31  ;;  %2344 = vmatpush1.msra.mxu1 %v4708_v39  ;;  %v1887_v0 = vunpack.c.l.bf16 %v1882_v28 }
 0x55e   :  { %2274 = vmatprep.subr.mxu0 %v5336_v51  ;;  %2345 = vmatprep.subr.mxu1 %v4714_v48  ;;  %v1881_v48 = vld [vmem:[#allocation4 + $0xa0] sm:$0xff] }
 0x55f   :  { %2275 = vmatpush1.msra.mxu0 %v5337_v40  ;;  %2346 = vmatpush1.msra.mxu1 %v4720_v57  ;;  %v1885_v40 = vunpack.c.l.bf16 %v1881_v48  ;;  %v1886_v51 = vunpack.c.h.bf16 %v1881_v48 }
 0x560   :  { %2276 = vmatprep.subr.mxu0 %v5338_v60  ;;  %2347 = vmatprep.subr.mxu1 %v5339_v53 }
 0x561   :  { %2277 = vmatpush1.msra.mxu0 %v4729_v47  ;;  %2310 = vmatprep.mubr.f32.mxu0 %v5304_v23 }
 0x562   :  { %2348 = vmatpush1.msra.mxu1 %v4733_v55  ;;  %2381 = vmatprep.mubr.f32.mxu1 %v5304_v23  ;;  %v1888_v55 = vunpack.c.h.bf16 %v1882_v28 }
 0x563   :  { %2392 = vmatprep.subr.mxu0 %v4737_v9  ;;  %2463 = vmatprep.subr.mxu1 %v4740_v6 }
 0x5e0   :  { %v1959_v57 = vpop.f32.mrf.mxu0  ;;  %v2030_v47 = vpop.f32.mrf.mxu1 }
 0x5e1   :  { %v2035_v39 = vadd.f32 %v1959_v57, %v1885_v40  ;;  %v2037_v6 = vadd.f32 %v2030_v47, %v1887_v0 }
 0x5e2   :  { %v1961_v60 = vpop.f32.mrf.mxu0  ;;  %v2032_v27 = vpop.f32.mrf.mxu1 }
 0x5e3   :  { %v2998_v31 = vmul.f32 -1.442695, %v2035_v39  ;;  %v2036_v53 = vadd.f32 %v1961_v60, %v1886_v51  ;;  %v2038_v23 = vadd.f32 %v2032_v27, %v1888_v55  ;;  %v1883_v39 = vld [vmem:[#allocation4 + $0xb0] sm:$0xff] }
 0x5e4   :  { %v1890_v57 = vunpack.c.h.bf16 %v1883_v39 }
 0x5e5   :  { %3186 = vpow2.f32 %v2998_v31  ;;  %v2999_v30 = vmul.f32 -1.442695, %v2036_v53  ;;  %v3000_v9 = vmul.f32 -1.442695, %v2038_v23  ;;  %v1889_v31 = vunpack.c.l.bf16 %v1883_v39 }
 0x5e7   :  { %3188 = vpow2.f32 %v2999_v30 }
 0x5e8   :  { %3190 = vpow2.f32 %v3000_v9 }
 0x5f2   :  { %v3187_v36 = vpop.eup %3186 }
 0x5f3   :  { %v2188_v3 = vadd.f32 1.0, %v3187_v36  ;;  %v5340_v36 = vld [vmem:[#allocation26_spill] sm:$0xff] }
 0x5f4   :  { %v3189_v33 = vpop.eup %3188 }
 0x5f5   :  { %3192 = vrcp.f32 %v2188_v3  ;;  %v2194_v48 = vadd.f32 1.0, %v3189_v33  ;;  %v3191_v53 = vpop.eup %3190 }
 0x5f6   :  { %3194 = vtanh.f32 %v2037_v6  ;;  %v2201_v9 = vadd.f32 1.0, %v3191_v53 }
 0x5f7   :  { %3196 = vrcp.f32 %v2194_v48  ;;  %v1884_v48 = vld [vmem:[#allocation4 + $0xb8] sm:$0xff] }
 0x5f8   :  { %v1892_v39 = vunpack.c.h.bf16 %v1884_v48 }
 0x601   :  { %v2105_v51 = vpop.f32.mrf.mxu0  ;;  %v2176_v33 = vpop.f32.mrf.mxu1 }
 0x602   :  { %v3193_v30 = vpop.eup %3192  ;;  %v2181_v40 = vadd.f32 %v2105_v51, %v1889_v31  ;;  %v1891_v51 = vunpack.c.l.bf16 %v1884_v48 }
 0x603   :  { %v3195_v60 = vpop.eup %3194  ;;  %v2107_v27 = vpop.f32.mrf.mxu0 }
 0x604   :  { %v3197_v28 = vpop.eup %3196  ;;  %v3001_v23 = vmul.f32 -1.442695, %v2181_v40  ;;  %v2182_v55 = vadd.f32 %v2107_v27, %v1890_v57  ;;  %v2205_v0 = vmul.f32 %v3195_v60, %v3193_v30  ;;  %v2178_v46 = vpop.f32.mrf.mxu1  ;;  %v2183_v30 = vadd.f32 %v2176_v33, %v1891_v51  ;;  %v5345_v51 = vld [vmem:[#allocation16_spill] sm:$0xff] }
 0x605   :  { %v2204_v47 = vmul.f32 %v3197_v28, %v5340_v36  ;;  %v2184_v31 = vadd.f32 %v2178_v46, %v1892_v39 }
 0x606   :  { %3198 = vpow2.f32 %v3001_v23  ;;  %v3002_v6 = vmul.f32 -1.442695, %v2182_v55 }
 0x607   :  { %v4810_v3 = vadd.f32 %v2205_v0, %v2204_v47  ;;  %v3003_v40 = vmul.f32 -1.442695, %v2184_v31  ;;  %v5344_v31 = vld [vmem:[#allocation32_spill] sm:$0xff] }
 0x608   :  { %3200 = vpow2.f32 %v3002_v6  ;;  %v5342_v6 = vld [vmem:[#allocation21_spill] sm:$0xff] }
 0x609   :  { %5341 = vst [vmem:[#allocation15_spill] sm:$0xff] %v4810_v3  ;;  %3202 = vrcp.f32 %v2201_v9 }
 0x60a   :  { %3204 = vtanh.f32 %v4810_v3  ;;  %v5361_v3 = vld [vmem:[#allocation24_spill] sm:$0xff] }
 0x60b   :  { %3206 = vpow2.f32 %v3003_v40  ;;  %v5346_v40 = vld [vmem:[#allocation13_spill] sm:$0xff] }
 0x613   :  { %v3199_v57 = vpop.eup %3198 }
 0x614   :  { %v2212_v60 = vadd.f32 1.0, %v3199_v57  ;;  %v5347_v57 = vld [vmem:[#allocation23_spill] sm:$0xff] }
 0x615   :  { %v3201_v27 = vpop.eup %3200 }
 0x616   :  { %v3203_v53 = vpop.eup %3202  ;;  %3208 = vrcp.f32 %v2212_v60  ;;  %v2218_v28 = vadd.f32 1.0, %v3201_v27  ;;  %v5349_v60 = vld [vmem:[#allocation17_spill] sm:$0xff]  ;;  %v5350_v27 = vld [vmem:[#allocation19_spill] sm:$0xff] }
 0x617   :  { %v3205_v23 = vpop.eup %3204  ;;  %3210 = vtanh.f32 %v2183_v30  ;;  %v5348_v30 = vld [vmem:[#allocation14_spill] sm:$0xff] }
 0x618   :  { %3212 = vrcp.f32 %v2218_v28  ;;  %v2208_v55 = vmul.f32 %v3205_v23, %v3203_v53  ;;  %v3207_v46 = vpop.eup %3206  ;;  %v5351_v53 = vld [vmem:[#allocation25_spill] sm:$0xff]  ;;  %v5352_v28 = vld [vmem:[#allocation28_spill] sm:$0xff]  ;;  %v5353_v23 = vld [vmem:[#allocation18_spill] sm:$0xff] }
 0x619   :  { %v2225_v9 = vadd.f32 1.0, %v3207_v46 }
 0x61a   :  { %2311 = vmatmul.mubr.f32.vlgmr.msra.gmra.mxu0 %v2208_v55  ;;  %2382 = vmatmul.mubr.f32.vlgmr.msra.gmra.mxu1 %v2208_v55  ;;  %v5354_v55 = vld [vmem:[#allocation29_spill] sm:$0xff] }
 0x61b   :  { %2393 = vmatpush1.msra.mxu0 %v4475_v26  ;;  %2464 = vmatpush1.msra.mxu1 %v4478_v42  ;;  %3214 = vrcp.f32 %v2225_v9  ;;  %v5357_v9 = vld [vmem:[#allocation20_spill] sm:$0xff] }
 0x61c   :  { %2394 = vmatprep.subr.mxu0 %v4481_v8  ;;  %2465 = vmatprep.subr.mxu1 %v4484_v10 }
 0x61d   :  { %2395 = vmatpush1.msra.mxu0 %v4487_v11  ;;  %2466 = vmatpush1.msra.mxu1 %v4490_v12 }
 0x61e   :  { %2396 = vmatprep.subr.mxu0 %v4493_v13  ;;  %2467 = vmatprep.subr.mxu1 %v4496_v14 }
 0x61f   :  { %2397 = vmatpush1.msra.mxu0 %v5311_v34  ;;  %2468 = vmatpush1.msra.mxu1 %v5312_v35 }
 0x620   :  { %2398 = vmatprep.subr.mxu0 %v4505_v49  ;;  %2469 = vmatprep.subr.mxu1 %v4508_v58 }
 0x621   :  { %2399 = vmatpush1.msra.mxu0 %v4511_v4  ;;  %2470 = vmatpush1.msra.mxu1 %v4514_v17 }
 0x622   :  { %2400 = vmatprep.subr.mxu0 %v4517_v15  ;;  %2471 = vmatprep.subr.mxu1 %v4520_v16 }
 0x623   :  { %v3209_v0 = vpop.eup %3208  ;;  %2401 = vmatpush1.msra.mxu0 %v4593_v41  ;;  %2472 = vmatpush1.msra.mxu1 %v4596_v43 }
 0x624   :  { %v3211_v36 = vpop.eup %3210  ;;  %2402 = vmatprep.subr.mxu0 %v4599_v63  ;;  %2473 = vmatprep.subr.mxu1 %v4602_v54 }
 0x625   :  { %v3213_v47 = vpop.eup %3212  ;;  %2403 = vmatpush1.msra.mxu0 %v4605_v61  ;;  %2474 = vmatpush1.msra.mxu1 %v4608_v1  ;;  %v2229_v33 = vmul.f32 %v3211_v36, %v3209_v0  ;;  %v5355_v0 = vld [vmem:[#allocation27_spill] sm:$0xff]  ;;  %v5356_v36 = vld [vmem:[#allocation22_spill] sm:$0xff] }
 0x626   :  { %v2228_v48 = vmul.f32 %v3213_v47, %v5342_v6  ;;  %2404 = vmatprep.subr.mxu0 %v4612_v44  ;;  %2475 = vmatprep.subr.mxu1 %v4615_v56  ;;  %v5359_v6 = vld [vmem:[#allocation30_spill] sm:$0xff] }
 0x627   :  { %2405 = vmatpush1.msra.mxu0 %v4618_v2  ;;  %2476 = vmatpush1.msra.mxu1 %v4621_v5 }
 0x628   :  { %v4840_v39 = vadd.f32 %v2229_v33, %v2228_v48  ;;  %2406 = vmatprep.subr.mxu0 %v4626_v62  ;;  %2477 = vmatprep.subr.mxu1 %v4629_v45  ;;  %v3215_v46 = vpop.eup %3214  ;;  %v5358_v33 = vld [vmem:[#allocation33_spill] sm:$0xff]  ;;  %v5360_v48 = vld [vmem:[#allocation34_spill] sm:$0xff] }
 0x629   :  { %2407 = vmatpush1.msra.mxu0 %v4632_v18  ;;  %2478 = vmatpush1.msra.mxu1 %v4635_v19 }
 0x62a   :  { %5343 = vst [vmem:[#allocation26_spill] sm:$0xff] %v4840_v39  ;;  %2408 = vmatprep.subr.mxu0 %v4638_v20  ;;  %2479 = vmatprep.subr.mxu1 %v4641_v21  ;;  %3216 = vtanh.f32 %v4840_v39 }
 0x62b   :  { %2409 = vmatpush1.msra.mxu0 %v4645_v22  ;;  %2480 = vmatpush1.msra.mxu1 %v4648_v24 }
 0x62c   :  { %2410 = vmatprep.subr.mxu0 %v4651_v25  ;;  %2481 = vmatprep.subr.mxu1 %v4654_v32 }
 0x62d   :  { %2411 = vmatpush1.msra.mxu0 %v4657_v52  ;;  %2482 = vmatpush1.msra.mxu1 %v4660_v38 }
 0x62e   :  { %2412 = vmatprep.subr.mxu0 %v4663_v29  ;;  %2483 = vmatprep.subr.mxu1 %v4666_v59 }
 0x62f   :  { %2413 = vmatpush1.msra.mxu0 %v4669_v37  ;;  %2484 = vmatpush1.msra.mxu1 %v4672_v7 }
 0x630   :  { %2414 = vmatprep.subr.mxu0 %v4675_v50  ;;  %2485 = vmatprep.subr.mxu1 %v5344_v31 }
 0x631   :  { %2415 = vmatpush1.msra.mxu0 %v5345_v51  ;;  %2486 = vmatpush1.msra.mxu1 %v5346_v40 }
 0x632   :  { %2416 = vmatprep.subr.mxu0 %v5347_v57  ;;  %2487 = vmatprep.subr.mxu1 %v5348_v30 }
 0x633   :  { %2417 = vmatpush1.msra.mxu0 %v5349_v60  ;;  %2488 = vmatpush1.msra.mxu1 %v5350_v27 }
 0x634   :  { %2418 = vmatprep.subr.mxu0 %v5351_v53  ;;  %2489 = vmatprep.subr.mxu1 %v5352_v28 }
 0x635   :  { %2419 = vmatpush1.msra.mxu0 %v5353_v23  ;;  %2490 = vmatpush1.msra.mxu1 %v5354_v55  ;;  %v5362_v23 = vmov 0.0   ;;  %v5363_v55 = vld [vmem:[#allocation31_spill] sm:$0xff] }
 0x636   :  { %2420 = vmatprep.subr.mxu0 %v5355_v0  ;;  %2491 = vmatprep.subr.mxu1 %v5356_v36  ;;  %v5364_v36 = vld [vmem:[#allocation35_spill] sm:$0xff] }
 0x637   :  { %v3217_v47 = vpop.eup %3216  ;;  %2421 = vmatpush1.msra.mxu0 %v5357_v9  ;;  %2492 = vmatpush1.msra.mxu1 %v5358_v33  ;;  %v5365_v9 = vld [vmem:[#allocation36_spill] sm:$0xff] }
 0x638   :  { %2422 = vmatprep.subr.mxu0 %v5359_v6  ;;  %2493 = vmatprep.subr.mxu1 %v5360_v48  ;;  %v2232_v39 = vmul.f32 %v3217_v47, %v3215_v46 }
 0x639   :  { %2423 = vmatpush1.msra.mxu0 %v5361_v3  ;;  %2456 = vmatprep.mubr.f32.mxu0 %v5362_v23 }
 0x63a   :  { %2494 = vmatpush1.msra.mxu1 %v5363_v55  ;;  %2527 = vmatprep.mubr.f32.mxu1 %v5362_v23 }
 0x63b   :  { %2457 = vmatmul.mubr.f32.vlgmr.msra.gmra.mxu0 %v2232_v39  ;;  %2528 = vmatmul.mubr.f32.vlgmr.msra.gmra.mxu1 %v2232_v39 }
 0x63c   :  { %2599 = vmatprep.subr.mxu0 %v5364_v36  ;;  %2670 = vmatprep.subr.mxu1 %v5365_v9 }
 0x63d   :  { %2600 = vmatpush1.msra.mxu0 %v4475_v26  ;;  %2671 = vmatpush1.msra.mxu1 %v4478_v42  ;;  %v5367_v26 = vld [vmem:[#allocation29_spill] sm:$0xff]  ;;  %v5368_v42 = vld [vmem:[#allocation22_spill] sm:$0xff] }
 0x63e   :  { %2601 = vmatprep.subr.mxu0 %v4481_v8  ;;  %2672 = vmatprep.subr.mxu1 %v4484_v10  ;;  %v5369_v8 = vld [vmem:[#allocation20_spill] sm:$0xff]  ;;  %v2234_v10 = vld [vmem:[#allocation4 + $0xc0] sm:$0xff] }
 0x63f   :  { %2602 = vmatpush1.msra.mxu0 %v4487_v11  ;;  %2673 = vmatpush1.msra.mxu1 %v4490_v12  ;;  %v2238_v11 = vunpack.c.l.bf16 %v2234_v10  ;;  %v2239_v12 = vunpack.c.h.bf16 %v2234_v10 }
 0x640   :  { %2603 = vmatprep.subr.mxu0 %v4493_v13  ;;  %2674 = vmatprep.subr.mxu1 %v4496_v14 }
 0x641   :  { %2604 = vmatpush1.msra.mxu0 %v5311_v34  ;;  %2675 = vmatpush1.msra.mxu1 %v5312_v35  ;;  %v2235_v34 = vld [vmem:[#allocation4 + $0xc8] sm:$0xff] }
 0x642   :  { %2605 = vmatprep.subr.mxu0 %v4505_v49  ;;  %2676 = vmatprep.subr.mxu1 %v4508_v58  ;;  %v2241_v35 = vunpack.c.h.bf16 %v2235_v34  ;;  %v2240_v47 = vunpack.c.l.bf16 %v2235_v34 }
 0x643   :  { %2606 = vmatpush1.msra.mxu0 %v4511_v4  ;;  %2677 = vmatpush1.msra.mxu1 %v4514_v17  ;;  %v5366_v17 = vld [vmem:[#allocation18_spill] sm:$0xff] }
 0x644   :  { %2607 = vmatprep.subr.mxu0 %v4517_v15  ;;  %2678 = vmatprep.subr.mxu1 %v4520_v16 }
 0x645   :  { %2608 = vmatpush1.msra.mxu0 %v4593_v41  ;;  %2679 = vmatpush1.msra.mxu1 %v4596_v43 }
 0x646   :  { %2609 = vmatprep.subr.mxu0 %v4599_v63  ;;  %2680 = vmatprep.subr.mxu1 %v4602_v54 }
 0x647   :  { %2610 = vmatpush1.msra.mxu0 %v4605_v61  ;;  %2681 = vmatpush1.msra.mxu1 %v4608_v1 }
 0x648   :  { %2611 = vmatprep.subr.mxu0 %v4612_v44  ;;  %2682 = vmatprep.subr.mxu1 %v4615_v56 }
 0x649   :  { %2612 = vmatpush1.msra.mxu0 %v4618_v2  ;;  %2683 = vmatpush1.msra.mxu1 %v4621_v5 }
 0x64a   :  { %2613 = vmatprep.subr.mxu0 %v4626_v62  ;;  %2684 = vmatprep.subr.mxu1 %v4629_v45 }
 0x64b   :  { %2614 = vmatpush1.msra.mxu0 %v4632_v18  ;;  %2685 = vmatpush1.msra.mxu1 %v4635_v19 }
 0x64c   :  { %2615 = vmatprep.subr.mxu0 %v4638_v20  ;;  %2686 = vmatprep.subr.mxu1 %v4641_v21 }
 0x64d   :  { %2616 = vmatpush1.msra.mxu0 %v4645_v22  ;;  %2687 = vmatpush1.msra.mxu1 %v4648_v24 }
 0x64e   :  { %2617 = vmatprep.subr.mxu0 %v4651_v25  ;;  %2688 = vmatprep.subr.mxu1 %v4654_v32 }
 0x64f   :  { %2618 = vmatpush1.msra.mxu0 %v4657_v52  ;;  %2689 = vmatpush1.msra.mxu1 %v4660_v38 }
 0x650   :  { %2619 = vmatprep.subr.mxu0 %v4663_v29  ;;  %2690 = vmatprep.subr.mxu1 %v4666_v59 }
 0x651   :  { %2620 = vmatpush1.msra.mxu0 %v4669_v37  ;;  %2691 = vmatpush1.msra.mxu1 %v4672_v7 }
 0x652   :  { %2621 = vmatprep.subr.mxu0 %v4675_v50  ;;  %2692 = vmatprep.subr.mxu1 %v5344_v31 }
 0x653   :  { %2622 = vmatpush1.msra.mxu0 %v5345_v51  ;;  %2693 = vmatpush1.msra.mxu1 %v5346_v40 }
 0x654   :  { %2623 = vmatprep.subr.mxu0 %v5347_v57  ;;  %2694 = vmatprep.subr.mxu1 %v5348_v30 }
 0x655   :  { %2624 = vmatpush1.msra.mxu0 %v5349_v60  ;;  %2695 = vmatpush1.msra.mxu1 %v5350_v27 }
 0x656   :  { %2625 = vmatprep.subr.mxu0 %v5351_v53  ;;  %2696 = vmatprep.subr.mxu1 %v5352_v28 }
 0x657   :  { %2626 = vmatpush1.msra.mxu0 %v5366_v17  ;;  %2697 = vmatpush1.msra.mxu1 %v5367_v26 }
 0x658   :  { %2627 = vmatprep.subr.mxu0 %v5355_v0  ;;  %2698 = vmatprep.subr.mxu1 %v5368_v42 }
 0x659   :  { %2628 = vmatpush1.msra.mxu0 %v5369_v8  ;;  %2699 = vmatpush1.msra.mxu1 %v5358_v33 }
 0x65a   :  { %2629 = vmatprep.subr.mxu0 %v5359_v6  ;;  %2700 = vmatprep.subr.mxu1 %v5360_v48 }
 0x65b   :  { %2630 = vmatpush1.msra.mxu0 %v5361_v3  ;;  %2663 = vmatprep.mubr.f32.mxu0 %v5362_v23 }
 0x65c   :  { %2701 = vmatpush1.msra.mxu1 %v5363_v55  ;;  %2734 = vmatprep.mubr.f32.mxu1 %v5362_v23 }
 0x65d   :  { %2745 = vmatprep.subr.mxu0 %v5364_v36  ;;  %2816 = vmatprep.subr.mxu1 %v5365_v9 }
 0x6da   :  { %v2312_v13 = vpop.f32.mrf.mxu0  ;;  %v2383_v58 = vpop.f32.mrf.mxu1 }
 0x6db   :  { %v2388_v14 = vadd.f32 %v2312_v13, %v2238_v11  ;;  %v2390_v9 = vadd.f32 %v2383_v58, %v2240_v47  ;;  %v2236_v11 = vld [vmem:[#allocation4 + $0xd0] sm:$0xff] }
 0x6dc   :  { %v2314_v15 = vpop.f32.mrf.mxu0  ;;  %v2385_v39 = vpop.f32.mrf.mxu1  ;;  %v2243_v13 = vunpack.c.h.bf16 %v2236_v11 }
 0x6dd   :  { %v3004_v16 = vmul.f32 -1.442695, %v2388_v14  ;;  %v2389_v49 = vadd.f32 %v2314_v15, %v2239_v12  ;;  %v2391_v46 = vadd.f32 %v2385_v39, %v2241_v35  ;;  %v2242_v12 = vunpack.c.l.bf16 %v2236_v11 }
 0x6df   :  { %3218 = vpow2.f32 %v3004_v16  ;;  %v3005_v4 = vmul.f32 -1.442695, %v2389_v49  ;;  %v3006_v36 = vmul.f32 -1.442695, %v2391_v46 }
 0x6e1   :  { %3220 = vpow2.f32 %v3005_v4 }
 0x6e2   :  { %3222 = vpow2.f32 %v3006_v36 }
 0x6ec   :  { %v3219_v55 = vpop.eup %3218 }
 0x6ed   :  { %v2541_v23 = vadd.f32 1.0, %v3219_v55  ;;  %v5370_v55 = vld [vmem:[#allocation15_spill] sm:$0xff] }
 0x6ee   :  { %v3221_v3 = vpop.eup %3220 }
 0x6ef   :  { %3224 = vrcp.f32 %v2541_v23  ;;  %v2547_v10 = vadd.f32 1.0, %v3221_v3  ;;  %v3223_v14 = vpop.eup %3222 }
 0x6f0   :  { %3226 = vtanh.f32 %v2390_v9  ;;  %v2554_v36 = vadd.f32 1.0, %v3223_v14 }
 0x6f1   :  { %3228 = vrcp.f32 %v2547_v10  ;;  %v2237_v10 = vld [vmem:[#allocation4 + $0xd8] sm:$0xff] }
 0x6f2   :  { %v2245_v11 = vunpack.c.h.bf16 %v2237_v10 }
 0x6fb   :  { %v2458_v15 = vpop.f32.mrf.mxu0  ;;  %v2529_v3 = vpop.f32.mrf.mxu1 }
 0x6fc   :  { %v3225_v16 = vpop.eup %3224  ;;  %v2534_v49 = vadd.f32 %v2458_v15, %v2242_v12  ;;  %v2244_v15 = vunpack.c.l.bf16 %v2237_v10  ;;  %v3417_v10 = vld [vmem:[#allocation7 + $0x1b8] sm:$0xff] }
 0x6fd   :  { %v3227_v4 = vpop.eup %3226  ;;  %v2460_v35 = vpop.f32.mrf.mxu0 }
 0x6fe   :  { %v3229_v34 = vpop.eup %3228  ;;  %v3007_v39 = vmul.f32 -1.442695, %v2534_v49  ;;  %v2535_v46 = vadd.f32 %v2460_v35, %v2243_v13  ;;  %v2558_v58 = vmul.f32 %v3227_v4, %v3225_v16  ;;  %v2531_v48 = vpop.f32.mrf.mxu1  ;;  %v2536_v16 = vadd.f32 %v2529_v3, %v2244_v15  ;;  %v3415_v3 = vld [vmem:[#allocation7 + $0x1d0] sm:$0xff]  ;;  %v3420_v15 = vld [vmem:[#allocation7 + $0x188] sm:$0xff] }
 0x6ff   :  { %v2557_v47 = vmul.f32 %v3229_v34, %v5370_v55  ;;  %v2537_v12 = vadd.f32 %v2531_v48, %v2245_v11  ;;  %v3411_v55 = vld [vmem:[#allocation7 + $0x1f0] sm:$0xff]  ;;  %v3412_v48 = vld [vmem:[#allocation7 + $0x1c8] sm:$0xff]  ;;  %v3418_v11 = vld [vmem:[#allocation7 + $0x1a0] sm:$0xff] }
 0x700   :  { %3230 = vpow2.f32 %v3007_v39  ;;  %v3008_v23 = vmul.f32 -1.442695, %v2535_v46 }
 0x701   :  { %v4950_v9 = vadd.f32 %v2558_v58, %v2557_v47  ;;  %v3009_v49 = vmul.f32 -1.442695, %v2537_v12  ;;  %v3410_v58 = vld [vmem:[#allocation7 + $0x1e0] sm:$0xff]  ;;  %v3413_v47 = vld [vmem:[#allocation7 + $0x1d8] sm:$0xff]  ;;  %v3419_v12 = vld [vmem:[#allocation7 + $0x1b0] sm:$0xff] }
 0x702   :  { %3232 = vpow2.f32 %v3008_v23  ;;  %v3416_v23 = vld [vmem:[#allocation7 + $0x1a8] sm:$0xff] }
 0x703   :  { %3234 = vrcp.f32 %v2554_v36  ;;  %v3414_v36 = vld [vmem:[#allocation7 + $0x1c0] sm:$0xff] }
 0x704   :  { %3236 = vtanh.f32 %v4950_v9 }
 0x705   :  { %3238 = vpow2.f32 %v3009_v49  ;;  %v3421_v49 = vld [vmem:[#allocation7 + $0x198] sm:$0xff] }
 0x70d   :  { %v3231_v13 = vpop.eup %3230 }
 0x70e   :  { %v2565_v4 = vadd.f32 1.0, %v3231_v13  ;;  %v3422_v13 = vld [vmem:[#allocation7 + $0x180] sm:$0xff] }
 0x70f   :  { %v3233_v35 = vpop.eup %3232 }
 0x710   :  { %v3235_v14 = vpop.eup %3234  ;;  %3240 = vrcp.f32 %v2565_v4  ;;  %v2571_v34 = vadd.f32 1.0, %v3233_v35  ;;  %v3424_v35 = vld [vmem:[#allocation7 + $0x168] sm:$0xff] }
 0x711   :  { %v3237_v39 = vpop.eup %3236  ;;  %3242 = vtanh.f32 %v2536_v16  ;;  %v3423_v16 = vld [vmem:[#allocation7 + $0x190] sm:$0xff] }
 0x712   :  { %3244 = vrcp.f32 %v2571_v34  ;;  %v2561_v46 = vmul.f32 %v3237_v39, %v3235_v14  ;;  %v3239_v4 = vpop.eup %3238  ;;  %v3425_v14 = vld [vmem:[#allocation7 + $0x178] sm:$0xff] }
 0x714   :  { %2664 = vmatmul.mubr.f32.vlgmr.msra.gmra.mxu0 %v2561_v46  ;;  %2735 = vmatmul.mubr.f32.vlgmr.msra.gmra.mxu1 %v2561_v46 }
 0x715   :  { %2746 = vmatpush1.msra.mxu0 %v3410_v58  ;;  %2817 = vmatpush1.msra.mxu1 %v3411_v55  ;;  %v2578_v58 = vadd.f32 1.0, %v3239_v4 }
 0x716   :  { %2747 = vmatprep.subr.mxu0 %v3412_v48  ;;  %2818 = vmatprep.subr.mxu1 %v3413_v47  ;;  %v5371_v48 = vld [vmem:[#allocation26_spill] sm:$0xff] }
 0x717   :  { %2748 = vmatpush1.msra.mxu0 %v3414_v36  ;;  %2819 = vmatpush1.msra.mxu1 %v3415_v3  ;;  %3246 = vrcp.f32 %v2578_v58 }
 0x718   :  { %2749 = vmatprep.subr.mxu0 %v3416_v23  ;;  %2820 = vmatprep.subr.mxu1 %v3417_v10 }
 0x719   :  { %2750 = vmatpush1.msra.mxu0 %v3418_v11  ;;  %2821 = vmatpush1.msra.mxu1 %v3419_v12  ;;  %v2590_v11 = vld [vmem:[#allocation4 + $0xf8] sm:$0xff] }
 0x71a   :  { %2751 = vmatprep.subr.mxu0 %v3420_v15  ;;  %2822 = vmatprep.subr.mxu1 %v3421_v49  ;;  %v2598_v12 = vunpack.c.h.bf16 %v2590_v11 }
 0x71b   :  { %2752 = vmatpush1.msra.mxu0 %v3422_v13  ;;  %2823 = vmatpush1.msra.mxu1 %v3423_v16  ;;  %v2597_v13 = vunpack.c.l.bf16 %v2590_v11 }
 0x71c   :  { %2753 = vmatprep.subr.mxu0 %v3424_v35  ;;  %2824 = vmatprep.subr.mxu1 %v3425_v14 }
 0x71d   :  { %v3241_v34 = vpop.eup %3240  ;;  %2754 = vmatpush1.msra.mxu0 %v4593_v41  ;;  %2825 = vmatpush1.msra.mxu1 %v4596_v43 }
 0x71e   :  { %v3243_v39 = vpop.eup %3242  ;;  %2755 = vmatprep.subr.mxu0 %v4599_v63  ;;  %2826 = vmatprep.subr.mxu1 %v4602_v54  ;;  %v5372_v54 = vld [vmem:[#allocation34_spill] sm:$0xff] }
 0x71f   :  { %v3245_v46 = vpop.eup %3244  ;;  %2756 = vmatpush1.msra.mxu0 %v4605_v61  ;;  %2827 = vmatpush1.msra.mxu1 %v4608_v1  ;;  %v2582_v55 = vmul.f32 %v3243_v39, %v3241_v34  ;;  %v5373_v1 = vld [vmem:[#allocation24_spill] sm:$0xff] }
 0x720   :  { %v2581_v47 = vmul.f32 %v3245_v46, %v5371_v48  ;;  %2757 = vmatprep.subr.mxu0 %v4612_v44  ;;  %2828 = vmatprep.subr.mxu1 %v4615_v56  ;;  %v5374_v44 = vmov 0.0   ;;  %v5375_v56 = vld [vmem:[#allocation31_spill] sm:$0xff] }
 0x721   :  { %2758 = vmatpush1.msra.mxu0 %v4618_v2  ;;  %2829 = vmatpush1.msra.mxu1 %v4621_v5  ;;  %v2587_v2 = vld [vmem:[#allocation4 + $0xe0] sm:$0xff] }
 0x722   :  { %v4964_v41 = vadd.f32 %v2582_v55, %v2581_v47  ;;  %2759 = vmatprep.subr.mxu0 %v4626_v62  ;;  %2830 = vmatprep.subr.mxu1 %v4629_v45  ;;  %v2591_v5 = vunpack.c.l.bf16 %v2587_v2  ;;  %v2592_v62 = vunpack.c.h.bf16 %v2587_v2 }
 0x723   :  { %2760 = vmatpush1.msra.mxu0 %v4632_v18  ;;  %2831 = vmatpush1.msra.mxu1 %v4635_v19 }
 0x724   :  { %2761 = vmatprep.subr.mxu0 %v4638_v20  ;;  %2832 = vmatprep.subr.mxu1 %v4641_v21  ;;  %3248 = vtanh.f32 %v4964_v41  ;;  %v3247_v43 = vpop.eup %3246 }
 0x725   :  { %2762 = vmatpush1.msra.mxu0 %v4645_v22  ;;  %2833 = vmatpush1.msra.mxu1 %v4648_v24 }
 0x726   :  { %2763 = vmatprep.subr.mxu0 %v4651_v25  ;;  %2834 = vmatprep.subr.mxu1 %v4654_v32  ;;  %v2588_v25 = vld [vmem:[#allocation4 + $0xe8] sm:$0xff] }
 0x727   :  { %2764 = vmatpush1.msra.mxu0 %v4657_v52  ;;  %2835 = vmatpush1.msra.mxu1 %v4660_v38  ;;  %v2594_v32 = vunpack.c.h.bf16 %v2588_v25 }
 0x728   :  { %2765 = vmatprep.subr.mxu0 %v4663_v29  ;;  %2836 = vmatprep.subr.mxu1 %v4666_v59  ;;  %v2593_v29 = vunpack.c.l.bf16 %v2588_v25 }
 0x729   :  { %2766 = vmatpush1.msra.mxu0 %v4669_v37  ;;  %2837 = vmatpush1.msra.mxu1 %v4672_v7 }
 0x72a   :  { %2767 = vmatprep.subr.mxu0 %v4675_v50  ;;  %2838 = vmatprep.subr.mxu1 %v5344_v31 }
 0x72b   :  { %2768 = vmatpush1.msra.mxu0 %v5345_v51  ;;  %2839 = vmatpush1.msra.mxu1 %v5346_v40  ;;  %v2589_v40 = vld [vmem:[#allocation4 + $0xf0] sm:$0xff] }
 0x72c   :  { %2769 = vmatprep.subr.mxu0 %v5347_v57  ;;  %2840 = vmatprep.subr.mxu1 %v5348_v30  ;;  %v2595_v57 = vunpack.c.l.bf16 %v2589_v40 }
 0x72d   :  { %2770 = vmatpush1.msra.mxu0 %v5349_v60  ;;  %2841 = vmatpush1.msra.mxu1 %v5350_v27  ;;  %v2596_v60 = vunpack.c.h.bf16 %v2589_v40 }
 0x72e   :  { %2771 = vmatprep.subr.mxu0 %v5351_v53  ;;  %2842 = vmatprep.subr.mxu1 %v5352_v28 }
 0x72f   :  { %2772 = vmatpush1.msra.mxu0 %v5366_v17  ;;  %2843 = vmatpush1.msra.mxu1 %v5367_v26 }
 0x730   :  { %2773 = vmatprep.subr.mxu0 %v5355_v0  ;;  %2844 = vmatprep.subr.mxu1 %v5368_v42 }
 0x731   :  { %v3249_v63 = vpop.eup %3248  ;;  %2774 = vmatpush1.msra.mxu0 %v5369_v8  ;;  %2845 = vmatpush1.msra.mxu1 %v5358_v33 }
 0x732   :  { %2775 = vmatprep.subr.mxu0 %v5359_v6  ;;  %2846 = vmatprep.subr.mxu1 %v5372_v54  ;;  %v2585_v61 = vmul.f32 %v3249_v63, %v3247_v43 }
 0x733   :  { %2776 = vmatpush1.msra.mxu0 %v5373_v1  ;;  %2809 = vmatprep.mubr.f32.mxu0 %v5374_v44 }
 0x734   :  { %2847 = vmatpush1.msra.mxu1 %v5375_v56  ;;  %2880 = vmatprep.mubr.f32.mxu1 %v5374_v44 }
 0x735   :  { %2810 = vmatmul.mubr.f32.vlgmr.msra.gmra.mxu0 %v2585_v61  ;;  %2881 = vmatmul.mubr.f32.vlgmr.msra.gmra.mxu1 %v2585_v61 }
 0x7d4   :  { %v2665_v45 = vpop.f32.mrf.mxu0  ;;  %v2736_v22 = vpop.f32.mrf.mxu1 }
 0x7d5   :  { %v2741_v18 = vadd.f32 %v2665_v45, %v2591_v5  ;;  %v2743_v7 = vadd.f32 %v2736_v22, %v2593_v29 }
 0x7d6   :  { %v2667_v19 = vpop.f32.mrf.mxu0  ;;  %v2738_v52 = vpop.f32.mrf.mxu1 }
 0x7d7   :  { %v3010_v20 = vmul.f32 -1.442695, %v2741_v18  ;;  %v2742_v21 = vadd.f32 %v2667_v19, %v2592_v62  ;;  %v2744_v38 = vadd.f32 %v2738_v52, %v2594_v32 }
 0x7d9   :  { %3250 = vpow2.f32 %v3010_v20  ;;  %v3011_v24 = vmul.f32 -1.442695, %v2742_v21  ;;  %v3012_v59 = vmul.f32 -1.442695, %v2744_v38 }
 0x7db   :  { %3252 = vpow2.f32 %v3011_v24 }
 0x7dc   :  { %3254 = vpow2.f32 %v3012_v59 }
 0x7e6   :  { %v3251_v37 = vpop.eup %3250 }
 0x7e7   :  { %v2894_v50 = vadd.f32 1.0, %v3251_v37 }
 0x7e8   :  { %v3253_v31 = vpop.eup %3252 }
 0x7e9   :  { %3256 = vrcp.f32 %v2894_v50  ;;  %v2900_v51 = vadd.f32 1.0, %v3253_v31  ;;  %v3255_v30 = vpop.eup %3254 }
 0x7ea   :  { %3258 = vtanh.f32 %v2743_v7  ;;  %v2907_v33 = vadd.f32 1.0, %v3255_v30 }
 0x7eb   :  { %3260 = vrcp.f32 %v2900_v51 }
 0x7f5   :  { %v2811_v27 = vpop.f32.mrf.mxu0  ;;  %v2882_v3 = vpop.f32.mrf.mxu1 }
 0x7f6   :  { %v3257_v53 = vpop.eup %3256  ;;  %v2887_v28 = vadd.f32 %v2811_v27, %v2595_v57  ;;  %v2889_v35 = vadd.f32 %v2882_v3, %v2597_v13 }
 0x7f7   :  { %v3259_v0 = vpop.eup %3258  ;;  %v2813_v6 = vpop.f32.mrf.mxu0 }
 0x7f8   :  { %v3261_v17 = vpop.eup %3260  ;;  %v3013_v26 = vmul.f32 -1.442695, %v2887_v28  ;;  %v2888_v42 = vadd.f32 %v2813_v6, %v2596_v60  ;;  %v2911_v8 = vmul.f32 %v3259_v0, %v3257_v53  ;;  %v2884_v15 = vpop.f32.mrf.mxu1 }
 0x7f9   :  { %v2910_v36 = vmul.f32 %v3261_v17, %v4950_v9  ;;  %v2890_v49 = vadd.f32 %v2884_v15, %v2598_v12 }
 0x7fa   :  { %3262 = vpow2.f32 %v3013_v26  ;;  %v3014_v23 = vmul.f32 -1.442695, %v2888_v42 }
 0x7fb   :  { %v2912_v10 = vadd.f32 %v2911_v8, %v2910_v36  ;;  %3264 = vrcp.f32 %v2907_v33  ;;  %v3015_v16 = vmul.f32 -1.442695, %v2890_v49 }
 0x7fc   :  { %3266 = vpow2.f32 %v3014_v23 }
 0x7fd   :  { %3268 = vtanh.f32 %v2912_v10 }
 0x7fe   :  { %3270 = vpow2.f32 %v3015_v16 }
 0x807   :  { %v3263_v4 = vpop.eup %3262 }
 0x808   :  { %v3265_v14 = vpop.eup %3264  ;;  %v2918_v34 = vadd.f32 1.0, %v3263_v4 }
 0x809   :  { %v3267_v39 = vpop.eup %3266 }
 0x80a   :  { %v3269_v9 = vpop.eup %3268  ;;  %3272 = vrcp.f32 %v2918_v34  ;;  %v2924_v46 = vadd.f32 1.0, %v3267_v39 }
 0x80b   :  { %3274 = vtanh.f32 %v2889_v35  ;;  %v2914_v58 = vmul.f32 %v3269_v9, %v3265_v14  ;;  %v3271_v55 = vpop.eup %3270 }
 0x80c   :  { %3276 = vrcp.f32 %v2924_v46  ;;  %v2931_v63 = vadd.f32 1.0, %v3271_v55 }
 0x80d   :  { %2948 = vst [vmem:[#allocation9] sm:$0xff] %v2914_v58 }
 0x80e   :  { %3278 = vrcp.f32 %v2931_v63 }
 0x817   :  { %v3273_v48 = vpop.eup %3272 }
 0x818   :  { %v3275_v47 = vpop.eup %3274 }
 0x819   :  { %v3277_v43 = vpop.eup %3276  ;;  %v2935_v54 = vmul.f32 %v3275_v47, %v3273_v48 }
 0x81a   :  { %v2934_v61 = vmul.f32 %v3277_v43, %v4964_v41 }
 0x81b   :  { %v3279_v44 = vpop.eup %3278 }
 0x81c   :  { %v2936_v1 = vadd.f32 %v2935_v54, %v2934_v61 }
 0x81e   :  { %3280 = vtanh.f32 %v2936_v1 }
 0x82b   :  { %v3281_v56 = vpop.eup %3280 }
 0x82c   :  { %v2938_v2 = vmul.f32 %v3281_v56, %v3279_v44 }
 0x82e   :  { %2949 = vst [vmem:[#allocation9 + $0x8] sm:$0xff] %v2938_v2 }
 0x82f   :  { %3477 = shalt.err (!%p3474_p0)
}
 0x830   :  { %s3500_s24 = smov 128   ;;  %s3501_s25 = smov 8  }
 0x831   :  { %2961 = dma.vmem_to_hbm [thread:$0]  %s2956_s1, 256, %s5012_s2, [#allocation6], %s3500_s24, %s3500_s24, %s3501_s25  }
 0x832   :  { %3490 = dma.done.wait [#allocation6], 256  }
 0x833   :  { %3491 = vsyncadd [#allocation6], 4294967040 }
 0x834   :  { %2965 = vsyncpa [#allocation5], 1 }
 0x835   :  { %2966 = vsyncpa [#allocation8], 1 }
 0x836   :  { %2967 = vsyncpa [#allocation6], 1 }

</bundles_post_ra>
